<compile_context>
chip_gen: v6e
topology: v6e:2x2x1
jax: 0.10.0
libtpu: 0.0.40
codegen_flags: <defaults>
</compile_context>

<pallas_src>
import jax
import jax.numpy as jnp
from jax.experimental import pallas as pl
from jax.experimental.pallas import tpu as pltpu


def _se_conv1x1_kernel(s_ref, x_ref, w_ref, o_ref):
    # s_ref: (1, tk)     f32   raw gate logits (lane-dense chunk of x761)
    # x_ref: (tk, HW)    f32   activations chunk
    # w_ref: (tc, tk)    bf16  weight chunk (tc = Cout tile)
    # o_ref: (tc, HW)    f32   output block, resident across the k axis
    k = pl.program_id(1)

    @pl.when(k == 0)
    def _():
        o_ref[...] = jnp.zeros_like(o_ref)

    gate = jax.nn.sigmoid(s_ref[...])                    # f32, EUP
    gate_bf = gate.astype(jnp.bfloat16)                  # tiny (1, tk)
    # Gate the bf16 weight tile directly (sublane broadcast of the (1, tk)
    # gate).  Mathematically identical to gating x; keeps the VPU work bf16.
    wg = w_ref[...] * gate_bf                            # bf16 VPU
    xb = x_ref[...].astype(jnp.bfloat16)                 # bf16 for the MXU
    o_ref[...] += jnp.dot(wg, xb, preferred_element_type=jnp.float32)  # MXU


def prepare_weight(weight):
    """One-time (model-load-time) weight prep: (Cout, Cin, 1, 1) f32 ->
    (Cout, Cin) bf16.  Keep this OUTSIDE the per-call hot path so the
    f32->bf16 convert (and its HBM read+write) is not paid on every forward."""
    Cout, Cin = weight.shape[0], weight.shape[1]
    return weight.reshape(Cout, Cin).astype(jnp.bfloat16)


def _default_tiling():
    """(n_cout, nk) per TPU generation.
    v7x: 2 TensorCores -> split Cout across them ("parallel"); single k step
         since grid-step overhead rivals the whole HBM roofline there.
    v5e/v6e (single TC): 2 k-steps to double-buffer the weight DMA."""
    try:
        kind = jax.devices()[0].device_kind.lower()
    except Exception:
        kind = ""
    if "v7" in kind:
        return 2, 1
    return 1, 2


def se_scale_conv1x1(x761, x757, w2d_bf16, *, n_cout=None, nk=None):
    """x761: (N, Cin, 1, 1) f32, x757: (N, Cin, H, W) f32,
    w2d_bf16: (Cout, Cin) bf16 (from prepare_weight, done once at load time).
    Returns (N, Cout, H, W) f32, matching the PyTorch module semantics."""
    N, Cin, H, W = x757.shape
    Cout = w2d_bf16.shape[0]
    assert x761.shape == (N, Cin, 1, 1)
    assert w2d_bf16.shape == (Cout, Cin) and w2d_bf16.dtype == jnp.bfloat16
    assert N == 1, "kernel specialized to batch 1 (as in the reference module)"

    d_cout, d_nk = _default_tiling()
    n_cout = d_cout if n_cout is None else n_cout
    nk = d_nk if nk is None else nk
    assert Cout % n_cout == 0 and Cin % nk == 0
    tc = Cout // n_cout          # Cout tile (384 or 192) -- multiple of 8
    tk = Cin // nk               # contraction tile (2304 or 1152) -- mult of 128
    HW = H * W

    # All three reshapes below are free (no data movement) for N == 1 NCHW.
    x2d = x757.reshape(Cin, HW)                              # (Cin, HW) f32
    s2d = x761.reshape(1, Cin)                               # (1, Cin)  f32

    # Bytes the call actually moves (x/s are re-streamed once per Cout step).
    cost = pl.CostEstimate(
        flops=2 * HW * Cin * Cout,
        transcendentals=Cin * n_cout,
        bytes_accessed=(n_cout * (x2d.size * 4 + s2d.size * 4)
                        + w2d_bf16.size * 2
                        + Cout * HW * 4),
    )

    out2d = pl.pallas_call(
        _se_conv1x1_kernel,
        out_shape=jax.ShapeDtypeStruct((Cout, HW), jnp.float32),
        grid=(n_cout, nk),
        in_specs=[
            pl.BlockSpec((1, tk), lambda c, k: (0, k)),      # gate logits chunk
            pl.BlockSpec((tk, HW), lambda c, k: (k, 0)),     # activation chunk
            pl.BlockSpec((tc, tk), lambda c, k: (c, k)),     # bf16 weight chunk
        ],
        out_specs=pl.BlockSpec((tc, HW), lambda c, k: (c, 0)),
        compiler_params=pltpu.CompilerParams(
            dimension_semantics=("parallel", "arbitrary"),
        ),
        cost_estimate=cost,
    )(s2d, x2d, w2d_bf16)

    return out2d.reshape(N, Cout, H, W)                      # free reshape


if __name__ == "__main__":
    key = jax.random.PRNGKey(0)
    k1, k2, k3 = jax.random.split(key, 3)

    N, Cin, H, W, Cout = 1, 2304, 7, 7, 384

    x757 = jax.random.normal(k1, (N, Cin, H, W), dtype=jnp.float32)
    x761 = jax.random.normal(k2, (N, Cin, 1, 1), dtype=jnp.float32)
    # deterministic conv weight (Kaiming-ish scale), shape (Cout, Cin, 1, 1)
    weight = jax.random.normal(k3, (Cout, Cin, 1, 1), dtype=jnp.float32) * (
        1.0 / jnp.sqrt(Cin)
    )

    # One-time weight prep (load time) -- NOT part of the per-call hot path.
    w2d_bf16 = jax.block_until_ready(prepare_weight(weight))

    fn = jax.jit(se_scale_conv1x1)
    out = jax.block_until_ready(fn(x761, x757, w2d_bf16))
    assert out.shape == (N, Cout, H, W)

    # plain-JAX f32 reference for a correctness sanity check
    gated = jax.nn.sigmoid(x761) * x757
    ref = jnp.einsum("nchw,oc->nohw", gated, weight.reshape(Cout, Cin))
    # bf16 weight/activation operands (f32 accumulate) => loosened tolerance
    assert jnp.allclose(out, ref, atol=2e-2, rtol=2e-2), float(
        jnp.max(jnp.abs(out - ref))
    )

    print("KERNEL_OK")
</pallas_src>

<mosaic_0001>
module attributes {stable_mosaic.version = 11 : i64} {
  func.func @_se_conv1x1_kernel(%arg0: i32, %arg1: i32, %arg2: memref<1x1152xf32, #tpu.memory_space<vmem>>, %arg3: memref<1152x49xf32, #tpu.memory_space<vmem>>, %arg4: memref<384x1152xbf16, #tpu.memory_space<vmem>>, %arg5: memref<384x49xf32, #tpu.memory_space<vmem>>) attributes {dimension_semantics = [#tpu.dimension_semantics<parallel>, #tpu.dimension_semantics<arbitrary>], iteration_bounds = array<i64: 1, 2>, scalar_prefetch = 0 : i64, scratch_operands = 0 : i64, tpu.core_type = #tpu.core_type<tc>, window_params = [{transform_indices = @transform_0, window_bounds = array<i64: 1, 1152>}, {transform_indices = @transform_1, window_bounds = array<i64: 1152, 49>}, {transform_indices = @transform_2, window_bounds = array<i64: 384, 1152>}, {transform_indices = @transform_3, window_bounds = array<i64: 384, 49>}]} {
    %c0_i32 = arith.constant 0 : i32
    %0 = arith.cmpi eq, %arg1, %c0_i32 : i32
    %1 = arith.extui %0 : i1 to i32
    %c0_i32_0 = arith.constant 0 : i32
    %2 = arith.cmpi ne, %1, %c0_i32_0 : i32
    scf.if %2 {
      %cst_11 = arith.constant 0.000000e+00 : f32
      %19 = vector.broadcast %cst_11 : f32 to vector<384x49xf32>
      %c0_12 = arith.constant 0 : index
      %c0_13 = arith.constant 0 : index
      %20 = vector.load %arg5[%c0_12, %c0_13] : memref<384x49xf32, #tpu.memory_space<vmem>>, vector<384x49xf32>
      tpu.vector_store %arg5[%c0_12, %c0_13], %19 {strides = array<i32>} : memref<384x49xf32, #tpu.memory_space<vmem>>, vector<384x49xf32>,
    } else {
    }
    %c0 = arith.constant 0 : index
    %c0_1 = arith.constant 0 : index
    %3 = vector.load %arg2[%c0, %c0_1] : memref<1x1152xf32, #tpu.memory_space<vmem>>, vector<1x1152xf32>
    %4 = arith.negf %3 : vector<1x1152xf32>
    %5 = math.exp %4 : vector<1x1152xf32>
    %cst = arith.constant 1.000000e+00 : f32
    %6 = vector.broadcast %cst : f32 to vector<1x1152xf32>
    %7 = arith.addf %6, %5 : vector<1x1152xf32>
    %8 = arith.divf %6, %7 : vector<1x1152xf32>
    %9 = arith.truncf %8 : vector<1x1152xf32> to vector<1x1152xbf16>
    %c0_2 = arith.constant 0 : index
    %c0_3 = arith.constant 0 : index
    %10 = vector.load %arg4[%c0_2, %c0_3] : memref<384x1152xbf16, #tpu.memory_space<vmem>>, vector<384x1152xbf16>
    %11 = vector.broadcast %9 : vector<1x1152xbf16> to vector<384x1152xbf16>
    %12 = arith.mulf %10, %11 : vector<384x1152xbf16>
    %c0_4 = arith.constant 0 : index
    %c0_5 = arith.constant 0 : index
    %13 = vector.load %arg3[%c0_4, %c0_5] : memref<1152x49xf32, #tpu.memory_space<vmem>>, vector<1152x49xf32>
    %14 = arith.truncf %13 : vector<1152x49xf32> to vector<1152x49xbf16>
    %c0_6 = arith.constant 0 : index
    %c0_7 = arith.constant 0 : index
    %15 = vector.load %arg5[%c0_6, %c0_7] : memref<384x49xf32, #tpu.memory_space<vmem>>, vector<384x49xf32>
    %cst_8 = arith.constant dense<0.000000e+00> : vector<384x49xf32>
    %16 = tpu.matmul %12, %14, %cst_8 {dimension_numbers = #tpu.dot_dimension_numbers<[1], [0], [0], [1], [0, 0, 1, 1], [], []>} : vector<384x1152xbf16>, vector<1152x49xbf16>, vector<384x49xf32> -> vector<384x49xf32>
    %17 = arith.addf %15, %16 : vector<384x49xf32>
    %c0_9 = arith.constant 0 : index
    %c0_10 = arith.constant 0 : index
    %18 = vector.load %arg5[%c0_9, %c0_10] : memref<384x49xf32, #tpu.memory_space<vmem>>, vector<384x49xf32>
    tpu.vector_store %arg5[%c0_9, %c0_10], %17 {strides = array<i32>} : memref<384x49xf32, #tpu.memory_space<vmem>>, vector<384x49xf32>,
    return
  }
  func.func @transform_0(%arg0: i32, %arg1: i32) -> (i32, i32) {
    %c0_i32 = arith.constant 0 : i32
    %c0_i32_0 = arith.constant 0 : i32
    return %c0_i32, %arg1 : i32, i32
  }
  func.func @transform_1(%arg0: i32, %arg1: i32) -> (i32, i32) {
    %c0_i32 = arith.constant 0 : i32
    %c0_i32_0 = arith.constant 0 : i32
    return %arg1, %c0_i32 : i32, i32
  }
  func.func @transform_2(%arg0: i32, %arg1: i32) -> (i32, i32) {
    %c0_i32 = arith.constant 0 : i32
    return %arg0, %arg1 : i32, i32
  }
  func.func @transform_3(%arg0: i32, %arg1: i32) -> (i32, i32) {
    %c0_i32 = arith.constant 0 : i32
    %c0_i32_0 = arith.constant 0 : i32
    return %arg0, %c0_i32 : i32, i32
  }
}

</mosaic_0001>

<bundles_post_ra>
// kernel: se_scale_conv1x1.1
= control target key start
LH: loop header
LB: loop body
LE: loop exit
PB: predicated region body
PF: predicated region fallthrough
CT: control target
= control target key end

     0   :  { %s4678_s12 = smov 0   ;;  %s4680_s13 = smov 0   ;;  %s6945_s0 = inlined_call_operand.vmem [shape: f32[1,2304], index: 0, kind: input, shape index: {}]   ;;  %s6946_s1 = inlined_call_operand.vmem [shape: f32[2304,49], index: 1, kind: input, shape index: {}]   ;;  %s6947_s2 = inlined_call_operand.vmem [shape: bf16[384,2304], index: 2, kind: input, shape index: {}]   ;;  %s6948_s3 = inlined_call_operand.vmem [shape: f32[384,49], index: 3, kind: output, shape index: {}]  }
   0x1   :  { %s4682_s14 = smov 0   ;;  %s4684_s15 = smov 0  }
   0x2   :  { %s4686_s16 = smov 0  }
   0x3 LB: > { %s22_s17 = sadd.s32 1, %s4650_s15  ;;  %p93_p1 = scmp.ne.s32.totalorder %s4642_s13, %s4638_s12  ;;  %s4654_s16 = sphi %s4686_s16, %s13_s16   ;;  %s4650_s15 = sphi %s4684_s15, %s6986_s15   ;;  %s4646_s14 = sphi %s4682_s14, %s6985_s14   ;;  %s4642_s13 = sphi %s4680_s13, %s6984_s13   ;;  %s4638_s12 = sphi %s4678_s12, %s6983_s12  }
   0x4   : > { %p23_p0 = scmp.ge.s32.totalorder %s22_s17, 2  ;;  %p94_p2 = scmp.eq.s32.totalorder %s4654_s16, 0 }
   0x5   : > { %s86_s19 = sadd.s32 1, %s4642_s13  ;;  %p4123_p5 = scmp.ge.s32.totalorder %s4654_s16, 2 }
   0x6   : > { %s6988_s17 = smov (%p23_p0, %s22_s17), 0  ;;  %p95_p3 = por %p94_p2, %p93_p1 }
   0x7   : > { %s82_s18 = ssub.s32 %s4650_s15, %s6988_s17  ;;  %145 = sbr.rel (%p4123_p5) target bundleno = 145 (0x91), region = 16 }
   0x8   : > { %p84_p4 = scmp.eq.s32.totalorder %s82_s18, 0 }
   0xa   : > { %s4713_s20 = scalar_select %p84_p4, %s4642_s13, %s86_s19  }
   0xc   : > { %165 = sbr.rel (!%p95_p3) target bundleno = 145 (0x91), region = 28  ;;  %s167_s21 = sand.u32 (%p95_p3), 1, %s4642_s13  }
   0xd   : > { %s4451_s22 = smul.u32 (%p95_p3), 36, %s4650_s15 }
   0xe   : > { %s4564_s23 = smul.u32 (%p95_p3), 1728, %s167_s21 }
   0xf   : > { %s4721_s26 = scalar_lea.vmem (%p95_p3), %s6947_s2, %s4451_s22 }
  0x10   : > { %v190_v0 = vld [vmem:[%s4721_s26] sm:$0xff] (%p95_p3)  ;;  %v192_v1 = vld [vmem:[%s4721_s26 + $0x8] sm:$0xff] (%p95_p3)  ;;  %v194_v2 = vld [vmem:[%s4721_s26 + $0x10] sm:$0xff] (%p95_p3)  ;;  %s4726_s27 = scalar_lea.vmem (%p95_p3), [#allocation2], %s4564_s23 }
  0x11   : > { %191 = vst [vmem:[%s4726_s27] sm:$0xff] %v190_v0  ;;  %193 = vst [vmem:[%s4726_s27 + $0x8] sm:$0xff] %v192_v1  ;;  %v196_v3 = vld [vmem:[%s4721_s26 + $0x18] sm:$0xff]  ;;  %v198_v4 = vld [vmem:[%s4721_s26 + $0x48] sm:$0xff] }
  0x12   : > { %195 = vst [vmem:[%s4726_s27 + $0x10] sm:$0xff] %v194_v2  ;;  %v200_v5 = vld [vmem:[%s4721_s26 + $0x50] sm:$0xff]  ;;  %197 = vst [vmem:[%s4726_s27 + $0x18] sm:$0xff] %v196_v3  ;;  %v202_v6 = vld [vmem:[%s4721_s26 + $0x58] sm:$0xff] }
  0x13   : > { %199 = vst [vmem:[%s4726_s27 + $0x24] sm:$0xff] %v198_v4  ;;  %201 = vst [vmem:[%s4726_s27 + $0x2c] sm:$0xff] %v200_v5  ;;  %v204_v7 = vld [vmem:[%s4721_s26 + $0x60] sm:$0xff]  ;;  %v206_v8 = vld [vmem:[%s4721_s26 + $0x90] sm:$0xff] }
  0x14   : > { %203 = vst [vmem:[%s4726_s27 + $0x34] sm:$0xff] %v202_v6  ;;  %205 = vst [vmem:[%s4726_s27 + $0x3c] sm:$0xff] %v204_v7  ;;  %v208_v9 = vld [vmem:[%s4721_s26 + $0x98] sm:$0xff]  ;;  %v210_v10 = vld [vmem:[%s4721_s26 + $0xa0] sm:$0xff] }
  0x15   : > { %207 = vst [vmem:[%s4726_s27 + $0x48] sm:$0xff] %v206_v8  ;;  %v212_v11 = vld [vmem:[%s4721_s26 + $0xa8] sm:$0xff]  ;;  %209 = vst [vmem:[%s4726_s27 + $0x50] sm:$0xff] %v208_v9  ;;  %v214_v12 = vld [vmem:[%s4721_s26 + $0xd8] sm:$0xff] }
  0x16   : > { %211 = vst [vmem:[%s4726_s27 + $0x58] sm:$0xff] %v210_v10  ;;  %213 = vst [vmem:[%s4726_s27 + $0x60] sm:$0xff] %v212_v11  ;;  %v216_v13 = vld [vmem:[%s4721_s26 + $0xe0] sm:$0xff]  ;;  %v218_v14 = vld [vmem:[%s4721_s26 + $0xe8] sm:$0xff] }
  0x17   : > { %215 = vst [vmem:[%s4726_s27 + $0x6c] sm:$0xff] %v214_v12  ;;  %217 = vst [vmem:[%s4726_s27 + $0x74] sm:$0xff] %v216_v13  ;;  %v220_v15 = vld [vmem:[%s4721_s26 + $0xf0] sm:$0xff]  ;;  %v222_v16 = vld [vmem:[%s4721_s26 + $0x120] sm:$0xff] }
  0x18   : > { %219 = vst [vmem:[%s4726_s27 + $0x7c] sm:$0xff] %v218_v14  ;;  %v224_v17 = vld [vmem:[%s4721_s26 + $0x128] sm:$0xff]  ;;  %221 = vst [vmem:[%s4726_s27 + $0x84] sm:$0xff] %v220_v15  ;;  %v226_v18 = vld [vmem:[%s4721_s26 + $0x130] sm:$0xff] }
  0x19   : > { %223 = vst [vmem:[%s4726_s27 + $0x90] sm:$0xff] %v222_v16  ;;  %225 = vst [vmem:[%s4726_s27 + $0x98] sm:$0xff] %v224_v17  ;;  %v228_v19 = vld [vmem:[%s4721_s26 + $0x138] sm:$0xff]  ;;  %v230_v20 = vld [vmem:[%s4721_s26 + $0x168] sm:$0xff] }
  0x1a   : > { %227 = vst [vmem:[%s4726_s27 + $0xa0] sm:$0xff] %v226_v18  ;;  %229 = vst [vmem:[%s4726_s27 + $0xa8] sm:$0xff] %v228_v19  ;;  %v232_v21 = vld [vmem:[%s4721_s26 + $0x170] sm:$0xff]  ;;  %v234_v22 = vld [vmem:[%s4721_s26 + $0x178] sm:$0xff] }
  0x1b   : > { %231 = vst [vmem:[%s4726_s27 + $0xb4] sm:$0xff] %v230_v20  ;;  %v236_v23 = vld [vmem:[%s4721_s26 + $0x180] sm:$0xff]  ;;  %233 = vst [vmem:[%s4726_s27 + $0xbc] sm:$0xff] %v232_v21  ;;  %v238_v24 = vld [vmem:[%s4721_s26 + $0x1b0] sm:$0xff] }
  0x1c   : > { %235 = vst [vmem:[%s4726_s27 + $0xc4] sm:$0xff] %v234_v22  ;;  %237 = vst [vmem:[%s4726_s27 + $0xcc] sm:$0xff] %v236_v23  ;;  %v240_v25 = vld [vmem:[%s4721_s26 + $0x1b8] sm:$0xff]  ;;  %v242_v26 = vld [vmem:[%s4721_s26 + $0x1c0] sm:$0xff] }
  0x1d   : > { %239 = vst [vmem:[%s4726_s27 + $0xd8] sm:$0xff] %v238_v24  ;;  %241 = vst [vmem:[%s4726_s27 + $0xe0] sm:$0xff] %v240_v25  ;;  %v244_v27 = vld [vmem:[%s4721_s26 + $0x1c8] sm:$0xff]  ;;  %v246_v28 = vld [vmem:[%s4721_s26 + $0x1f8] sm:$0xff] }
  0x1e   : > { %243 = vst [vmem:[%s4726_s27 + $0xe8] sm:$0xff] %v242_v26  ;;  %v248_v29 = vld [vmem:[%s4721_s26 + $0x200] sm:$0xff]  ;;  %245 = vst [vmem:[%s4726_s27 + $0xf0] sm:$0xff] %v244_v27  ;;  %v250_v30 = vld [vmem:[%s4721_s26 + $0x208] sm:$0xff] }
  0x1f   : > { %247 = vst [vmem:[%s4726_s27 + $0xfc] sm:$0xff] %v246_v28  ;;  %249 = vst [vmem:[%s4726_s27 + $0x104] sm:$0xff] %v248_v29  ;;  %v252_v31 = vld [vmem:[%s4721_s26 + $0x210] sm:$0xff]  ;;  %v254_v32 = vld [vmem:[%s4721_s26 + $0x240] sm:$0xff] }
  0x20   : > { %251 = vst [vmem:[%s4726_s27 + $0x10c] sm:$0xff] %v250_v30  ;;  %253 = vst [vmem:[%s4726_s27 + $0x114] sm:$0xff] %v252_v31  ;;  %v256_v33 = vld [vmem:[%s4721_s26 + $0x248] sm:$0xff]  ;;  %v258_v34 = vld [vmem:[%s4721_s26 + $0x250] sm:$0xff] }
  0x21   : > { %255 = vst [vmem:[%s4726_s27 + $0x120] sm:$0xff] %v254_v32  ;;  %v260_v35 = vld [vmem:[%s4721_s26 + $0x258] sm:$0xff]  ;;  %257 = vst [vmem:[%s4726_s27 + $0x128] sm:$0xff] %v256_v33  ;;  %v262_v36 = vld [vmem:[%s4721_s26 + $0x288] sm:$0xff] }
  0x22   : > { %259 = vst [vmem:[%s4726_s27 + $0x130] sm:$0xff] %v258_v34  ;;  %261 = vst [vmem:[%s4726_s27 + $0x138] sm:$0xff] %v260_v35  ;;  %v264_v37 = vld [vmem:[%s4721_s26 + $0x290] sm:$0xff]  ;;  %v266_v38 = vld [vmem:[%s4721_s26 + $0x298] sm:$0xff] }
  0x23   : > { %263 = vst [vmem:[%s4726_s27 + $0x144] sm:$0xff] %v262_v36  ;;  %265 = vst [vmem:[%s4726_s27 + $0x14c] sm:$0xff] %v264_v37  ;;  %v268_v39 = vld [vmem:[%s4721_s26 + $0x2a0] sm:$0xff]  ;;  %v270_v40 = vld [vmem:[%s4721_s26 + $0x2d0] sm:$0xff] }
  0x24   : > { %267 = vst [vmem:[%s4726_s27 + $0x154] sm:$0xff] %v266_v38  ;;  %v272_v41 = vld [vmem:[%s4721_s26 + $0x2d8] sm:$0xff]  ;;  %269 = vst [vmem:[%s4726_s27 + $0x15c] sm:$0xff] %v268_v39  ;;  %v274_v42 = vld [vmem:[%s4721_s26 + $0x2e0] sm:$0xff] }
  0x25   : > { %271 = vst [vmem:[%s4726_s27 + $0x168] sm:$0xff] %v270_v40  ;;  %273 = vst [vmem:[%s4726_s27 + $0x170] sm:$0xff] %v272_v41  ;;  %v276_v43 = vld [vmem:[%s4721_s26 + $0x2e8] sm:$0xff]  ;;  %v278_v44 = vld [vmem:[%s4721_s26 + $0x318] sm:$0xff] }
  0x26   : > { %275 = vst [vmem:[%s4726_s27 + $0x178] sm:$0xff] %v274_v42  ;;  %277 = vst [vmem:[%s4726_s27 + $0x180] sm:$0xff] %v276_v43  ;;  %v280_v45 = vld [vmem:[%s4721_s26 + $0x320] sm:$0xff]  ;;  %v282_v46 = vld [vmem:[%s4721_s26 + $0x328] sm:$0xff] }
  0x27   : > { %279 = vst [vmem:[%s4726_s27 + $0x18c] sm:$0xff] %v278_v44  ;;  %v284_v47 = vld [vmem:[%s4721_s26 + $0x330] sm:$0xff]  ;;  %281 = vst [vmem:[%s4726_s27 + $0x194] sm:$0xff] %v280_v45  ;;  %v286_v48 = vld [vmem:[%s4721_s26 + $0x360] sm:$0xff] }
  0x28   : > { %283 = vst [vmem:[%s4726_s27 + $0x19c] sm:$0xff] %v282_v46  ;;  %285 = vst [vmem:[%s4726_s27 + $0x1a4] sm:$0xff] %v284_v47  ;;  %v288_v49 = vld [vmem:[%s4721_s26 + $0x368] sm:$0xff]  ;;  %v290_v50 = vld [vmem:[%s4721_s26 + $0x370] sm:$0xff] }
  0x29   : > { %287 = vst [vmem:[%s4726_s27 + $0x1b0] sm:$0xff] %v286_v48  ;;  %289 = vst [vmem:[%s4726_s27 + $0x1b8] sm:$0xff] %v288_v49  ;;  %v292_v51 = vld [vmem:[%s4721_s26 + $0x378] sm:$0xff]  ;;  %v294_v52 = vld [vmem:[%s4721_s26 + $0x3a8] sm:$0xff] }
  0x2a   : > { %291 = vst [vmem:[%s4726_s27 + $0x1c0] sm:$0xff] %v290_v50  ;;  %v296_v53 = vld [vmem:[%s4721_s26 + $0x3b0] sm:$0xff]  ;;  %293 = vst [vmem:[%s4726_s27 + $0x1c8] sm:$0xff] %v292_v51  ;;  %v298_v54 = vld [vmem:[%s4721_s26 + $0x3b8] sm:$0xff] }
  0x2b   : > { %295 = vst [vmem:[%s4726_s27 + $0x1d4] sm:$0xff] %v294_v52  ;;  %297 = vst [vmem:[%s4726_s27 + $0x1dc] sm:$0xff] %v296_v53  ;;  %v300_v55 = vld [vmem:[%s4721_s26 + $0x3c0] sm:$0xff]  ;;  %v302_v56 = vld [vmem:[%s4721_s26 + $0x3f0] sm:$0xff] }
  0x2c   : > { %299 = vst [vmem:[%s4726_s27 + $0x1e4] sm:$0xff] %v298_v54  ;;  %301 = vst [vmem:[%s4726_s27 + $0x1ec] sm:$0xff] %v300_v55  ;;  %v304_v57 = vld [vmem:[%s4721_s26 + $0x3f8] sm:$0xff]  ;;  %v306_v58 = vld [vmem:[%s4721_s26 + $0x400] sm:$0xff] }
  0x2d   : > { %303 = vst [vmem:[%s4726_s27 + $0x1f8] sm:$0xff] %v302_v56  ;;  %v308_v59 = vld [vmem:[%s4721_s26 + $0x408] sm:$0xff]  ;;  %305 = vst [vmem:[%s4726_s27 + $0x200] sm:$0xff] %v304_v57  ;;  %v310_v60 = vld [vmem:[%s4721_s26 + $0x438] sm:$0xff] }
  0x2e   : > { %307 = vst [vmem:[%s4726_s27 + $0x208] sm:$0xff] %v306_v58  ;;  %309 = vst [vmem:[%s4726_s27 + $0x210] sm:$0xff] %v308_v59  ;;  %v312_v61 = vld [vmem:[%s4721_s26 + $0x440] sm:$0xff]  ;;  %v314_v62 = vld [vmem:[%s4721_s26 + $0x448] sm:$0xff] }
  0x2f   : > { %311 = vst [vmem:[%s4726_s27 + $0x21c] sm:$0xff] %v310_v60  ;;  %313 = vst [vmem:[%s4726_s27 + $0x224] sm:$0xff] %v312_v61  ;;  %v316_v63 = vld [vmem:[%s4721_s26 + $0x450] sm:$0xff]  ;;  %v318_v0 = vld [vmem:[%s4721_s26 + $0x480] sm:$0xff] }
  0x30   : > { %315 = vst [vmem:[%s4726_s27 + $0x22c] sm:$0xff] %v314_v62  ;;  %v320_v1 = vld [vmem:[%s4721_s26 + $0x488] sm:$0xff]  ;;  %317 = vst [vmem:[%s4726_s27 + $0x234] sm:$0xff] %v316_v63  ;;  %v322_v2 = vld [vmem:[%s4721_s26 + $0x490] sm:$0xff] }
  0x31   : > { %319 = vst [vmem:[%s4726_s27 + $0x240] sm:$0xff] %v318_v0  ;;  %321 = vst [vmem:[%s4726_s27 + $0x248] sm:$0xff] %v320_v1  ;;  %v324_v3 = vld [vmem:[%s4721_s26 + $0x498] sm:$0xff]  ;;  %v326_v4 = vld [vmem:[%s4721_s26 + $0x4c8] sm:$0xff] }
  0x32   : > { %323 = vst [vmem:[%s4726_s27 + $0x250] sm:$0xff] %v322_v2  ;;  %325 = vst [vmem:[%s4726_s27 + $0x258] sm:$0xff] %v324_v3  ;;  %v328_v5 = vld [vmem:[%s4721_s26 + $0x4d0] sm:$0xff]  ;;  %v330_v6 = vld [vmem:[%s4721_s26 + $0x4d8] sm:$0xff] }
  0x33   : > { %327 = vst [vmem:[%s4726_s27 + $0x264] sm:$0xff] %v326_v4  ;;  %v332_v7 = vld [vmem:[%s4721_s26 + $0x4e0] sm:$0xff]  ;;  %329 = vst [vmem:[%s4726_s27 + $0x26c] sm:$0xff] %v328_v5  ;;  %v334_v8 = vld [vmem:[%s4721_s26 + $0x510] sm:$0xff] }
  0x34   : > { %331 = vst [vmem:[%s4726_s27 + $0x274] sm:$0xff] %v330_v6  ;;  %333 = vst [vmem:[%s4726_s27 + $0x27c] sm:$0xff] %v332_v7  ;;  %v336_v9 = vld [vmem:[%s4721_s26 + $0x518] sm:$0xff]  ;;  %v338_v10 = vld [vmem:[%s4721_s26 + $0x520] sm:$0xff] }
  0x35   : > { %335 = vst [vmem:[%s4726_s27 + $0x288] sm:$0xff] %v334_v8  ;;  %337 = vst [vmem:[%s4726_s27 + $0x290] sm:$0xff] %v336_v9  ;;  %v340_v11 = vld [vmem:[%s4721_s26 + $0x528] sm:$0xff]  ;;  %v342_v12 = vld [vmem:[%s4721_s26 + $0x558] sm:$0xff] }
  0x36   : > { %339 = vst [vmem:[%s4726_s27 + $0x298] sm:$0xff] %v338_v10  ;;  %v344_v13 = vld [vmem:[%s4721_s26 + $0x560] sm:$0xff]  ;;  %341 = vst [vmem:[%s4726_s27 + $0x2a0] sm:$0xff] %v340_v11  ;;  %v346_v14 = vld [vmem:[%s4721_s26 + $0x568] sm:$0xff] }
  0x37   : > { %343 = vst [vmem:[%s4726_s27 + $0x2ac] sm:$0xff] %v342_v12  ;;  %345 = vst [vmem:[%s4726_s27 + $0x2b4] sm:$0xff] %v344_v13  ;;  %v348_v15 = vld [vmem:[%s4721_s26 + $0x570] sm:$0xff]  ;;  %v350_v16 = vld [vmem:[%s4721_s26 + $0x5a0] sm:$0xff] }
  0x38   : > { %347 = vst [vmem:[%s4726_s27 + $0x2bc] sm:$0xff] %v346_v14  ;;  %349 = vst [vmem:[%s4726_s27 + $0x2c4] sm:$0xff] %v348_v15  ;;  %v352_v17 = vld [vmem:[%s4721_s26 + $0x5a8] sm:$0xff]  ;;  %v354_v18 = vld [vmem:[%s4721_s26 + $0x5b0] sm:$0xff] }
  0x39   : > { %351 = vst [vmem:[%s4726_s27 + $0x2d0] sm:$0xff] %v350_v16  ;;  %v356_v19 = vld [vmem:[%s4721_s26 + $0x5b8] sm:$0xff]  ;;  %353 = vst [vmem:[%s4726_s27 + $0x2d8] sm:$0xff] %v352_v17  ;;  %v358_v20 = vld [vmem:[%s4721_s26 + $0x5e8] sm:$0xff] }
  0x3a   : > { %355 = vst [vmem:[%s4726_s27 + $0x2e0] sm:$0xff] %v354_v18  ;;  %357 = vst [vmem:[%s4726_s27 + $0x2e8] sm:$0xff] %v356_v19  ;;  %v360_v21 = vld [vmem:[%s4721_s26 + $0x5f0] sm:$0xff]  ;;  %v362_v22 = vld [vmem:[%s4721_s26 + $0x5f8] sm:$0xff] }
  0x3b   : > { %359 = vst [vmem:[%s4726_s27 + $0x2f4] sm:$0xff] %v358_v20  ;;  %361 = vst [vmem:[%s4726_s27 + $0x2fc] sm:$0xff] %v360_v21  ;;  %v364_v23 = vld [vmem:[%s4721_s26 + $0x600] sm:$0xff]  ;;  %v366_v24 = vld [vmem:[%s4721_s26 + $0x630] sm:$0xff] }
  0x3c   : > { %363 = vst [vmem:[%s4726_s27 + $0x304] sm:$0xff] %v362_v22  ;;  %v368_v25 = vld [vmem:[%s4721_s26 + $0x638] sm:$0xff]  ;;  %365 = vst [vmem:[%s4726_s27 + $0x30c] sm:$0xff] %v364_v23  ;;  %v370_v26 = vld [vmem:[%s4721_s26 + $0x640] sm:$0xff] }
  0x3d   : > { %367 = vst [vmem:[%s4726_s27 + $0x318] sm:$0xff] %v366_v24  ;;  %369 = vst [vmem:[%s4726_s27 + $0x320] sm:$0xff] %v368_v25  ;;  %v372_v27 = vld [vmem:[%s4721_s26 + $0x648] sm:$0xff]  ;;  %v374_v28 = vld [vmem:[%s4721_s26 + $0x678] sm:$0xff] }
  0x3e   : > { %371 = vst [vmem:[%s4726_s27 + $0x328] sm:$0xff] %v370_v26  ;;  %373 = vst [vmem:[%s4726_s27 + $0x330] sm:$0xff] %v372_v27  ;;  %v376_v29 = vld [vmem:[%s4721_s26 + $0x680] sm:$0xff]  ;;  %v378_v30 = vld [vmem:[%s4721_s26 + $0x688] sm:$0xff] }
  0x3f   : > { %375 = vst [vmem:[%s4726_s27 + $0x33c] sm:$0xff] %v374_v28  ;;  %v380_v31 = vld [vmem:[%s4721_s26 + $0x690] sm:$0xff]  ;;  %377 = vst [vmem:[%s4726_s27 + $0x344] sm:$0xff] %v376_v29  ;;  %v382_v32 = vld [vmem:[%s4721_s26 + $0x6c0] sm:$0xff] }
  0x40   : > { %379 = vst [vmem:[%s4726_s27 + $0x34c] sm:$0xff] %v378_v30  ;;  %381 = vst [vmem:[%s4726_s27 + $0x354] sm:$0xff] %v380_v31  ;;  %v384_v33 = vld [vmem:[%s4721_s26 + $0x6c8] sm:$0xff]  ;;  %v386_v34 = vld [vmem:[%s4721_s26 + $0x6d0] sm:$0xff] }
  0x41   : > { %383 = vst [vmem:[%s4726_s27 + $0x360] sm:$0xff] %v382_v32  ;;  %385 = vst [vmem:[%s4726_s27 + $0x368] sm:$0xff] %v384_v33  ;;  %v388_v35 = vld [vmem:[%s4721_s26 + $0x6d8] sm:$0xff]  ;;  %v390_v36 = vld [vmem:[%s4721_s26 + $0x708] sm:$0xff] }
  0x42   : > { %387 = vst [vmem:[%s4726_s27 + $0x370] sm:$0xff] %v386_v34  ;;  %v392_v37 = vld [vmem:[%s4721_s26 + $0x710] sm:$0xff]  ;;  %389 = vst [vmem:[%s4726_s27 + $0x378] sm:$0xff] %v388_v35  ;;  %v394_v38 = vld [vmem:[%s4721_s26 + $0x718] sm:$0xff] }
  0x43   : > { %391 = vst [vmem:[%s4726_s27 + $0x384] sm:$0xff] %v390_v36  ;;  %393 = vst [vmem:[%s4726_s27 + $0x38c] sm:$0xff] %v392_v37  ;;  %v396_v39 = vld [vmem:[%s4721_s26 + $0x720] sm:$0xff]  ;;  %v398_v40 = vld [vmem:[%s4721_s26 + $0x750] sm:$0xff] }
  0x44   : > { %395 = vst [vmem:[%s4726_s27 + $0x394] sm:$0xff] %v394_v38  ;;  %397 = vst [vmem:[%s4726_s27 + $0x39c] sm:$0xff] %v396_v39  ;;  %v400_v41 = vld [vmem:[%s4721_s26 + $0x758] sm:$0xff]  ;;  %v402_v42 = vld [vmem:[%s4721_s26 + $0x760] sm:$0xff] }
  0x45   : > { %399 = vst [vmem:[%s4726_s27 + $0x3a8] sm:$0xff] %v398_v40  ;;  %v404_v43 = vld [vmem:[%s4721_s26 + $0x768] sm:$0xff]  ;;  %401 = vst [vmem:[%s4726_s27 + $0x3b0] sm:$0xff] %v400_v41  ;;  %v406_v44 = vld [vmem:[%s4721_s26 + $0x798] sm:$0xff] }
  0x46   : > { %403 = vst [vmem:[%s4726_s27 + $0x3b8] sm:$0xff] %v402_v42  ;;  %405 = vst [vmem:[%s4726_s27 + $0x3c0] sm:$0xff] %v404_v43  ;;  %v408_v45 = vld [vmem:[%s4721_s26 + $0x7a0] sm:$0xff]  ;;  %v410_v46 = vld [vmem:[%s4721_s26 + $0x7a8] sm:$0xff] }
  0x47   : > { %407 = vst [vmem:[%s4726_s27 + $0x3cc] sm:$0xff] %v406_v44  ;;  %409 = vst [vmem:[%s4726_s27 + $0x3d4] sm:$0xff] %v408_v45  ;;  %v412_v47 = vld [vmem:[%s4721_s26 + $0x7b0] sm:$0xff]  ;;  %v414_v48 = vld [vmem:[%s4721_s26 + $0x7e0] sm:$0xff] }
  0x48   : > { %411 = vst [vmem:[%s4726_s27 + $0x3dc] sm:$0xff] %v410_v46  ;;  %v416_v49 = vld [vmem:[%s4721_s26 + $0x7e8] sm:$0xff]  ;;  %413 = vst [vmem:[%s4726_s27 + $0x3e4] sm:$0xff] %v412_v47  ;;  %v418_v50 = vld [vmem:[%s4721_s26 + $0x7f0] sm:$0xff] }
  0x49   : > { %415 = vst [vmem:[%s4726_s27 + $0x3f0] sm:$0xff] %v414_v48  ;;  %417 = vst [vmem:[%s4726_s27 + $0x3f8] sm:$0xff] %v416_v49  ;;  %v420_v51 = vld [vmem:[%s4721_s26 + $0x7f8] sm:$0xff]  ;;  %v422_v52 = vld [vmem:[%s4721_s26 + $0x828] sm:$0xff] }
  0x4a   : > { %419 = vst [vmem:[%s4726_s27 + $0x400] sm:$0xff] %v418_v50  ;;  %421 = vst [vmem:[%s4726_s27 + $0x408] sm:$0xff] %v420_v51  ;;  %v424_v53 = vld [vmem:[%s4721_s26 + $0x830] sm:$0xff]  ;;  %v426_v54 = vld [vmem:[%s4721_s26 + $0x838] sm:$0xff] }
  0x4b   : > { %423 = vst [vmem:[%s4726_s27 + $0x414] sm:$0xff] %v422_v52  ;;  %v428_v55 = vld [vmem:[%s4721_s26 + $0x840] sm:$0xff]  ;;  %425 = vst [vmem:[%s4726_s27 + $0x41c] sm:$0xff] %v424_v53  ;;  %v430_v56 = vld [vmem:[%s4721_s26 + $0x870] sm:$0xff] }
  0x4c   : > { %427 = vst [vmem:[%s4726_s27 + $0x424] sm:$0xff] %v426_v54  ;;  %429 = vst [vmem:[%s4726_s27 + $0x42c] sm:$0xff] %v428_v55  ;;  %v432_v57 = vld [vmem:[%s4721_s26 + $0x878] sm:$0xff]  ;;  %v434_v58 = vld [vmem:[%s4721_s26 + $0x880] sm:$0xff] }
  0x4d   : > { %431 = vst [vmem:[%s4726_s27 + $0x438] sm:$0xff] %v430_v56  ;;  %433 = vst [vmem:[%s4726_s27 + $0x440] sm:$0xff] %v432_v57  ;;  %v436_v59 = vld [vmem:[%s4721_s26 + $0x888] sm:$0xff]  ;;  %v438_v60 = vld [vmem:[%s4721_s26 + $0x8b8] sm:$0xff] }
  0x4e   : > { %435 = vst [vmem:[%s4726_s27 + $0x448] sm:$0xff] %v434_v58  ;;  %v440_v61 = vld [vmem:[%s4721_s26 + $0x8c0] sm:$0xff]  ;;  %437 = vst [vmem:[%s4726_s27 + $0x450] sm:$0xff] %v436_v59  ;;  %v442_v62 = vld [vmem:[%s4721_s26 + $0x8c8] sm:$0xff] }
  0x4f   : > { %439 = vst [vmem:[%s4726_s27 + $0x45c] sm:$0xff] %v438_v60  ;;  %441 = vst [vmem:[%s4726_s27 + $0x464] sm:$0xff] %v440_v61  ;;  %v444_v63 = vld [vmem:[%s4721_s26 + $0x8d0] sm:$0xff]  ;;  %v446_v0 = vld [vmem:[%s4721_s26 + $0x900] sm:$0xff] }
  0x50   : > { %443 = vst [vmem:[%s4726_s27 + $0x46c] sm:$0xff] %v442_v62  ;;  %445 = vst [vmem:[%s4726_s27 + $0x474] sm:$0xff] %v444_v63  ;;  %v448_v1 = vld [vmem:[%s4721_s26 + $0x908] sm:$0xff]  ;;  %v450_v2 = vld [vmem:[%s4721_s26 + $0x910] sm:$0xff] }
  0x51   : > { %447 = vst [vmem:[%s4726_s27 + $0x480] sm:$0xff] %v446_v0  ;;  %v452_v3 = vld [vmem:[%s4721_s26 + $0x918] sm:$0xff]  ;;  %449 = vst [vmem:[%s4726_s27 + $0x488] sm:$0xff] %v448_v1  ;;  %v454_v4 = vld [vmem:[%s4721_s26 + $0x948] sm:$0xff] }
  0x52   : > { %451 = vst [vmem:[%s4726_s27 + $0x490] sm:$0xff] %v450_v2  ;;  %453 = vst [vmem:[%s4726_s27 + $0x498] sm:$0xff] %v452_v3  ;;  %v456_v5 = vld [vmem:[%s4721_s26 + $0x950] sm:$0xff]  ;;  %v458_v6 = vld [vmem:[%s4721_s26 + $0x958] sm:$0xff] }
  0x53   : > { %455 = vst [vmem:[%s4726_s27 + $0x4a4] sm:$0xff] %v454_v4  ;;  %457 = vst [vmem:[%s4726_s27 + $0x4ac] sm:$0xff] %v456_v5  ;;  %v460_v7 = vld [vmem:[%s4721_s26 + $0x960] sm:$0xff]  ;;  %v462_v8 = vld [vmem:[%s4721_s26 + $0x990] sm:$0xff] }
  0x54   : > { %459 = vst [vmem:[%s4726_s27 + $0x4b4] sm:$0xff] %v458_v6  ;;  %v464_v9 = vld [vmem:[%s4721_s26 + $0x998] sm:$0xff]  ;;  %461 = vst [vmem:[%s4726_s27 + $0x4bc] sm:$0xff] %v460_v7  ;;  %v466_v10 = vld [vmem:[%s4721_s26 + $0x9a0] sm:$0xff] }
  0x55   : > { %463 = vst [vmem:[%s4726_s27 + $0x4c8] sm:$0xff] %v462_v8  ;;  %465 = vst [vmem:[%s4726_s27 + $0x4d0] sm:$0xff] %v464_v9  ;;  %v468_v11 = vld [vmem:[%s4721_s26 + $0x9a8] sm:$0xff]  ;;  %v470_v12 = vld [vmem:[%s4721_s26 + $0x9d8] sm:$0xff] }
  0x56   : > { %467 = vst [vmem:[%s4726_s27 + $0x4d8] sm:$0xff] %v466_v10  ;;  %469 = vst [vmem:[%s4726_s27 + $0x4e0] sm:$0xff] %v468_v11  ;;  %v472_v13 = vld [vmem:[%s4721_s26 + $0x9e0] sm:$0xff]  ;;  %v474_v14 = vld [vmem:[%s4721_s26 + $0x9e8] sm:$0xff] }
  0x57   : > { %471 = vst [vmem:[%s4726_s27 + $0x4ec] sm:$0xff] %v470_v12  ;;  %v476_v15 = vld [vmem:[%s4721_s26 + $0x9f0] sm:$0xff]  ;;  %473 = vst [vmem:[%s4726_s27 + $0x4f4] sm:$0xff] %v472_v13  ;;  %v478_v16 = vld [vmem:[%s4721_s26 + $0xa20] sm:$0xff] }
  0x58   : > { %475 = vst [vmem:[%s4726_s27 + $0x4fc] sm:$0xff] %v474_v14  ;;  %477 = vst [vmem:[%s4726_s27 + $0x504] sm:$0xff] %v476_v15  ;;  %v480_v17 = vld [vmem:[%s4721_s26 + $0xa28] sm:$0xff]  ;;  %v482_v18 = vld [vmem:[%s4721_s26 + $0xa30] sm:$0xff] }
  0x59   : > { %479 = vst [vmem:[%s4726_s27 + $0x510] sm:$0xff] %v478_v16  ;;  %481 = vst [vmem:[%s4726_s27 + $0x518] sm:$0xff] %v480_v17  ;;  %v484_v19 = vld [vmem:[%s4721_s26 + $0xa38] sm:$0xff]  ;;  %v486_v20 = vld [vmem:[%s4721_s26 + $0xa68] sm:$0xff] }
  0x5a   : > { %483 = vst [vmem:[%s4726_s27 + $0x520] sm:$0xff] %v482_v18  ;;  %v488_v21 = vld [vmem:[%s4721_s26 + $0xa70] sm:$0xff]  ;;  %485 = vst [vmem:[%s4726_s27 + $0x528] sm:$0xff] %v484_v19  ;;  %v490_v22 = vld [vmem:[%s4721_s26 + $0xa78] sm:$0xff] }
  0x5b   : > { %487 = vst [vmem:[%s4726_s27 + $0x534] sm:$0xff] %v486_v20  ;;  %489 = vst [vmem:[%s4726_s27 + $0x53c] sm:$0xff] %v488_v21  ;;  %v492_v23 = vld [vmem:[%s4721_s26 + $0xa80] sm:$0xff]  ;;  %v494_v24 = vld [vmem:[%s4721_s26 + $0xab0] sm:$0xff] }
  0x5c   : > { %491 = vst [vmem:[%s4726_s27 + $0x544] sm:$0xff] %v490_v22  ;;  %493 = vst [vmem:[%s4726_s27 + $0x54c] sm:$0xff] %v492_v23  ;;  %v496_v25 = vld [vmem:[%s4721_s26 + $0xab8] sm:$0xff]  ;;  %v498_v26 = vld [vmem:[%s4721_s26 + $0xac0] sm:$0xff] }
  0x5d   : > { %495 = vst [vmem:[%s4726_s27 + $0x558] sm:$0xff] %v494_v24  ;;  %v500_v27 = vld [vmem:[%s4721_s26 + $0xac8] sm:$0xff]  ;;  %497 = vst [vmem:[%s4726_s27 + $0x560] sm:$0xff] %v496_v25  ;;  %v502_v28 = vld [vmem:[%s4721_s26 + $0xaf8] sm:$0xff] }
  0x5e   : > { %499 = vst [vmem:[%s4726_s27 + $0x568] sm:$0xff] %v498_v26  ;;  %501 = vst [vmem:[%s4726_s27 + $0x570] sm:$0xff] %v500_v27  ;;  %v504_v29 = vld [vmem:[%s4721_s26 + $0xb00] sm:$0xff]  ;;  %v506_v30 = vld [vmem:[%s4721_s26 + $0xb08] sm:$0xff] }
  0x5f   : > { %503 = vst [vmem:[%s4726_s27 + $0x57c] sm:$0xff] %v502_v28  ;;  %505 = vst [vmem:[%s4726_s27 + $0x584] sm:$0xff] %v504_v29  ;;  %v508_v31 = vld [vmem:[%s4721_s26 + $0xb10] sm:$0xff]  ;;  %v510_v32 = vld [vmem:[%s4721_s26 + $0xb40] sm:$0xff] }
  0x60   : > { %507 = vst [vmem:[%s4726_s27 + $0x58c] sm:$0xff] %v506_v30  ;;  %v512_v33 = vld [vmem:[%s4721_s26 + $0xb48] sm:$0xff]  ;;  %509 = vst [vmem:[%s4726_s27 + $0x594] sm:$0xff] %v508_v31  ;;  %v514_v34 = vld [vmem:[%s4721_s26 + $0xb50] sm:$0xff] }
  0x61   : > { %511 = vst [vmem:[%s4726_s27 + $0x5a0] sm:$0xff] %v510_v32  ;;  %513 = vst [vmem:[%s4726_s27 + $0x5a8] sm:$0xff] %v512_v33  ;;  %v516_v35 = vld [vmem:[%s4721_s26 + $0xb58] sm:$0xff]  ;;  %v518_v36 = vld [vmem:[%s4721_s26 + $0xb88] sm:$0xff] }
  0x62   : > { %515 = vst [vmem:[%s4726_s27 + $0x5b0] sm:$0xff] %v514_v34  ;;  %517 = vst [vmem:[%s4726_s27 + $0x5b8] sm:$0xff] %v516_v35  ;;  %v520_v37 = vld [vmem:[%s4721_s26 + $0xb90] sm:$0xff]  ;;  %v522_v38 = vld [vmem:[%s4721_s26 + $0xb98] sm:$0xff] }
  0x63   : > { %519 = vst [vmem:[%s4726_s27 + $0x5c4] sm:$0xff] %v518_v36  ;;  %v524_v39 = vld [vmem:[%s4721_s26 + $0xba0] sm:$0xff]  ;;  %521 = vst [vmem:[%s4726_s27 + $0x5cc] sm:$0xff] %v520_v37  ;;  %v526_v40 = vld [vmem:[%s4721_s26 + $0xbd0] sm:$0xff] }
  0x64   : > { %523 = vst [vmem:[%s4726_s27 + $0x5d4] sm:$0xff] %v522_v38  ;;  %525 = vst [vmem:[%s4726_s27 + $0x5dc] sm:$0xff] %v524_v39  ;;  %v528_v41 = vld [vmem:[%s4721_s26 + $0xbd8] sm:$0xff]  ;;  %v530_v42 = vld [vmem:[%s4721_s26 + $0xbe0] sm:$0xff] }
  0x65   : > { %527 = vst [vmem:[%s4726_s27 + $0x5e8] sm:$0xff] %v526_v40  ;;  %529 = vst [vmem:[%s4726_s27 + $0x5f0] sm:$0xff] %v528_v41  ;;  %v532_v43 = vld [vmem:[%s4721_s26 + $0xbe8] sm:$0xff]  ;;  %v534_v44 = vld [vmem:[%s4721_s26 + $0xc18] sm:$0xff] }
  0x66   : > { %531 = vst [vmem:[%s4726_s27 + $0x5f8] sm:$0xff] %v530_v42  ;;  %v536_v45 = vld [vmem:[%s4721_s26 + $0xc20] sm:$0xff]  ;;  %533 = vst [vmem:[%s4726_s27 + $0x600] sm:$0xff] %v532_v43  ;;  %v538_v46 = vld [vmem:[%s4721_s26 + $0xc28] sm:$0xff] }
  0x67   : > { %535 = vst [vmem:[%s4726_s27 + $0x60c] sm:$0xff] %v534_v44  ;;  %537 = vst [vmem:[%s4726_s27 + $0x614] sm:$0xff] %v536_v45  ;;  %v540_v47 = vld [vmem:[%s4721_s26 + $0xc30] sm:$0xff]  ;;  %v542_v48 = vld [vmem:[%s4721_s26 + $0xc60] sm:$0xff] }
  0x68   : > { %539 = vst [vmem:[%s4726_s27 + $0x61c] sm:$0xff] %v538_v46  ;;  %541 = vst [vmem:[%s4726_s27 + $0x624] sm:$0xff] %v540_v47  ;;  %v544_v49 = vld [vmem:[%s4721_s26 + $0xc68] sm:$0xff]  ;;  %v546_v50 = vld [vmem:[%s4721_s26 + $0xc70] sm:$0xff] }
  0x69   : > { %543 = vst [vmem:[%s4726_s27 + $0x630] sm:$0xff] %v542_v48  ;;  %v548_v51 = vld [vmem:[%s4721_s26 + $0xc78] sm:$0xff]  ;;  %545 = vst [vmem:[%s4726_s27 + $0x638] sm:$0xff] %v544_v49  ;;  %v550_v52 = vld [vmem:[%s4721_s26 + $0xca8] sm:$0xff] }
  0x6a   : > { %547 = vst [vmem:[%s4726_s27 + $0x640] sm:$0xff] %v546_v50  ;;  %549 = vst [vmem:[%s4726_s27 + $0x648] sm:$0xff] %v548_v51  ;;  %v552_v53 = vld [vmem:[%s4721_s26 + $0xcb0] sm:$0xff]  ;;  %v554_v54 = vld [vmem:[%s4721_s26 + $0xcb8] sm:$0xff] }
  0x6b   : > { %551 = vst [vmem:[%s4726_s27 + $0x654] sm:$0xff] %v550_v52  ;;  %553 = vst [vmem:[%s4726_s27 + $0x65c] sm:$0xff] %v552_v53  ;;  %v556_v55 = vld [vmem:[%s4721_s26 + $0xcc0] sm:$0xff]  ;;  %v558_v56 = vld [vmem:[%s4721_s26 + $0xcf0] sm:$0xff] }
  0x6c   : > { %555 = vst [vmem:[%s4726_s27 + $0x664] sm:$0xff] %v554_v54  ;;  %v560_v57 = vld [vmem:[%s4721_s26 + $0xcf8] sm:$0xff]  ;;  %557 = vst [vmem:[%s4726_s27 + $0x66c] sm:$0xff] %v556_v55  ;;  %v562_v58 = vld [vmem:[%s4721_s26 + $0xd00] sm:$0xff] }
  0x6d   : > { %559 = vst [vmem:[%s4726_s27 + $0x678] sm:$0xff] %v558_v56  ;;  %561 = vst [vmem:[%s4726_s27 + $0x680] sm:$0xff] %v560_v57  ;;  %v564_v59 = vld [vmem:[%s4721_s26 + $0xd08] sm:$0xff]  ;;  %v566_v60 = vld [vmem:[%s4721_s26 + $0xd38] sm:$0xff] }
  0x6e   : > { %563 = vst [vmem:[%s4726_s27 + $0x688] sm:$0xff] %v562_v58  ;;  %565 = vst [vmem:[%s4726_s27 + $0x690] sm:$0xff] %v564_v59  ;;  %v568_v61 = vld [vmem:[%s4721_s26 + $0xd40] sm:$0xff]  ;;  %v570_v62 = vld [vmem:[%s4721_s26 + $0xd48] sm:$0xff] }
  0x6f   : > { %567 = vst [vmem:[%s4726_s27 + $0x69c] sm:$0xff] %v566_v60  ;;  %v572_v63 = vld [vmem:[%s4721_s26 + $0xd50] sm:$0xff]  ;;  %569 = vst [vmem:[%s4726_s27 + $0x6a4] sm:$0xff] %v568_v61  ;;  %v4125_v0 = vld [vmem:[%s4721_s26 + $0x20] sm:$0xf] }
  0x70   : > { %571 = vst [vmem:[%s4726_s27 + $0x6ac] sm:$0xff] %v570_v62  ;;  %573 = vst [vmem:[%s4726_s27 + $0x6b4] sm:$0xff] %v572_v63  ;;  %v4127_v1 = vld [vmem:[%s4721_s26 + $0x68] sm:$0xf]  ;;  %v4129_v2 = vld [vmem:[%s4721_s26 + $0xb0] sm:$0xf] }
  0x71   : > { %4126 = vst [vmem:[%s4726_s27 + $0x20] sm:$0xf] %v4125_v0  ;;  %4128 = vst [vmem:[%s4726_s27 + $0x44] sm:$0xf] %v4127_v1  ;;  %v4131_v3 = vld [vmem:[%s4721_s26 + $0xf8] sm:$0xf] }
  0x72   : > { %4130 = vst [vmem:[%s4726_s27 + $0x68] sm:$0xf] %v4129_v2  ;;  %v4133_v4 = vld [vmem:[%s4721_s26 + $0x140] sm:$0xf]  ;;  %v4135_v5 = vld [vmem:[%s4721_s26 + $0x188] sm:$0xf] }
  0x73   : > { %4132 = vst [vmem:[%s4726_s27 + $0x8c] sm:$0xf] %v4131_v3  ;;  %4134 = vst [vmem:[%s4726_s27 + $0xb0] sm:$0xf] %v4133_v4  ;;  %v4137_v6 = vld [vmem:[%s4721_s26 + $0x1d0] sm:$0xf] }
  0x74   : > { %4136 = vst [vmem:[%s4726_s27 + $0xd4] sm:$0xf] %v4135_v5  ;;  %v4139_v7 = vld [vmem:[%s4721_s26 + $0x218] sm:$0xf]  ;;  %v4141_v8 = vld [vmem:[%s4721_s26 + $0x260] sm:$0xf] }
  0x75   : > { %4138 = vst [vmem:[%s4726_s27 + $0xf8] sm:$0xf] %v4137_v6  ;;  %4140 = vst [vmem:[%s4726_s27 + $0x11c] sm:$0xf] %v4139_v7  ;;  %v4143_v9 = vld [vmem:[%s4721_s26 + $0x2a8] sm:$0xf] }
  0x76   : > { %4142 = vst [vmem:[%s4726_s27 + $0x140] sm:$0xf] %v4141_v8  ;;  %v4145_v10 = vld [vmem:[%s4721_s26 + $0x2f0] sm:$0xf]  ;;  %v4147_v11 = vld [vmem:[%s4721_s26 + $0x338] sm:$0xf] }
  0x77   : > { %4144 = vst [vmem:[%s4726_s27 + $0x164] sm:$0xf] %v4143_v9  ;;  %4146 = vst [vmem:[%s4726_s27 + $0x188] sm:$0xf] %v4145_v10  ;;  %v4149_v12 = vld [vmem:[%s4721_s26 + $0x380] sm:$0xf] }
  0x78   : > { %4148 = vst [vmem:[%s4726_s27 + $0x1ac] sm:$0xf] %v4147_v11  ;;  %v4151_v13 = vld [vmem:[%s4721_s26 + $0x3c8] sm:$0xf]  ;;  %v4153_v14 = vld [vmem:[%s4721_s26 + $0x410] sm:$0xf] }
  0x79   : > { %4150 = vst [vmem:[%s4726_s27 + $0x1d0] sm:$0xf] %v4149_v12  ;;  %4152 = vst [vmem:[%s4726_s27 + $0x1f4] sm:$0xf] %v4151_v13  ;;  %v4155_v15 = vld [vmem:[%s4721_s26 + $0x458] sm:$0xf] }
  0x7a   : > { %4154 = vst [vmem:[%s4726_s27 + $0x218] sm:$0xf] %v4153_v14  ;;  %v4157_v16 = vld [vmem:[%s4721_s26 + $0x4a0] sm:$0xf]  ;;  %v4159_v17 = vld [vmem:[%s4721_s26 + $0x4e8] sm:$0xf] }
  0x7b   : > { %4156 = vst [vmem:[%s4726_s27 + $0x23c] sm:$0xf] %v4155_v15  ;;  %4158 = vst [vmem:[%s4726_s27 + $0x260] sm:$0xf] %v4157_v16  ;;  %v4161_v18 = vld [vmem:[%s4721_s26 + $0x530] sm:$0xf] }
  0x7c   : > { %4160 = vst [vmem:[%s4726_s27 + $0x284] sm:$0xf] %v4159_v17  ;;  %v4163_v19 = vld [vmem:[%s4721_s26 + $0x578] sm:$0xf]  ;;  %v4165_v20 = vld [vmem:[%s4721_s26 + $0x5c0] sm:$0xf] }
  0x7d   : > { %4162 = vst [vmem:[%s4726_s27 + $0x2a8] sm:$0xf] %v4161_v18  ;;  %4164 = vst [vmem:[%s4726_s27 + $0x2cc] sm:$0xf] %v4163_v19  ;;  %v4167_v21 = vld [vmem:[%s4721_s26 + $0x608] sm:$0xf] }
  0x7e   : > { %4166 = vst [vmem:[%s4726_s27 + $0x2f0] sm:$0xf] %v4165_v20  ;;  %v4169_v22 = vld [vmem:[%s4721_s26 + $0x650] sm:$0xf]  ;;  %v4171_v23 = vld [vmem:[%s4721_s26 + $0x698] sm:$0xf] }
  0x7f   : > { %4168 = vst [vmem:[%s4726_s27 + $0x314] sm:$0xf] %v4167_v21  ;;  %4170 = vst [vmem:[%s4726_s27 + $0x338] sm:$0xf] %v4169_v22  ;;  %v4173_v24 = vld [vmem:[%s4721_s26 + $0x6e0] sm:$0xf] }
  0x80   : > { %4172 = vst [vmem:[%s4726_s27 + $0x35c] sm:$0xf] %v4171_v23  ;;  %v4175_v25 = vld [vmem:[%s4721_s26 + $0x728] sm:$0xf]  ;;  %v4177_v26 = vld [vmem:[%s4721_s26 + $0x770] sm:$0xf] }
  0x81   : > { %4174 = vst [vmem:[%s4726_s27 + $0x380] sm:$0xf] %v4173_v24  ;;  %4176 = vst [vmem:[%s4726_s27 + $0x3a4] sm:$0xf] %v4175_v25  ;;  %v4179_v27 = vld [vmem:[%s4721_s26 + $0x7b8] sm:$0xf] }
  0x82   : > { %4178 = vst [vmem:[%s4726_s27 + $0x3c8] sm:$0xf] %v4177_v26  ;;  %v4181_v28 = vld [vmem:[%s4721_s26 + $0x800] sm:$0xf]  ;;  %v4183_v29 = vld [vmem:[%s4721_s26 + $0x848] sm:$0xf] }
  0x83   : > { %4180 = vst [vmem:[%s4726_s27 + $0x3ec] sm:$0xf] %v4179_v27  ;;  %4182 = vst [vmem:[%s4726_s27 + $0x410] sm:$0xf] %v4181_v28  ;;  %v4185_v30 = vld [vmem:[%s4721_s26 + $0x890] sm:$0xf] }
  0x84   : > { %4184 = vst [vmem:[%s4726_s27 + $0x434] sm:$0xf] %v4183_v29  ;;  %v4187_v31 = vld [vmem:[%s4721_s26 + $0x8d8] sm:$0xf]  ;;  %v4189_v32 = vld [vmem:[%s4721_s26 + $0x920] sm:$0xf] }
  0x85   : > { %4186 = vst [vmem:[%s4726_s27 + $0x458] sm:$0xf] %v4185_v30  ;;  %4188 = vst [vmem:[%s4726_s27 + $0x47c] sm:$0xf] %v4187_v31  ;;  %v4191_v33 = vld [vmem:[%s4721_s26 + $0x968] sm:$0xf] }
  0x86   : > { %4190 = vst [vmem:[%s4726_s27 + $0x4a0] sm:$0xf] %v4189_v32  ;;  %v4193_v34 = vld [vmem:[%s4721_s26 + $0x9b0] sm:$0xf]  ;;  %v4195_v35 = vld [vmem:[%s4721_s26 + $0x9f8] sm:$0xf] }
  0x87   : > { %4192 = vst [vmem:[%s4726_s27 + $0x4c4] sm:$0xf] %v4191_v33  ;;  %4194 = vst [vmem:[%s4726_s27 + $0x4e8] sm:$0xf] %v4193_v34  ;;  %v4197_v36 = vld [vmem:[%s4721_s26 + $0xa40] sm:$0xf] }
  0x88   : > { %4196 = vst [vmem:[%s4726_s27 + $0x50c] sm:$0xf] %v4195_v35  ;;  %v4199_v37 = vld [vmem:[%s4721_s26 + $0xa88] sm:$0xf]  ;;  %v4201_v38 = vld [vmem:[%s4721_s26 + $0xad0] sm:$0xf] }
  0x89   : > { %4198 = vst [vmem:[%s4726_s27 + $0x530] sm:$0xf] %v4197_v36  ;;  %4200 = vst [vmem:[%s4726_s27 + $0x554] sm:$0xf] %v4199_v37  ;;  %v4203_v39 = vld [vmem:[%s4721_s26 + $0xb18] sm:$0xf] }
  0x8a   : > { %4202 = vst [vmem:[%s4726_s27 + $0x578] sm:$0xf] %v4201_v38  ;;  %v4205_v40 = vld [vmem:[%s4721_s26 + $0xb60] sm:$0xf]  ;;  %v4207_v41 = vld [vmem:[%s4721_s26 + $0xba8] sm:$0xf] }
  0x8b   : > { %4204 = vst [vmem:[%s4726_s27 + $0x59c] sm:$0xf] %v4203_v39  ;;  %4206 = vst [vmem:[%s4726_s27 + $0x5c0] sm:$0xf] %v4205_v40  ;;  %v4209_v42 = vld [vmem:[%s4721_s26 + $0xbf0] sm:$0xf] }
  0x8c   : > { %4208 = vst [vmem:[%s4726_s27 + $0x5e4] sm:$0xf] %v4207_v41  ;;  %v4211_v43 = vld [vmem:[%s4721_s26 + $0xc38] sm:$0xf]  ;;  %v4213_v44 = vld [vmem:[%s4721_s26 + $0xc80] sm:$0xf] }
  0x8d   : > { %4210 = vst [vmem:[%s4726_s27 + $0x608] sm:$0xf] %v4209_v42  ;;  %4212 = vst [vmem:[%s4726_s27 + $0x62c] sm:$0xf] %v4211_v43  ;;  %v4215_v45 = vld [vmem:[%s4721_s26 + $0xcc8] sm:$0xf] }
  0x8e   : > { %4214 = vst [vmem:[%s4726_s27 + $0x650] sm:$0xf] %v4213_v44  ;;  %v4217_v46 = vld [vmem:[%s4721_s26 + $0xd10] sm:$0xf]  ;;  %v4219_v47 = vld [vmem:[%s4721_s26 + $0xd58] sm:$0xf] }
  0x8f   : > { %4216 = vst [vmem:[%s4726_s27 + $0x674] sm:$0xf] %v4215_v45  ;;  %4218 = vst [vmem:[%s4726_s27 + $0x698] sm:$0xf] %v4217_v46 }
  0x90   : > { %4220 = vst [vmem:[%s4726_s27 + $0x6bc] sm:$0xf] %v4219_v47 }
  0x91 PF: > { %p4221_p6 = scmp.ge.s32.totalorder %s4654_s16, 1  ;;  %p682_p7 = scmp.lt.s32.totalorder %s4654_s16, 3 }
  0x93   : > { %p683_p8 = pnand %p4221_p6, %p682_p7 }
  0x95   : > { %686 = sbr.rel (%p683_p8) target bundleno = 884 (0x374), region = 54 }
  0x9a   : > { %s689_s28 = sand.u32 1, %s4638_s12   ;;  %s721_s29 = smul.u32 9, %s4646_s14 }
  0x9b   : > { %s4565_s30 = smul.u32 1728, %s689_s28  ;;  %p4223_p11 = scmp.ne.s32.totalorder %s4646_s14, 0 }
  0x9c   : > { %p722_p9 = scmp.lt.s32.totalorder %s721_s29, 17  ;;  %s726_s4 = smul.u32 144, %s4646_s14 }
  0x9d   : > { %s5220_s18 = scalar_lea.vmem [#allocation2], %s4565_s30 }
  0x9e   : > { %s6990_s29 = smov (!%p722_p9, %s721_s29), 17  ;;  %p727_p10 = scmp.lt.s32.totalorder %s726_s4, 287 }
  0x9f   : > { %s5213_s7 = scalar_lea.vmem %s6945_s0, %s6990_s29  ;;  %744 = sbr.rel (%p4223_p11) target bundleno = 189 (0xbd), region = 62 }
  0xa0   : > { %s6992_s4 = smov (!%p727_p10, %s726_s4), 287 }
  0xa1   : > { %s4222_s8 = sshll.u32 %s6992_s4, 3 }
  0xa2   : > { %s5218_s11 = scalar_lea.vmem %s6946_s1, %s4222_s8 }
  0xa4   : > { %vm745_vm0 = vcmask 400384   ;;  %v4656_v48 = vmov 0.0  }
  0xa5   : > { %746 = vst.msk [vmem:[%s6948_s3] sm:$0xff] %vm745_vm0, %v4656_v48  ;;  %747 = vst.msk [vmem:[%s6948_s3 + $0x8] sm:$0xff] %vm745_vm0, %v4656_v48 }
  0xa6   : > { %748 = vst.msk [vmem:[%s6948_s3 + $0x10] sm:$0xff] %vm745_vm0, %v4656_v48  ;;  %749 = vst.msk [vmem:[%s6948_s3 + $0x18] sm:$0xff] %vm745_vm0, %v4656_v48 }
  0xa7   : > { %750 = vst.msk [vmem:[%s6948_s3 + $0x20] sm:$0xff] %vm745_vm0, %v4656_v48  ;;  %751 = vst.msk [vmem:[%s6948_s3 + $0x28] sm:$0xff] %vm745_vm0, %v4656_v48 }
  0xa8   : > { %752 = vst.msk [vmem:[%s6948_s3 + $0x30] sm:$0xff] %vm745_vm0, %v4656_v48  ;;  %753 = vst.msk [vmem:[%s6948_s3 + $0x38] sm:$0xff] %vm745_vm0, %v4656_v48 }
  0xa9   : > { %754 = vst.msk [vmem:[%s6948_s3 + $0x40] sm:$0xff] %vm745_vm0, %v4656_v48  ;;  %755 = vst.msk [vmem:[%s6948_s3 + $0x48] sm:$0xff] %vm745_vm0, %v4656_v48 }
  0xaa   : > { %756 = vst.msk [vmem:[%s6948_s3 + $0x50] sm:$0xff] %vm745_vm0, %v4656_v48  ;;  %757 = vst.msk [vmem:[%s6948_s3 + $0x58] sm:$0xff] %vm745_vm0, %v4656_v48 }
  0xab   : > { %758 = vst.msk [vmem:[%s6948_s3 + $0x60] sm:$0xff] %vm745_vm0, %v4656_v48  ;;  %759 = vst.msk [vmem:[%s6948_s3 + $0x68] sm:$0xff] %vm745_vm0, %v4656_v48 }
  0xac   : > { %760 = vst.msk [vmem:[%s6948_s3 + $0x70] sm:$0xff] %vm745_vm0, %v4656_v48  ;;  %761 = vst.msk [vmem:[%s6948_s3 + $0x78] sm:$0xff] %vm745_vm0, %v4656_v48 }
  0xad   : > { %762 = vst.msk [vmem:[%s6948_s3 + $0x80] sm:$0xff] %vm745_vm0, %v4656_v48  ;;  %763 = vst.msk [vmem:[%s6948_s3 + $0x88] sm:$0xff] %vm745_vm0, %v4656_v48 }
  0xae   : > { %764 = vst.msk [vmem:[%s6948_s3 + $0x90] sm:$0xff] %vm745_vm0, %v4656_v48  ;;  %765 = vst.msk [vmem:[%s6948_s3 + $0x98] sm:$0xff] %vm745_vm0, %v4656_v48 }
  0xaf   : > { %766 = vst.msk [vmem:[%s6948_s3 + $0xa0] sm:$0xff] %vm745_vm0, %v4656_v48  ;;  %767 = vst.msk [vmem:[%s6948_s3 + $0xa8] sm:$0xff] %vm745_vm0, %v4656_v48 }
  0xb0   : > { %768 = vst.msk [vmem:[%s6948_s3 + $0xb0] sm:$0xff] %vm745_vm0, %v4656_v48  ;;  %769 = vst.msk [vmem:[%s6948_s3 + $0xb8] sm:$0xff] %vm745_vm0, %v4656_v48 }
  0xb1   : > { %770 = vst.msk [vmem:[%s6948_s3 + $0xc0] sm:$0xff] %vm745_vm0, %v4656_v48  ;;  %771 = vst.msk [vmem:[%s6948_s3 + $0xc8] sm:$0xff] %vm745_vm0, %v4656_v48 }
  0xb2   : > { %772 = vst.msk [vmem:[%s6948_s3 + $0xd0] sm:$0xff] %vm745_vm0, %v4656_v48  ;;  %773 = vst.msk [vmem:[%s6948_s3 + $0xd8] sm:$0xff] %vm745_vm0, %v4656_v48 }
  0xb3   : > { %774 = vst.msk [vmem:[%s6948_s3 + $0xe0] sm:$0xff] %vm745_vm0, %v4656_v48  ;;  %775 = vst.msk [vmem:[%s6948_s3 + $0xe8] sm:$0xff] %vm745_vm0, %v4656_v48 }
  0xb4   : > { %776 = vst.msk [vmem:[%s6948_s3 + $0xf0] sm:$0xff] %vm745_vm0, %v4656_v48  ;;  %777 = vst.msk [vmem:[%s6948_s3 + $0xf8] sm:$0xff] %vm745_vm0, %v4656_v48 }
  0xb5   : > { %778 = vst.msk [vmem:[%s6948_s3 + $0x100] sm:$0xff] %vm745_vm0, %v4656_v48  ;;  %779 = vst.msk [vmem:[%s6948_s3 + $0x108] sm:$0xff] %vm745_vm0, %v4656_v48 }
  0xb6   : > { %780 = vst.msk [vmem:[%s6948_s3 + $0x110] sm:$0xff] %vm745_vm0, %v4656_v48  ;;  %781 = vst.msk [vmem:[%s6948_s3 + $0x118] sm:$0xff] %vm745_vm0, %v4656_v48 }
  0xb7   : > { %782 = vst.msk [vmem:[%s6948_s3 + $0x120] sm:$0xff] %vm745_vm0, %v4656_v48  ;;  %783 = vst.msk [vmem:[%s6948_s3 + $0x128] sm:$0xff] %vm745_vm0, %v4656_v48 }
  0xb8   : > { %784 = vst.msk [vmem:[%s6948_s3 + $0x130] sm:$0xff] %vm745_vm0, %v4656_v48  ;;  %785 = vst.msk [vmem:[%s6948_s3 + $0x138] sm:$0xff] %vm745_vm0, %v4656_v48 }
  0xb9   : > { %786 = vst.msk [vmem:[%s6948_s3 + $0x140] sm:$0xff] %vm745_vm0, %v4656_v48  ;;  %787 = vst.msk [vmem:[%s6948_s3 + $0x148] sm:$0xff] %vm745_vm0, %v4656_v48 }
  0xba   : > { %788 = vst.msk [vmem:[%s6948_s3 + $0x150] sm:$0xff] %vm745_vm0, %v4656_v48  ;;  %789 = vst.msk [vmem:[%s6948_s3 + $0x158] sm:$0xff] %vm745_vm0, %v4656_v48 }
  0xbb   : > { %790 = vst.msk [vmem:[%s6948_s3 + $0x160] sm:$0xff] %vm745_vm0, %v4656_v48  ;;  %791 = vst.msk [vmem:[%s6948_s3 + $0x168] sm:$0xff] %vm745_vm0, %v4656_v48 }
  0xbc   : > { %792 = vst.msk [vmem:[%s6948_s3 + $0x170] sm:$0xff] %vm745_vm0, %v4656_v48  ;;  %793 = vst.msk [vmem:[%s6948_s3 + $0x178] sm:$0xff] %vm745_vm0, %v4656_v48 }
  0xbd PF: > { %v1449_v49 = vld [vmem:[%s5218_s11 + $0x70] sm:$0xff]  ;;  %v1450_v50 = vld [vmem:[%s5218_s11 + $0x78] sm:$0xff]  ;;  %v4657_v52 = vmov 0   ;;  %v1447_v55 = vld [vmem:[%s5218_s11 + $0x60] sm:$0xff]  ;;  %vm3976_vm1 = vcmask 400384  }
  0xbe   : > { %v1481_v51 = vld [vmem:[%s5218_s11 + $0x170] sm:$0xff]  ;;  %2803 = vmatprep.subr.bf16.mxu0 %v4657_v52  ;;  %3028 = vmatprep.subr.bf16.mxu1 %v4657_v52  ;;  %v1586_v53 = vpack.c.bf16 %v1450_v50, %v1449_v49  ;;  %v1482_v54 = vld [vmem:[%s5218_s11 + $0x178] sm:$0xff]  ;;  %v1448_v56 = vld [vmem:[%s5218_s11 + $0x68] sm:$0xff] }
  0xbf   : > { %v1602_v57 = vpack.c.bf16 %v1482_v54, %v1481_v51  ;;  %v1479_v58 = vld [vmem:[%s5218_s11 + $0x160] sm:$0xff]  ;;  %v1480_v59 = vld [vmem:[%s5218_s11 + $0x168] sm:$0xff]  ;;  %v1585_v60 = vpack.c.bf16 %v1448_v56, %v1447_v55  ;;  %v1445_v62 = vld [vmem:[%s5218_s11 + $0x50] sm:$0xff] }
  0xc0   : > { %2804 = vmatpush1.bf16.msra.mxu0 %v1586_v53  ;;  %v1601_v61 = vpack.c.bf16 %v1480_v59, %v1479_v58  ;;  %v1446_v63 = vld [vmem:[%s5218_s11 + $0x58] sm:$0xff]  ;;  %v1477_v0 = vld [vmem:[%s5218_s11 + $0x150] sm:$0xff]  ;;  %v1443_v4 = vld [vmem:[%s5218_s11 + $0x40] sm:$0xff] }
  0xc1   : > { %3029 = vmatpush1.bf16.msra.mxu1 %v1602_v57  ;;  %2805 = vmatprep.subr.bf16.mxu0 %v4657_v52  ;;  %v1478_v1 = vld [vmem:[%s5218_s11 + $0x158] sm:$0xff]  ;;  %v1584_v2 = vpack.c.bf16 %v1446_v63, %v1445_v62  ;;  %v1444_v5 = vld [vmem:[%s5218_s11 + $0x48] sm:$0xff]  ;;  %v1475_v6 = vld [vmem:[%s5218_s11 + $0x140] sm:$0xff] }
  0xc2   : > { %3030 = vmatprep.subr.bf16.mxu1 %v4657_v52  ;;  %v1600_v3 = vpack.c.bf16 %v1478_v1, %v1477_v0  ;;  %v1476_v7 = vld [vmem:[%s5218_s11 + $0x148] sm:$0xff]  ;;  %v1583_v8 = vpack.c.bf16 %v1444_v5, %v1443_v4  ;;  %v1441_v10 = vld [vmem:[%s5218_s11 + $0x30] sm:$0xff]  ;;  %v1442_v11 = vld [vmem:[%s5218_s11 + $0x38] sm:$0xff] }
  0xc3   : > { %v1599_v9 = vpack.c.bf16 %v1476_v7, %v1475_v6  ;;  %v1473_v12 = vld [vmem:[%s5218_s11 + $0x130] sm:$0xff]  ;;  %v1474_v13 = vld [vmem:[%s5218_s11 + $0x138] sm:$0xff]  ;;  %v1582_v14 = vpack.c.bf16 %v1442_v11, %v1441_v10  ;;  %v1439_v16 = vld [vmem:[%s5218_s11 + $0x20] sm:$0xff] }
  0xc4   : > { %2806 = vmatpush1.bf16.msra.mxu0 %v1585_v60  ;;  %v1598_v15 = vpack.c.bf16 %v1474_v13, %v1473_v12  ;;  %v1440_v17 = vld [vmem:[%s5218_s11 + $0x28] sm:$0xff]  ;;  %v1471_v18 = vld [vmem:[%s5218_s11 + $0x120] sm:$0xff]  ;;  %v1437_v22 = vld [vmem:[%s5218_s11 + $0x10] sm:$0xff] }
  0xc5   : > { %3031 = vmatpush1.bf16.msra.mxu1 %v1601_v61  ;;  %2807 = vmatprep.subr.bf16.mxu0 %v4657_v52  ;;  %v1472_v19 = vld [vmem:[%s5218_s11 + $0x128] sm:$0xff]  ;;  %v1581_v20 = vpack.c.bf16 %v1440_v17, %v1439_v16  ;;  %v1438_v23 = vld [vmem:[%s5218_s11 + $0x18] sm:$0xff]  ;;  %v1469_v24 = vld [vmem:[%s5218_s11 + $0x110] sm:$0xff]  ;;  %v810_v61 = vlaneseq }
  0xc6   : > { %3032 = vmatprep.subr.bf16.mxu1 %v4657_v52  ;;  %v1597_v21 = vpack.c.bf16 %v1472_v19, %v1471_v18  ;;  %v1470_v25 = vld [vmem:[%s5218_s11 + $0x118] sm:$0xff]  ;;  %v794_v26 = vld [vmem:[%s5213_s7] sm:$0xff]  ;;  %v1580_v28 = vpack.c.bf16 %v1438_v23, %v1437_v22  ;;  %v1436_v31 = vld [vmem:[%s5218_s11 + $0x8] sm:$0xff] }
  0xc7   : > { %v4224_v27 = vmul.f32 -1.442695, %v794_v26  ;;  %v1596_v29 = vpack.c.bf16 %v1470_v25, %v1469_v24  ;;  %v1435_v30 = vld [vmem:[%s5218_s11] sm:$0xff]  ;;  %v1468_v33 = vld [vmem:[%s5218_s11 + $0x108] sm:$0xff]  ;;  %v1465_v36 = vld [vmem:[%s5218_s11 + $0xf0] sm:$0xff]  ;;  %v5492_v4 = vshrl.u32 %v810_v61, 7 }
  0xc8   : > { %2808 = vmatpush1.bf16.msra.mxu0 %v1584_v2  ;;  %v1467_v32 = vld [vmem:[%s5218_s11 + $0x100] sm:$0xff]  ;;  %v1579_v34 = vpack.c.bf16 %v1436_v31, %v1435_v30  ;;  %v1466_v37 = vld [vmem:[%s5218_s11 + $0xf8] sm:$0xff]  ;;  %v1497_v38 = vld [vmem:[%s5218_s11 + $0x1f0] sm:$0xff] }
  0xc9   : > { %3033 = vmatpush1.bf16.msra.mxu1 %v1600_v3  ;;  %2809 = vmatprep.subr.bf16.mxu0 %v4657_v52  ;;  %4608 = vpow2.f32 %v4224_v27  ;;  %v1595_v35 = vpack.c.bf16 %v1468_v33, %v1467_v32  ;;  %v1498_v39 = vld [vmem:[%s5218_s11 + $0x1f8] sm:$0xff]  ;;  %v1594_v40 = vpack.c.bf16 %v1466_v37, %v1465_v36  ;;  %v1463_v42 = vld [vmem:[%s5218_s11 + $0xe0] sm:$0xff]  ;;  %v1464_v43 = vld [vmem:[%s5218_s11 + $0xe8] sm:$0xff]  ;;  %v5501_v11 = vsub.s32 0, %v5492_v4 }
  0xca   : > { %3034 = vmatprep.subr.bf16.mxu1 %v4657_v52  ;;  %v1610_v41 = vpack.c.bf16 %v1498_v39, %v1497_v38  ;;  %v1495_v44 = vld [vmem:[%s5218_s11 + $0x1e0] sm:$0xff]  ;;  %v1496_v45 = vld [vmem:[%s5218_s11 + $0x1e8] sm:$0xff]  ;;  %v1593_v46 = vpack.c.bf16 %v1464_v43, %v1463_v42  ;;  %v1461_v48 = vld [vmem:[%s5218_s11 + $0xd0] sm:$0xff]  ;;  %v816_v12 = vsub.s32 1, %v5492_v4  ;;  %v820_v13 = vsub.s32 2, %v5492_v4 }
  0xcb   : > { %v1609_v47 = vpack.c.bf16 %v1496_v45, %v1495_v44  ;;  %v1462_v49 = vld [vmem:[%s5218_s11 + $0xd8] sm:$0xff]  ;;  %v1493_v51 = vld [vmem:[%s5218_s11 + $0x1d0] sm:$0xff]  ;;  %v1459_v57 = vld [vmem:[%s5218_s11 + $0xc0] sm:$0xff] }
  0xcc   : > { %2810 = vmatpush1.bf16.msra.mxu0 %v1583_v8  ;;  %v1494_v53 = vld [vmem:[%s5218_s11 + $0x1d8] sm:$0xff]  ;;  %v1592_v55 = vpack.c.bf16 %v1462_v49, %v1461_v48  ;;  %v1460_v58 = vld [vmem:[%s5218_s11 + $0xc8] sm:$0xff]  ;;  %v1491_v59 = vld [vmem:[%s5218_s11 + $0x1c0] sm:$0xff] }
  0xcd   : > { %3035 = vmatpush1.bf16.msra.mxu1 %v1599_v9  ;;  %2811 = vmatprep.subr.bf16.mxu0 %v4657_v52  ;;  %v1608_v56 = vpack.c.bf16 %v1494_v53, %v1493_v51  ;;  %v1492_v60 = vld [vmem:[%s5218_s11 + $0x1c8] sm:$0xff]  ;;  %v1591_v62 = vpack.c.bf16 %v1460_v58, %v1459_v57  ;;  %v1457_v0 = vld [vmem:[%s5218_s11 + $0xb0] sm:$0xff]  ;;  %v1458_v1 = vld [vmem:[%s5218_s11 + $0xb8] sm:$0xff] }
  0xce   : > { %3036 = vmatprep.subr.bf16.mxu1 %v4657_v52  ;;  %v1607_v63 = vpack.c.bf16 %v1492_v60, %v1491_v59  ;;  %v1489_v2 = vld [vmem:[%s5218_s11 + $0x1b0] sm:$0xff]  ;;  %v1490_v3 = vld [vmem:[%s5218_s11 + $0x1b8] sm:$0xff]  ;;  %v1590_v5 = vpack.c.bf16 %v1458_v1, %v1457_v0  ;;  %v1455_v7 = vld [vmem:[%s5218_s11 + $0xa0] sm:$0xff] }
  0xcf   : > { %v1606_v6 = vpack.c.bf16 %v1490_v3, %v1489_v2  ;;  %v1456_v8 = vld [vmem:[%s5218_s11 + $0xa8] sm:$0xff]  ;;  %v1487_v9 = vld [vmem:[%s5218_s11 + $0x1a0] sm:$0xff]  ;;  %v1453_v16 = vld [vmem:[%s5218_s11 + $0x90] sm:$0xff] }
  0xd0   : > { %2812 = vmatpush1.bf16.msra.mxu0 %v1582_v14  ;;  %v1488_v10 = vld [vmem:[%s5218_s11 + $0x1a8] sm:$0xff]  ;;  %v824_v14 = vsub.s32 3, %v5492_v4  ;;  %v1454_v18 = vld [vmem:[%s5218_s11 + $0x98] sm:$0xff]  ;;  %v1485_v19 = vld [vmem:[%s5218_s11 + $0x190] sm:$0xff] }
  0xd1   : > { %3037 = vmatpush1.bf16.msra.mxu1 %v1598_v15  ;;  %2813 = vmatprep.subr.bf16.mxu0 %v4657_v52  ;;  %v1589_v15 = vpack.c.bf16 %v1456_v8, %v1455_v7  ;;  %v1605_v17 = vpack.c.bf16 %v1488_v10, %v1487_v9  ;;  %v1588_v26 = vpack.c.bf16 %v1454_v18, %v1453_v16  ;;  %v1483_v30 = vld [vmem:[%s5218_s11 + $0x180] sm:$0xff]  ;;  %v1484_v31 = vld [vmem:[%s5218_s11 + $0x188] sm:$0xff]  ;;  %v1514_v57 = vld [vmem:[%s5218_s11 + $0x278] sm:$0xff] }
  0xd2   : > { %3038 = vmatprep.subr.bf16.mxu1 %v4657_v52  ;;  %v864_v42 = vld [vmem:[%s5220_s18] sm:$0xff]  ;;  %v874_v49 = vld [vmem:[%s5220_s18 + $0x48] sm:$0xff]  ;;  %v880_v58 = vld [vmem:[%s5220_s18 + $0x74] sm:$0xff] }
  0xd3   : > { %v870_v51 = vld [vmem:[%s5220_s18 + $0x2c] sm:$0xff]  ;;  %v1511_v9 = vld [vmem:[%s5218_s11 + $0x260] sm:$0xff]  ;;  %v889_v18 = vld [vmem:[%s5220_s18 + $0xb4] sm:$0xff] }
  0xd4   : > { %2814 = vmatpush1.bf16.msra.mxu0 %v1581_v20  ;;  %v1486_v20 = vld [vmem:[%s5218_s11 + $0x198] sm:$0xff]  ;;  %v879_v53 = vld [vmem:[%s5220_s18 + $0x6c] sm:$0xff]  ;;  %v1543_v16 = vld [vmem:[%s5218_s11 + $0x360] sm:$0xff] }
  0xd5   : > { %3039 = vmatpush1.bf16.msra.mxu1 %v1597_v21  ;;  %2815 = vmatprep.subr.bf16.mxu0 %v4657_v52  ;;  %v1604_v27 = vpack.c.bf16 %v1486_v20, %v1485_v19  ;;  %v1545_v61 = vld [vmem:[%s5218_s11 + $0x370] sm:$0xff]  ;;  %v1512_v10 = vld [vmem:[%s5218_s11 + $0x268] sm:$0xff] }
  0xd6   : > { %3040 = vmatprep.subr.bf16.mxu1 %v4657_v52  ;;  %v4609_v50 = vpop.eup %4608  ;;  %v1544_v20 = vld [vmem:[%s5218_s11 + $0x368] sm:$0xff] }
  0xd7   : > { %v802_v54 = vadd.f32 1.0, %v4609_v50 }
  0xd8   : > { %2816 = vmatpush1.bf16.msra.mxu0 %v1580_v28  ;;  %v1451_v28 = vld [vmem:[%s5218_s11 + $0x80] sm:$0xff] }
  0xd9   : > { %3041 = vmatpush1.bf16.msra.mxu1 %v1596_v29  ;;  %2817 = vmatprep.subr.bf16.mxu0 %v4657_v52  ;;  %4610 = vrcp.f32 %v802_v54  ;;  %v1452_v29 = vld [vmem:[%s5218_s11 + $0x88] sm:$0xff]  ;;  %v875_v54 = vld [vmem:[%s5220_s18 + $0x50] sm:$0xff] }
  0xda   : > { %3042 = vmatprep.subr.bf16.mxu1 %v4657_v52  ;;  %v1587_v39 = vpack.c.bf16 %v1452_v29, %v1451_v28 }
  0xdc   : > { %2818 = vmatpush1.bf16.msra.mxu0 %v1579_v34 }
  0xdd   : > { %3043 = vmatpush1.bf16.msra.mxu1 %v1595_v35  ;;  %2819 = vmatprep.subr.bf16.mxu0 %v4657_v52 }
  0xde   : > { %3044 = vmatprep.subr.bf16.mxu1 %v4657_v52 }
  0xe0   : > { %2820 = vmatpush2.bf16.msra.mxu0 %v1594_v40  ;;  %v1603_v40 = vpack.c.bf16 %v1484_v31, %v1483_v30  ;;  %v1509_v30 = vld [vmem:[%s5218_s11 + $0x250] sm:$0xff]  ;;  %v1510_v31 = vld [vmem:[%s5218_s11 + $0x258] sm:$0xff] }
  0xe1   : > { %3045 = vmatpush2.bf16.msra.mxu1 %v1610_v41  ;;  %2821 = vmatprep.subr.bf16.mxu0 %v4657_v52 }
  0xe2   : > { %3046 = vmatprep.subr.bf16.mxu1 %v4657_v52 }
  0xe4   : > { %2822 = vmatpush2.bf16.msra.mxu0 %v1593_v46  ;;  %v869_v46 = vld [vmem:[%s5220_s18 + $0x24] sm:$0xff] }
  0xe5   : > { %3047 = vmatpush2.bf16.msra.mxu1 %v1609_v47  ;;  %2823 = vmatprep.subr.bf16.mxu0 %v4657_v52  ;;  %v865_v47 = vld [vmem:[%s5220_s18 + $0x8] sm:$0xff] }
  0xe6   : > { %3048 = vmatprep.subr.bf16.mxu1 %v4657_v52  ;;  %v5511_v21 = vpop.eup %4610 }
  0xe7   : > { %v813_v22 = vrot.slane %v5511_v21, %v5501_v11  ;;  %v817_v23 = vrot.slane %v5511_v21, %v816_v12  ;;  %v821_v24 = vrot.slane %v5511_v21, %v820_v13  ;;  %v825_v25 = vrot.slane %v5511_v21, %v824_v14 }
  0xe8   : > { %2824 = vmatpush2.bf16.msra.mxu0 %v1592_v55 }
  0xe9   : > { %3049 = vmatpush2.bf16.msra.mxu1 %v1608_v56  ;;  %2825 = vmatprep.subr.bf16.mxu0 %v4657_v52  ;;  %v855_v32 = vpack.c.bf16 %v813_v22, %v813_v22  ;;  %v856_v33 = vpack.c.bf16 %v817_v23, %v817_v23  ;;  %v857_v34 = vpack.c.bf16 %v821_v24, %v821_v24  ;;  %v1513_v56 = vld [vmem:[%s5218_s11 + $0x270] sm:$0xff]  ;;  %v885_v22 = vld [vmem:[%s5220_s18 + $0x98] sm:$0xff] }
  0xea   : > { %3050 = vmatprep.subr.bf16.mxu1 %v4657_v52  ;;  %v858_v35 = vpack.c.bf16 %v825_v25, %v825_v25  ;;  %v1618_v7 = vpack.c.bf16 %v1514_v57, %v1513_v56  ;;  %v890_v23 = vld [vmem:[%s5220_s18 + $0xbc] sm:$0xff]  ;;  %v1617_v24 = vpack.c.bf16 %v1512_v10, %v1511_v9  ;;  %v1505_v57 = vld [vmem:[%s5218_s11 + $0x230] sm:$0xff]  ;;  %v1504_v9 = vld [vmem:[%s5218_s11 + $0x228] sm:$0xff] }
  0xeb   : > { %v1105_v36 = vpack.i.b16 %v855_v32, %v855_v32  ;;  %v1112_v37 = vpack.i.b16 %v856_v33, %v856_v33  ;;  %v1119_v38 = vpack.i.b16 %v857_v34, %v857_v34  ;;  %v1541_v33 = vld [vmem:[%s5218_s11 + $0x350] sm:$0xff]  ;;  %v1542_v34 = vld [vmem:[%s5218_s11 + $0x358] sm:$0xff]  ;;  %v1535_v10 = vld [vmem:[%s5218_s11 + $0x320] sm:$0xff] }
  0xec   : > { %2826 = vmatpush2.bf16.msra.mxu0 %v1591_v62  ;;  %v1126_v41 = vpack.i.b16 %v858_v35, %v858_v35  ;;  %v1546_v62 = vld [vmem:[%s5218_s11 + $0x378] sm:$0xff] }
  0xed   : > { %3051 = vmatpush2.bf16.msra.mxu1 %v1607_v63  ;;  %2827 = vmatprep.subr.bf16.mxu0 %v4657_v52  ;;  %v1110_v43 = vrot.slane %v1105_v36, %v5501_v11  ;;  %v1117_v44 = vrot.slane %v1112_v37, %v5501_v11  ;;  %v1124_v45 = vrot.slane %v1119_v38, %v5501_v11  ;;  %v894_v38 = vld [vmem:[%s5220_s18 + $0xd8] sm:$0xff] }
  0xee   : > { %3052 = vmatprep.subr.bf16.mxu1 %v4657_v52  ;;  %v1131_v48 = vrot.slane %v1126_v41, %v5501_v11  ;;  %v1634_v14 = vpack.c.bf16 %v1546_v62, %v1545_v61  ;;  %v1616_v41 = vpack.c.bf16 %v1510_v31, %v1509_v30  ;;  %v1538_v61 = vld [vmem:[%s5218_s11 + $0x338] sm:$0xff]  ;;  %v915_v30 = vld [vmem:[%s5220_s18 + $0x170] sm:$0xff] }
  0xef   : > { %v5535_v50 = vcombine.low %v1110_v43, %v1117_v44  ;;  %v1632_v43 = vpack.c.bf16 %v1542_v34, %v1541_v33  ;;  %v1507_v44 = vld [vmem:[%s5218_s11 + $0x240] sm:$0xff] }
  0xf0   : > { %2828 = vmatpush2.bf16.msra.mxu0 %v1590_v5  ;;  %v5540_v55 = vcombine.low %v1124_v45, %v1131_v48  ;;  %v1508_v45 = vld [vmem:[%s5218_s11 + $0x248] sm:$0xff]  ;;  %v1499_v34 = vld [vmem:[%s5218_s11 + $0x200] sm:$0xff] }
  0xf1   : > { %3053 = vmatpush2.bf16.msra.mxu1 %v1606_v6  ;;  %2829 = vmatprep.subr.bf16.mxu0 %v4657_v52  ;;  %v1195_v59 = vmul.bf16 %v5535_v50, %v864_v42  ;;  %v1200_v60 = vmul.bf16 %v5535_v50, %v869_v46  ;;  %v1205_v63 = vmul.bf16 %v5535_v50, %v874_v49  ;;  %v900_v42 = vld [vmem:[%s5220_s18 + $0x104] sm:$0xff] }
  0xf2   : > { %3054 = vmatprep.subr.bf16.mxu1 %v4657_v52  ;;  %v1196_v0 = vmul.bf16 %v5540_v55, %v865_v47  ;;  %v1201_v1 = vmul.bf16 %v5540_v55, %v870_v51  ;;  %v1210_v2 = vmul.bf16 %v5535_v50, %v879_v53  ;;  %v1206_v3 = vmul.bf16 %v5540_v55, %v875_v54  ;;  %v1539_v46 = vld [vmem:[%s5218_s11 + $0x340] sm:$0xff]  ;;  %v1540_v47 = vld [vmem:[%s5218_s11 + $0x348] sm:$0xff] }
  0xf3   : > { %v4232_v5 = vcombine.high %v1195_v59, %v1200_v60  ;;  %v4231_v6 = vcombine.low %v1195_v59, %v1200_v60  ;;  %v1211_v8 = vmul.bf16 %v5540_v55, %v880_v58  ;;  %v5572_v28 = vmul.bf16 %v5540_v55, %v885_v22  ;;  %v1506_v58 = vld [vmem:[%s5218_s11 + $0x238] sm:$0xff]  ;;  %v1537_v60 = vld [vmem:[%s5218_s11 + $0x330] sm:$0xff] }
  0xf4   : > { %2830 = vmatpush2.bf16.msra.mxu0 %v1589_v15  ;;  %v4234_v12 = vcombine.high %v1196_v0, %v1201_v1  ;;  %v4233_v13 = vcombine.low %v1196_v0, %v1201_v1  ;;  %v4241_v15 = vcombine.high %v1205_v63, %v1210_v2  ;;  %v5575_v29 = vmul.bf16 %v5540_v55, %v890_v23  ;;  %v904_v1 = vld [vmem:[%s5220_s18 + $0x120] sm:$0xff]  ;;  %v1533_v23 = vld [vmem:[%s5218_s11 + $0x310] sm:$0xff] }
  0xf5   : > { %3055 = vmatpush2.bf16.msra.mxu1 %v1605_v17  ;;  %2831 = vmatprep.subr.bf16.mxu0 %v4657_v52  ;;  %v884_v17 = vld [vmem:[%s5220_s18 + $0x90] sm:$0xff]  ;;  %v4243_v19 = vcombine.high %v1206_v3, %v1211_v8  ;;  %v4240_v32 = vcombine.low %v1205_v63, %v1210_v2  ;;  %v4242_v35 = vcombine.low %v1206_v3, %v1211_v8  ;;  %v909_v2 = vld [vmem:[%s5220_s18 + $0x144] sm:$0xff] }
  0xf6   : > { %3056 = vmatprep.subr.bf16.mxu1 %v4657_v52  ;;  %2835 = vmatprep.mubr.bf16.mxu0 %v4232_v5  ;;  %v5566_v25 = vmul.bf16 %v5535_v50, %v884_v17  ;;  %v4252_v37 = vcombine.high %v5572_v28, %v5575_v29  ;;  %v5598_v48 = vmul.bf16 %v5535_v50, %v894_v38  ;;  %v905_v3 = vld [vmem:[%s5220_s18 + $0x128] sm:$0xff]  ;;  %v1503_v8 = vld [vmem:[%s5218_s11 + $0x220] sm:$0xff] }
  0xf7   : > { %3060 = vmatprep.mubr.bf16.mxu1 %v4234_v12  ;;  %v5607_v53 = vmul.bf16 %v5540_v55, %v900_v42  ;;  %v1615_v54 = vpack.c.bf16 %v1508_v45, %v1507_v44  ;;  %v1631_v56 = vpack.c.bf16 %v1540_v47, %v1539_v46  ;;  %v4251_v62 = vcombine.low %v5572_v28, %v5575_v29  ;;  %v1536_v12 = vld [vmem:[%s5218_s11 + $0x328] sm:$0xff]  ;;  %v1529_v44 = vld [vmem:[%s5218_s11 + $0x2f0] sm:$0xff]  ;;  %v1530_v45 = vld [vmem:[%s5218_s11 + $0x2f8] sm:$0xff] }
  0xf8   : > { %2832 = vmatpush2.bf16.msra.mxu0 %v1588_v26  ;;  %v5569_v26 = vmul.bf16 %v5535_v50, %v889_v18  ;;  %v1614_v5 = vpack.c.bf16 %v1506_v58, %v1505_v57  ;;  %v1613_v17 = vpack.c.bf16 %v1504_v9, %v1503_v8  ;;  %v1629_v18 = vpack.c.bf16 %v1536_v12, %v1535_v10  ;;  %v914_v28 = vld [vmem:[%s5220_s18 + $0x168] sm:$0xff]  ;;  %v1561_v47 = vld [vmem:[%s5218_s11 + $0x3f0] sm:$0xff]  ;;  %v925_v57 = vld [vmem:[%s5220_s18 + $0x1b8] sm:$0xff] }
  0xf9   : > { %3057 = vmatpush2.bf16.msra.mxu1 %v1604_v27  ;;  %2833 = vmatprep.subr.bf16.mxu0 %v4657_v52  ;;  %v1633_v27 = vpack.c.bf16 %v1544_v20, %v1543_v16  ;;  %v1502_v20 = vld [vmem:[%s5218_s11 + $0x218] sm:$0xff]  ;;  %v919_v29 = vld [vmem:[%s5220_s18 + $0x18c] sm:$0xff]  ;;  %v5670_v38 = vmul.bf16 %v5535_v50, %v914_v28  ;;  %v1626_v58 = vpack.c.bf16 %v1530_v45, %v1529_v44 }
  0xfa   : > { %3058 = vmatprep.subr.bf16.mxu1 %v4657_v52  ;;  %v4250_v36 = vcombine.high %v5566_v25, %v5569_v26  ;;  %v4249_v59 = vcombine.low %v5566_v25, %v5569_v26  ;;  %v1525_v8 = vld [vmem:[%s5218_s11 + $0x2d0] sm:$0xff]  ;;  %v1526_v9 = vld [vmem:[%s5218_s11 + $0x2d8] sm:$0xff]  ;;  %v945_v44 = vld [vmem:[%s5220_s18 + $0x248] sm:$0xff] }
  0xfb   : > { %v1557_v12 = vld [vmem:[%s5218_s11 + $0x3d0] sm:$0xff] }
  0xfc   : > { %2834 = vmatpush2.bf16.msra.mxu0 %v1587_v39  ;;  %v899_v39 = vld [vmem:[%s5220_s18 + $0xfc] sm:$0xff] }
  0xfd   : > { %3059 = vmatpush2.bf16.msra.mxu1 %v1603_v40  ;;  %3253 = vmatprep.subr.bf16.mxu0 %v4657_v52  ;;  %v895_v40 = vld [vmem:[%s5220_s18 + $0xe0] sm:$0xff]  ;;  %v5601_v49 = vmul.bf16 %v5535_v50, %v899_v39  ;;  %v5673_v39 = vmul.bf16 %v5535_v50, %v919_v29 }
  0xfe   : > { %3478 = vmatprep.subr.bf16.mxu1 %v4657_v52  ;;  %v5604_v51 = vmul.bf16 %v5540_v55, %v895_v40  ;;  %v5676_v40 = vmul.bf16 %v5540_v55, %v915_v30 }
  0xff   : > { %2836 = vmatmul.mubr.bf16.vlgmr.msra.gmra.mxu0 %v4231_v6  ;;  %v4259_v63 = vcombine.high %v5598_v48, %v5601_v49  ;;  %v910_v6 = vld [vmem:[%s5220_s18 + $0x14c] sm:$0xff]  ;;  %v4258_v22 = vcombine.low %v5598_v48, %v5601_v49  ;;  %v1562_v48 = vld [vmem:[%s5218_s11 + $0x3f8] sm:$0xff]  ;;  %v4276_v10 = vcombine.low %v5670_v38, %v5673_v39 }
 0x100   : > { %3061 = vmatmul.mubr.bf16.vlgmr.msra.gmra.mxu1 %v4233_v13  ;;  %3254 = vmatpush1.bf16.msra.mxu0 %v1618_v7  ;;  %v4261_v0 = vcombine.high %v5604_v51, %v5607_v53  ;;  %v1630_v7 = vpack.c.bf16 %v1538_v61, %v1537_v60  ;;  %v5634_v13 = vmul.bf16 %v5535_v50, %v904_v1  ;;  %v1527_v61 = vld [vmem:[%s5218_s11 + $0x2e0] sm:$0xff] }
 0x101   : > { %3479 = vmatpush1.bf16.msra.mxu1 %v1634_v14  ;;  %2843 = vmatprep.mubr.bf16.mxu0 %v4241_v15  ;;  %v5637_v14 = vmul.bf16 %v5535_v50, %v909_v2  ;;  %v5640_v15 = vmul.bf16 %v5540_v55, %v905_v3  ;;  %v5643_v16 = vmul.bf16 %v5540_v55, %v910_v6 }
 0x102   : > { %3068 = vmatprep.mubr.bf16.mxu1 %v4243_v19  ;;  %3255 = vmatprep.subr.bf16.mxu0 %v4657_v52  ;;  %v1501_v19 = vld [vmem:[%s5218_s11 + $0x210] sm:$0xff]  ;;  %v4260_v25 = vcombine.low %v5604_v51, %v5607_v53  ;;  %v4277_v51 = vcombine.high %v5670_v38, %v5673_v39  ;;  %v1642_v60 = vpack.c.bf16 %v1562_v48, %v1561_v47  ;;  %v1554_v38 = vld [vmem:[%s5218_s11 + $0x3b8] sm:$0xff]  ;;  %v1519_v48 = vld [vmem:[%s5218_s11 + $0x2a0] sm:$0xff] }
 0x103   : > { %3480 = vmatprep.subr.bf16.mxu1 %v4657_v52  ;;  %v4268_v26 = vcombine.high %v5634_v13, %v5637_v14  ;;  %v1612_v31 = vpack.c.bf16 %v1502_v20, %v1501_v19  ;;  %v4267_v46 = vcombine.low %v5634_v13, %v5637_v14  ;;  %v4269_v49 = vcombine.low %v5640_v15, %v5643_v16  ;;  %v1558_v13 = vld [vmem:[%s5218_s11 + $0x3d8] sm:$0xff]  ;;  %v935_v19 = vld [vmem:[%s5220_s18 + $0x200] sm:$0xff] }
 0x104   : > { %3256 = vmatpush1.bf16.msra.mxu0 %v1617_v24  ;;  %v1534_v24 = vld [vmem:[%s5218_s11 + $0x318] sm:$0xff]  ;;  %v5712_v3 = vmul.bf16 %v5540_v55, %v925_v57  ;;  %v1624_v20 = vpack.c.bf16 %v1526_v9, %v1525_v8  ;;  %v5748_v30 = vmul.bf16 %v5540_v55, %v935_v19  ;;  %v1276_v57 = vmul.bf16 %v5540_v55, %v945_v44  ;;  %v955_v8 = vld [vmem:[%s5220_s18 + $0x290] sm:$0xff]  ;;  %v975_v44 = vld [vmem:[%s5220_s18 + $0x320] sm:$0xff] }
 0x105   : > { %3481 = vmatpush1.bf16.msra.mxu1 %v1633_v27  ;;  %3257 = vmatprep.subr.bf16.mxu0 %v4657_v52  ;;  %v4270_v27 = vcombine.high %v5640_v15, %v5643_v16  ;;  %v1628_v33 = vpack.c.bf16 %v1534_v24, %v1533_v23  ;;  %v1640_v23 = vpack.c.bf16 %v1558_v13, %v1557_v12  ;;  %v1523_v24 = vld [vmem:[%s5218_s11 + $0x2c0] sm:$0xff] }
 0x106   : > { %3482 = vmatprep.subr.bf16.mxu1 %v4657_v52  ;;  %v1515_v13 = vld [vmem:[%s5218_s11 + $0x280] sm:$0xff]  ;;  %v1286_v19 = vmul.bf16 %v5540_v55, %v955_v8  ;;  %v995_v8 = vld [vmem:[%s5220_s18 + $0x3b0] sm:$0xff] }
 0x107   : > { %2844 = vmatmul.mubr.bf16.gmra.mxu0 %v4240_v32  ;;  %v920_v32 = vld [vmem:[%s5220_s18 + $0x194] sm:$0xff] }
 0x108   : > { %3069 = vmatmul.mubr.bf16.gmra.mxu1 %v4242_v35  ;;  %2851 = vmatprep.mubr.bf16.mxu0 %v4250_v36  ;;  %v1500_v35 = vld [vmem:[%s5218_s11 + $0x208] sm:$0xff]  ;;  %v1531_v36 = vld [vmem:[%s5218_s11 + $0x300] sm:$0xff] }
 0x109   : > { %3076 = vmatprep.mubr.bf16.mxu1 %v4252_v37  ;;  %3258 = vmatpush1.bf16.msra.mxu0 %v1616_v41  ;;  %v1532_v37 = vld [vmem:[%s5218_s11 + $0x308] sm:$0xff]  ;;  %v5679_v41 = vmul.bf16 %v5540_v55, %v920_v32  ;;  %v1611_v42 = vpack.c.bf16 %v1500_v35, %v1499_v34  ;;  %v1521_v34 = vld [vmem:[%s5218_s11 + $0x2b0] sm:$0xff]  ;;  %v1522_v35 = vld [vmem:[%s5218_s11 + $0x2b8] sm:$0xff] }
 0x10a   : > { %3483 = vmatpush1.bf16.msra.mxu1 %v1632_v43  ;;  %3259 = vmatprep.subr.bf16.mxu0 %v4657_v52  ;;  %v1627_v43 = vpack.c.bf16 %v1532_v37, %v1531_v36  ;;  %v1553_v37 = vld [vmem:[%s5218_s11 + $0x3b0] sm:$0xff]  ;;  %v1622_v45 = vpack.c.bf16 %v1522_v35, %v1521_v34 }
 0x10b   : > { %3484 = vmatprep.subr.bf16.mxu1 %v4657_v52  ;;  %v4279_v53 = vcombine.high %v5676_v40, %v5679_v41  ;;  %v4278_v14 = vcombine.low %v5676_v40, %v5679_v41  ;;  %v1638_v47 = vpack.c.bf16 %v1554_v38, %v1553_v37  ;;  %v1577_v35 = vld [vmem:[%s5218_s11 + $0x470] sm:$0xff] }
 0x10d   : > { %3260 = vmatpush1.bf16.msra.mxu0 %v1615_v54  ;;  %v924_v54 = vld [vmem:[%s5220_s18 + $0x1b0] sm:$0xff] }
 0x10e   : > { %3485 = vmatpush1.bf16.msra.mxu1 %v1631_v56  ;;  %3261 = vmatprep.subr.bf16.mxu0 %v4657_v52  ;;  %v929_v56 = vld [vmem:[%s5220_s18 + $0x1d4] sm:$0xff]  ;;  %v5706_v1 = vmul.bf16 %v5535_v50, %v924_v54 }
 0x10f   : > { %2852 = vmatmul.mubr.bf16.gmra.mxu0 %v4249_v59  ;;  %3486 = vmatprep.subr.bf16.mxu1 %v4657_v52  ;;  %v930_v59 = vld [vmem:[%s5220_s18 + $0x1dc] sm:$0xff]  ;;  %v5709_v2 = vmul.bf16 %v5535_v50, %v929_v56 }
 0x110   : > { %3077 = vmatmul.mubr.bf16.gmra.mxu1 %v4251_v62  ;;  %2859 = vmatprep.mubr.bf16.mxu0 %v4259_v63  ;;  %v1528_v62 = vld [vmem:[%s5218_s11 + $0x2e8] sm:$0xff]  ;;  %v1559_v63 = vld [vmem:[%s5218_s11 + $0x3e0] sm:$0xff] }
 0x111   : > { %3084 = vmatprep.mubr.bf16.mxu1 %v4261_v0  ;;  %3262 = vmatpush1.bf16.msra.mxu0 %v1614_v5  ;;  %v1560_v0 = vld [vmem:[%s5218_s11 + $0x3e8] sm:$0xff]  ;;  %v5715_v5 = vmul.bf16 %v5540_v55, %v930_v59  ;;  %v1625_v6 = vpack.c.bf16 %v1528_v62, %v1527_v61  ;;  %v4286_v15 = vcombine.high %v5706_v1, %v5709_v2  ;;  %v1517_v61 = vld [vmem:[%s5218_s11 + $0x290] sm:$0xff]  ;;  %v1518_v62 = vld [vmem:[%s5218_s11 + $0x298] sm:$0xff] }
 0x112   : > { %3487 = vmatpush1.bf16.msra.mxu1 %v1630_v7  ;;  %3263 = vmatprep.subr.bf16.mxu0 %v4657_v52  ;;  %v1641_v7 = vpack.c.bf16 %v1560_v0, %v1559_v63  ;;  %v4285_v36 = vcombine.low %v5706_v1, %v5709_v2  ;;  %v1549_v0 = vld [vmem:[%s5218_s11 + $0x390] sm:$0xff]  ;;  %v1550_v1 = vld [vmem:[%s5218_s11 + $0x398] sm:$0xff]  ;;  %v1620_v9 = vpack.c.bf16 %v1518_v62, %v1517_v61 }
 0x113   : > { %3488 = vmatprep.subr.bf16.mxu1 %v4657_v52  ;;  %v4288_v16 = vcombine.high %v5712_v3, %v5715_v5  ;;  %v4287_v39 = vcombine.low %v5712_v3, %v5715_v5  ;;  %v1636_v12 = vpack.c.bf16 %v1550_v1, %v1549_v0 }
 0x115   : > { %3264 = vmatpush1.bf16.msra.mxu0 %v1613_v17  ;;  %v934_v17 = vld [vmem:[%s5220_s18 + $0x1f8] sm:$0xff] }
 0x116   : > { %3489 = vmatpush1.bf16.msra.mxu1 %v1629_v18  ;;  %3265 = vmatprep.subr.bf16.mxu0 %v4657_v52  ;;  %v939_v18 = vld [vmem:[%s5220_s18 + $0x21c] sm:$0xff]  ;;  %v5742_v28 = vmul.bf16 %v5535_v50, %v934_v17 }
 0x117   : > { %2860 = vmatmul.mubr.bf16.gmra.mxu0 %v4258_v22  ;;  %3490 = vmatprep.subr.bf16.mxu1 %v4657_v52  ;;  %v940_v22 = vld [vmem:[%s5220_s18 + $0x224] sm:$0xff]  ;;  %v5745_v29 = vmul.bf16 %v5535_v50, %v939_v18 }
 0x118   : > { %3085 = vmatmul.mubr.bf16.gmra.mxu1 %v4260_v25  ;;  %2867 = vmatprep.mubr.bf16.mxu0 %v4268_v26  ;;  %v1524_v25 = vld [vmem:[%s5218_s11 + $0x2c8] sm:$0xff]  ;;  %v1555_v26 = vld [vmem:[%s5218_s11 + $0x3c0] sm:$0xff] }
 0x119   : > { %3092 = vmatprep.mubr.bf16.mxu1 %v4270_v27  ;;  %3266 = vmatpush1.bf16.msra.mxu0 %v1612_v31  ;;  %v1556_v27 = vld [vmem:[%s5218_s11 + $0x3c8] sm:$0xff]  ;;  %v5751_v31 = vmul.bf16 %v5540_v55, %v940_v22  ;;  %v1623_v32 = vpack.c.bf16 %v1524_v25, %v1523_v24  ;;  %v4295_v40 = vcombine.high %v5742_v28, %v5745_v29 }
 0x11a   : > { %3491 = vmatpush1.bf16.msra.mxu1 %v1628_v33  ;;  %3267 = vmatprep.subr.bf16.mxu0 %v4657_v52  ;;  %v1639_v33 = vpack.c.bf16 %v1556_v27, %v1555_v26  ;;  %v4294_v63 = vcombine.low %v5742_v28, %v5745_v29  ;;  %v964_v28 = vld [vmem:[%s5220_s18 + $0x2d0] sm:$0xff] }
 0x11b   : > { %3492 = vmatprep.subr.bf16.mxu1 %v4657_v52  ;;  %v4297_v41 = vcombine.high %v5748_v30, %v5751_v31  ;;  %v4296_v2 = vcombine.low %v5748_v30, %v5751_v31  ;;  %v969_v29 = vld [vmem:[%s5220_s18 + $0x2f4] sm:$0xff]  ;;  %v970_v31 = vld [vmem:[%s5220_s18 + $0x2fc] sm:$0xff] }
 0x11c   : > { %v965_v30 = vld [vmem:[%s5220_s18 + $0x2d8] sm:$0xff]  ;;  %v1301_v34 = vmul.bf16 %v5540_v55, %v970_v31 }
 0x11d   : > { %3268 = vmatpush1.bf16.msra.mxu0 %v1611_v42  ;;  %v944_v42 = vld [vmem:[%s5220_s18 + $0x240] sm:$0xff] }
 0x11e   : > { %3493 = vmatpush1.bf16.msra.mxu1 %v1627_v43  ;;  %3269 = vmatprep.subr.bf16.mxu0 %v4657_v52  ;;  %v949_v43 = vld [vmem:[%s5220_s18 + $0x264] sm:$0xff]  ;;  %v1275_v54 = vmul.bf16 %v5535_v50, %v944_v42  ;;  %v974_v42 = vld [vmem:[%s5220_s18 + $0x318] sm:$0xff] }
 0x11f   : > { %2868 = vmatmul.mubr.bf16.gmra.mxu0 %v4267_v46  ;;  %3494 = vmatprep.subr.bf16.mxu1 %v4657_v52  ;;  %v950_v46 = vld [vmem:[%s5220_s18 + $0x26c] sm:$0xff]  ;;  %v1280_v56 = vmul.bf16 %v5535_v50, %v949_v43  ;;  %v979_v43 = vld [vmem:[%s5220_s18 + $0x33c] sm:$0xff] }
 0x120   : > { %3093 = vmatmul.mubr.bf16.gmra.mxu1 %v4269_v49  ;;  %2875 = vmatprep.mubr.bf16.mxu0 %v4277_v51  ;;  %v1520_v49 = vld [vmem:[%s5218_s11 + $0x2a8] sm:$0xff]  ;;  %v1551_v51 = vld [vmem:[%s5218_s11 + $0x3a0] sm:$0xff] }
 0x121   : > { %3100 = vmatprep.mubr.bf16.mxu1 %v4279_v53  ;;  %3270 = vmatpush2.bf16.msra.mxu0 %v1626_v58  ;;  %v1552_v53 = vld [vmem:[%s5218_s11 + $0x3a8] sm:$0xff]  ;;  %v1281_v58 = vmul.bf16 %v5540_v55, %v950_v46  ;;  %v1621_v59 = vpack.c.bf16 %v1520_v49, %v1519_v48  ;;  %v4304_v3 = vcombine.high %v1275_v54, %v1280_v56 }
 0x122   : > { %3495 = vmatpush2.bf16.msra.mxu1 %v1642_v60  ;;  %3271 = vmatprep.subr.bf16.mxu0 %v4657_v52  ;;  %v1637_v60 = vpack.c.bf16 %v1552_v53, %v1551_v51  ;;  %v4303_v24 = vcombine.low %v1275_v54, %v1280_v56  ;;  %v1305_v46 = vmul.bf16 %v5535_v50, %v974_v42 }
 0x123   : > { %3496 = vmatprep.subr.bf16.mxu1 %v4657_v52  ;;  %v4306_v5 = vcombine.high %v1276_v57, %v1281_v58  ;;  %v4305_v25 = vcombine.low %v1276_v57, %v1281_v58  ;;  %v1306_v48 = vmul.bf16 %v5540_v55, %v975_v44  ;;  %v984_v57 = vld [vmem:[%s5220_s18 + $0x360] sm:$0xff] }
 0x124   : > { %v989_v58 = vld [vmem:[%s5220_s18 + $0x384] sm:$0xff]  ;;  %v1315_v61 = vmul.bf16 %v5535_v50, %v984_v57 }
 0x125   : > { %3272 = vmatpush2.bf16.msra.mxu0 %v1625_v6  ;;  %v954_v6 = vld [vmem:[%s5220_s18 + $0x288] sm:$0xff]  ;;  %v1320_v62 = vmul.bf16 %v5535_v50, %v989_v58  ;;  %v1024_v44 = vld [vmem:[%s5220_s18 + $0x480] sm:$0xff] }
 0x126   : > { %3497 = vmatpush2.bf16.msra.mxu1 %v1641_v7  ;;  %3273 = vmatprep.subr.bf16.mxu0 %v4657_v52  ;;  %v959_v7 = vld [vmem:[%s5220_s18 + $0x2ac] sm:$0xff]  ;;  %v1285_v17 = vmul.bf16 %v5535_v50, %v954_v6 }
 0x127   : > { %2876 = vmatmul.mubr.bf16.gmra.mxu0 %v4276_v10  ;;  %3498 = vmatprep.subr.bf16.mxu1 %v4657_v52  ;;  %v960_v10 = vld [vmem:[%s5220_s18 + $0x2b4] sm:$0xff]  ;;  %v1290_v18 = vmul.bf16 %v5535_v50, %v959_v7  ;;  %v994_v6 = vld [vmem:[%s5220_s18 + $0x3a8] sm:$0xff] }
 0x128   : > { %3101 = vmatmul.mubr.bf16.gmra.mxu1 %v4278_v14  ;;  %2883 = vmatprep.mubr.bf16.mxu0 %v4286_v15  ;;  %v1516_v14 = vld [vmem:[%s5218_s11 + $0x288] sm:$0xff]  ;;  %v1547_v15 = vld [vmem:[%s5218_s11 + $0x380] sm:$0xff] }
 0x129   : > { %3108 = vmatprep.mubr.bf16.mxu1 %v4288_v16  ;;  %3274 = vmatpush2.bf16.msra.mxu0 %v1624_v20  ;;  %v1548_v16 = vld [vmem:[%s5218_s11 + $0x388] sm:$0xff]  ;;  %v1291_v20 = vmul.bf16 %v5540_v55, %v960_v10  ;;  %v1619_v22 = vpack.c.bf16 %v1516_v14, %v1515_v13  ;;  %v4313_v26 = vcombine.high %v1285_v17, %v1290_v18 }
 0x12a   : > { %3499 = vmatpush2.bf16.msra.mxu1 %v1640_v23  ;;  %3275 = vmatprep.subr.bf16.mxu0 %v4657_v52  ;;  %v1635_v23 = vpack.c.bf16 %v1548_v16, %v1547_v15  ;;  %v4312_v38 = vcombine.low %v1285_v17, %v1290_v18  ;;  %v999_v7 = vld [vmem:[%s5220_s18 + $0x3cc] sm:$0xff]  ;;  %v1325_v10 = vmul.bf16 %v5535_v50, %v994_v6 }
 0x12b   : > { %3500 = vmatprep.subr.bf16.mxu1 %v4657_v52  ;;  %v4315_v27 = vcombine.high %v1286_v19, %v1291_v20  ;;  %v1326_v13 = vmul.bf16 %v5540_v55, %v995_v8  ;;  %v4339_v15 = vcombine.low %v1315_v61, %v1320_v62  ;;  %v1044_v8 = vld [vmem:[%s5220_s18 + $0x510] sm:$0xff] }
 0x12d   : > { %3276 = vmatpush2.bf16.msra.mxu0 %v1623_v32  ;;  %v1295_v32 = vmul.bf16 %v5535_v50, %v964_v28 }
 0x12e   : > { %3501 = vmatpush2.bf16.msra.mxu1 %v1639_v33  ;;  %3277 = vmatprep.subr.bf16.mxu0 %v4657_v52  ;;  %v1296_v33 = vmul.bf16 %v5540_v55, %v965_v30 }
 0x12f   : > { %2884 = vmatmul.mubr.bf16.gmra.mxu0 %v4285_v36  ;;  %3502 = vmatprep.subr.bf16.mxu1 %v4657_v52  ;;  %v1578_v36 = vld [vmem:[%s5218_s11 + $0x478] sm:$0xff] }
 0x130   : > { %3109 = vmatmul.mubr.bf16.gmra.mxu1 %v4287_v39  ;;  %2891 = vmatprep.mubr.bf16.mxu0 %v4295_v40  ;;  %v5817_v37 = vpack.c.bf16 %v1578_v36, %v1577_v35  ;;  %v4314_v39 = vcombine.low %v1286_v19, %v1291_v20  ;;  %v4323_v53 = vcombine.low %v1296_v33, %v1301_v34  ;;  %v1004_v19 = vld [vmem:[%s5220_s18 + $0x3f0] sm:$0xff] }
 0x131   : > { %3116 = vmatprep.mubr.bf16.mxu1 %v4297_v41  ;;  %3278 = vmatpush2.bf16.msra.mxu0 %v1622_v45  ;;  %v4324_v41 = vcombine.high %v1296_v33, %v1301_v34  ;;  %v980_v45 = vld [vmem:[%s5220_s18 + $0x344] sm:$0xff]  ;;  %v1009_v20 = vld [vmem:[%s5220_s18 + $0x414] sm:$0xff] }
 0x132   : > { %3503 = vmatpush2.bf16.msra.mxu1 %v1638_v47  ;;  %3279 = vmatprep.subr.bf16.mxu0 %v4657_v52  ;;  %v1310_v47 = vmul.bf16 %v5535_v50, %v979_v43  ;;  %v1311_v49 = vmul.bf16 %v5540_v55, %v980_v45  ;;  %v1015_v33 = vld [vmem:[%s5220_s18 + $0x440] sm:$0xff] }
 0x133   : > { %3504 = vmatprep.subr.bf16.mxu1 %v4657_v52  ;;  %v1020_v34 = vld [vmem:[%s5220_s18 + $0x464] sm:$0xff] }
 0x134   : > { %v4331_v54 = vcombine.high %v1305_v46, %v1310_v47  ;;  %v4333_v56 = vcombine.high %v1306_v48, %v1311_v49  ;;  %v4330_v1 = vcombine.low %v1305_v46, %v1310_v47  ;;  %v1029_v45 = vld [vmem:[%s5220_s18 + $0x4a4] sm:$0xff]  ;;  %v1030_v47 = vld [vmem:[%s5220_s18 + $0x4ac] sm:$0xff] }
 0x135   : > { %3280 = vmatpush2.bf16.msra.mxu0 %v1621_v59  ;;  %v985_v59 = vld [vmem:[%s5220_s18 + $0x368] sm:$0xff] }
 0x136   : > { %3505 = vmatpush2.bf16.msra.mxu1 %v1637_v60  ;;  %3281 = vmatprep.subr.bf16.mxu0 %v4657_v52  ;;  %v990_v60 = vld [vmem:[%s5220_s18 + $0x38c] sm:$0xff] }
 0x137   : > { %2892 = vmatmul.mubr.bf16.gmra.mxu0 %v4294_v63  ;;  %3506 = vmatprep.subr.bf16.mxu1 %v4657_v52  ;;  %v1316_v63 = vmul.bf16 %v5540_v55, %v985_v59  ;;  %v1321_v0 = vmul.bf16 %v5540_v55, %v990_v60  ;;  %v1025_v46 = vld [vmem:[%s5220_s18 + $0x488] sm:$0xff] }
 0x138   : > { %3117 = vmatmul.mubr.bf16.gmra.mxu1 %v4296_v2  ;;  %2899 = vmatprep.mubr.bf16.mxu0 %v4304_v3  ;;  %v4332_v2 = vcombine.low %v1306_v48, %v1311_v49  ;;  %v4340_v3 = vcombine.high %v1315_v61, %v1320_v62  ;;  %v1355_v48 = vmul.bf16 %v5535_v50, %v1024_v44  ;;  %v1034_v59 = vld [vmem:[%s5220_s18 + $0x4c8] sm:$0xff]  ;;  %v1035_v61 = vld [vmem:[%s5220_s18 + $0x4d0] sm:$0xff] }
 0x139   : > { %3124 = vmatprep.mubr.bf16.mxu1 %v4306_v5  ;;  %3282 = vmatpush2.bf16.msra.mxu0 %v1620_v9  ;;  %v4342_v5 = vcombine.high %v1316_v63, %v1321_v0  ;;  %v1000_v9 = vld [vmem:[%s5220_s18 + $0x3d4] sm:$0xff]  ;;  %v4341_v16 = vcombine.low %v1316_v63, %v1321_v0  ;;  %v1360_v49 = vmul.bf16 %v5535_v50, %v1029_v45  ;;  %v1039_v60 = vld [vmem:[%s5220_s18 + $0x4ec] sm:$0xff] }
 0x13a   : > { %3507 = vmatpush2.bf16.msra.mxu1 %v1636_v12  ;;  %3283 = vmatprep.subr.bf16.mxu0 %v4657_v52  ;;  %v1330_v12 = vmul.bf16 %v5535_v50, %v999_v7  ;;  %v1331_v14 = vmul.bf16 %v5540_v55, %v1000_v9  ;;  %v1040_v62 = vld [vmem:[%s5220_s18 + $0x4f4] sm:$0xff]  ;;  %v1365_v63 = vmul.bf16 %v5535_v50, %v1034_v59  ;;  %v836_v59 = vsub.s32 6, %v5492_v4 }
 0x13b   : > { %3508 = vmatprep.subr.bf16.mxu1 %v4657_v52  ;;  %v1300_v52 = vmul.bf16 %v5535_v50, %v969_v29  ;;  %v4376_v57 = vcombine.high %v1355_v48, %v1360_v49  ;;  %v1370_v0 = vmul.bf16 %v5535_v50, %v1039_v60  ;;  %v1049_v9 = vld [vmem:[%s5220_s18 + $0x534] sm:$0xff]  ;;  %v840_v60 = vsub.s32 7, %v5492_v4 }
 0x13c   : > { %v4349_v17 = vcombine.high %v1325_v10, %v1330_v12  ;;  %v4351_v18 = vcombine.high %v1326_v13, %v1331_v14  ;;  %v4348_v28 = vcombine.low %v1325_v10, %v1330_v12  ;;  %v4350_v29 = vcombine.low %v1326_v13, %v1331_v14  ;;  %v1045_v10 = vld [vmem:[%s5220_s18 + $0x518] sm:$0xff] }
 0x13d   : > { %3284 = vmatpush2.bf16.msra.mxu0 %v1619_v22  ;;  %v4322_v40 = vcombine.high %v1295_v32, %v1300_v52  ;;  %v4321_v51 = vcombine.low %v1295_v32, %v1300_v52  ;;  %v1005_v22 = vld [vmem:[%s5220_s18 + $0x3f8] sm:$0xff]  ;;  %v4385_v6 = vcombine.high %v1365_v63, %v1370_v0  ;;  %v1375_v13 = vmul.bf16 %v5535_v50, %v1044_v8 }
 0x13e   : > { %3509 = vmatpush2.bf16.msra.mxu1 %v1635_v23  ;;  %4484 = vmatprep.subr.bf16.mxu0 %v5817_v37  ;;  %v1010_v23 = vld [vmem:[%s5220_s18 + $0x41c] sm:$0xff]  ;;  %v1380_v14 = vmul.bf16 %v5535_v50, %v1049_v9 }
 0x13f   : > { %2900 = vmatmul.mubr.bf16.gmra.mxu0 %v4303_v24  ;;  %4548 = vmatprep.subr.bf16.mxu1 %v5817_v37  ;;  %v1335_v24 = vmul.bf16 %v5535_v50, %v1004_v19  ;;  %v1014_v32 = vld [vmem:[%s5220_s18 + $0x438] sm:$0xff] }
 0x140   : > { %3125 = vmatmul.mubr.bf16.gmra.mxu1 %v4305_v25  ;;  %2907 = vmatprep.mubr.bf16.mxu0 %v4313_v26  ;;  %v1340_v25 = vmul.bf16 %v5535_v50, %v1009_v20  ;;  %v1336_v26 = vmul.bf16 %v5540_v55, %v1005_v22  ;;  %v1019_v52 = vld [vmem:[%s5220_s18 + $0x45c] sm:$0xff]  ;;  %v1345_v35 = vmul.bf16 %v5535_v50, %v1014_v32 }
 0x141   : > { %3132 = vmatprep.mubr.bf16.mxu1 %v4315_v27  ;;  %v1341_v27 = vmul.bf16 %v5540_v55, %v1010_v23  ;;  %v1350_v36 = vmul.bf16 %v5535_v50, %v1019_v52  ;;  %v1050_v12 = vld [vmem:[%s5220_s18 + $0x53c] sm:$0xff]  ;;  %v4394_v19 = vcombine.high %v1375_v13, %v1380_v14 }
 0x142   : > { %v4358_v30 = vcombine.high %v1335_v24, %v1340_v25  ;;  %v1054_v22 = vld [vmem:[%s5220_s18 + $0x558] sm:$0xff] }
 0x143   : > { %v4360_v31 = vcombine.high %v1336_v26, %v1341_v27  ;;  %v4367_v42 = vcombine.high %v1345_v35, %v1350_v36  ;;  %v1059_v23 = vld [vmem:[%s5220_s18 + $0x57c] sm:$0xff] }
 0x144   : > { %v1085_v8 = vld [vmem:[%s5220_s18 + $0x638] sm:$0xff] }
 0x145   : > { %v1090_v9 = vld [vmem:[%s5220_s18 + $0x65c] sm:$0xff] }
 0x147   : > { %2908 = vmatmul.mubr.bf16.gmra.mxu0 %v4312_v38  ;;  %v1346_v38 = vmul.bf16 %v5540_v55, %v1015_v33  ;;  %v1064_v33 = vld [vmem:[%s5220_s18 + $0x5a0] sm:$0xff] }
 0x148   : > { %3133 = vmatmul.mubr.bf16.gmra.mxu1 %v4314_v39  ;;  %2915 = vmatprep.mubr.bf16.mxu0 %v4322_v40  ;;  %v1351_v39 = vmul.bf16 %v5540_v55, %v1020_v34  ;;  %v4357_v40 = vcombine.low %v1335_v24, %v1340_v25  ;;  %v1055_v24 = vld [vmem:[%s5220_s18 + $0x560] sm:$0xff] }
 0x149   : > { %3140 = vmatprep.mubr.bf16.mxu1 %v4324_v41  ;;  %v4359_v41 = vcombine.low %v1336_v26, %v1341_v27  ;;  %v1060_v25 = vld [vmem:[%s5220_s18 + $0x584] sm:$0xff]  ;;  %v1385_v26 = vmul.bf16 %v5535_v50, %v1054_v22  ;;  %v1390_v27 = vmul.bf16 %v5535_v50, %v1059_v23 }
 0x14a   : > { %v4369_v43 = vcombine.high %v1346_v38, %v1351_v39  ;;  %v1069_v34 = vld [vmem:[%s5220_s18 + $0x5c4] sm:$0xff] }
 0x14b   : > { %v4403_v32 = vcombine.high %v1385_v26, %v1390_v27 }
 0x14f   : > { %2916 = vmatmul.mubr.bf16.gmra.mxu0 %v4321_v51  ;;  %v1356_v51 = vmul.bf16 %v5540_v55, %v1025_v46  ;;  %v1074_v46 = vld [vmem:[%s5220_s18 + $0x5e8] sm:$0xff] }
 0x150   : > { %3141 = vmatmul.mubr.bf16.gmra.mxu1 %v4323_v53  ;;  %2923 = vmatprep.mubr.bf16.mxu0 %v4331_v54  ;;  %v1361_v53 = vmul.bf16 %v5540_v55, %v1030_v47  ;;  %v4366_v54 = vcombine.low %v1345_v35, %v1350_v36  ;;  %v1065_v35 = vld [vmem:[%s5220_s18 + $0x5a8] sm:$0xff] }
 0x151   : > { %3148 = vmatprep.mubr.bf16.mxu1 %v4333_v56  ;;  %v4368_v56 = vcombine.low %v1346_v38, %v1351_v39  ;;  %v1070_v36 = vld [vmem:[%s5220_s18 + $0x5cc] sm:$0xff]  ;;  %v1395_v38 = vmul.bf16 %v5535_v50, %v1064_v33  ;;  %v1400_v39 = vmul.bf16 %v5535_v50, %v1069_v34 }
 0x152   : > { %v4378_v58 = vcombine.high %v1356_v51, %v1361_v53  ;;  %v1079_v47 = vld [vmem:[%s5220_s18 + $0x60c] sm:$0xff] }
 0x153   : > { %v4412_v44 = vcombine.high %v1395_v38, %v1400_v39 }
 0x157   : > { %2924 = vmatmul.mubr.bf16.gmra.mxu0 %v4330_v1  ;;  %v1366_v1 = vmul.bf16 %v5540_v55, %v1035_v61  ;;  %v4411_v61 = vcombine.low %v1395_v38, %v1400_v39 }
 0x158   : > { %3149 = vmatmul.mubr.bf16.gmra.mxu1 %v4332_v2  ;;  %2931 = vmatprep.mubr.bf16.mxu0 %v4340_v3  ;;  %v1371_v2 = vmul.bf16 %v5540_v55, %v1040_v62  ;;  %v4375_v3 = vcombine.low %v1355_v48, %v1360_v49  ;;  %v1075_v48 = vld [vmem:[%s5220_s18 + $0x5f0] sm:$0xff] }
 0x159   : > { %3156 = vmatprep.mubr.bf16.mxu1 %v4342_v5  ;;  %v4377_v5 = vcombine.low %v1356_v51, %v1361_v53  ;;  %v1080_v49 = vld [vmem:[%s5220_s18 + $0x614] sm:$0xff]  ;;  %v1405_v51 = vmul.bf16 %v5535_v50, %v1074_v46  ;;  %v1410_v53 = vmul.bf16 %v5535_v50, %v1079_v47  ;;  %v872_v46 = vld [vmem:[%s5220_s18 + $0x3c] sm:$0xff] }
 0x15a   : > { %v4387_v7 = vcombine.high %v1366_v1, %v1371_v2 }
 0x15f   : > { %2932 = vmatmul.mubr.bf16.gmra.mxu0 %v4339_v15  ;;  %v1376_v15 = vmul.bf16 %v5540_v55, %v1045_v10 }
 0x160   : > { %3157 = vmatmul.mubr.bf16.gmra.mxu1 %v4341_v16  ;;  %2939 = vmatprep.mubr.bf16.mxu0 %v4349_v17  ;;  %v1381_v16 = vmul.bf16 %v5540_v55, %v1050_v12  ;;  %v4384_v17 = vcombine.low %v1365_v63, %v1370_v0  ;;  %v4421_v63 = vcombine.high %v1405_v51, %v1410_v53  ;;  %v1084_v0 = vld [vmem:[%s5220_s18 + $0x630] sm:$0xff] }
 0x161   : > { %3164 = vmatprep.mubr.bf16.mxu1 %v4351_v18  ;;  %v4386_v18 = vcombine.low %v1366_v1, %v1371_v2 }
 0x162   : > { %v4396_v20 = vcombine.high %v1376_v15, %v1381_v16 }
 0x167   : > { %2940 = vmatmul.mubr.bf16.gmra.mxu0 %v4348_v28  ;;  %v1386_v28 = vmul.bf16 %v5540_v55, %v1055_v24 }
 0x168   : > { %3165 = vmatmul.mubr.bf16.gmra.mxu1 %v4350_v29  ;;  %2947 = vmatprep.mubr.bf16.mxu0 %v4358_v30  ;;  %v1391_v29 = vmul.bf16 %v5540_v55, %v1060_v25  ;;  %v4393_v30 = vcombine.low %v1375_v13, %v1380_v14  ;;  %v1416_v14 = vmul.bf16 %v5540_v55, %v1085_v8  ;;  %v1099_v25 = vld [vmem:[%s5220_s18 + $0x69c] sm:$0xff]  ;;  %v891_v8 = vld [vmem:[%s5220_s18 + $0xc4] sm:$0xff] }
 0x169   : > { %3172 = vmatprep.mubr.bf16.mxu1 %v4360_v31  ;;  %v4395_v31 = vcombine.low %v1376_v15, %v1381_v16 }
 0x16a   : > { %v4405_v52 = vcombine.high %v1386_v28, %v1391_v29 }
 0x16f   : > { %2948 = vmatmul.mubr.bf16.gmra.mxu0 %v4357_v40  ;;  %v1396_v40 = vmul.bf16 %v5540_v55, %v1065_v35 }
 0x170   : > { %3173 = vmatmul.mubr.bf16.gmra.mxu1 %v4359_v41  ;;  %2955 = vmatprep.mubr.bf16.mxu0 %v4367_v42  ;;  %v1401_v41 = vmul.bf16 %v5540_v55, %v1070_v36  ;;  %v4402_v42 = vcombine.low %v1385_v26, %v1390_v27 }
 0x171   : > { %3180 = vmatprep.mubr.bf16.mxu1 %v4369_v43  ;;  %v4404_v43 = vcombine.low %v1386_v28, %v1391_v29  ;;  %v1095_v28 = vld [vmem:[%s5220_s18 + $0x680] sm:$0xff] }
 0x172   : > { %v4414_v45 = vcombine.high %v1396_v40, %v1401_v41  ;;  %v4413_v62 = vcombine.low %v1396_v40, %v1401_v41  ;;  %v1100_v29 = vld [vmem:[%s5220_s18 + $0x6a4] sm:$0xff]  ;;  %v1426_v33 = vmul.bf16 %v5540_v55, %v1095_v28 }
 0x173   : > { %v1431_v34 = vmul.bf16 %v5540_v55, %v1100_v29  ;;  %v1572_v28 = vld [vmem:[%s5218_s11 + $0x448] sm:$0xff] }
 0x177   : > { %2956 = vmatmul.mubr.bf16.gmra.mxu0 %v4366_v54  ;;  %v828_v54 = vsub.s32 4, %v5492_v4 }
 0x178   : > { %3181 = vmatmul.mubr.bf16.gmra.mxu1 %v4368_v56  ;;  %2963 = vmatprep.mubr.bf16.mxu0 %v4376_v57  ;;  %v832_v56 = vsub.s32 5, %v5492_v4  ;;  %v1406_v57 = vmul.bf16 %v5540_v55, %v1075_v48  ;;  %v1415_v4 = vmul.bf16 %v5535_v50, %v1084_v0 }
 0x179   : > { %3188 = vmatprep.mubr.bf16.mxu1 %v4378_v58  ;;  %v1411_v58 = vmul.bf16 %v5540_v55, %v1080_v49  ;;  %v829_v1 = vrot.slane %v5511_v21, %v828_v54 }
 0x17a   : > { %v833_v2 = vrot.slane %v5511_v21, %v832_v56 }
 0x17b   : > { %v859_v12 = vpack.c.bf16 %v829_v1, %v829_v1 }
 0x17c   : > { %v860_v13 = vpack.c.bf16 %v833_v2, %v833_v2  ;;  %v1575_v2 = vld [vmem:[%s5218_s11 + $0x460] sm:$0xff] }
 0x17d   : > { %v1133_v22 = vpack.i.b16 %v859_v12, %v859_v12 }
 0x17e   : > { %v1140_v23 = vpack.i.b16 %v860_v13, %v860_v13  ;;  %v1573_v13 = vld [vmem:[%s5218_s11 + $0x450] sm:$0xff] }
 0x17f   : > { %2964 = vmatmul.mubr.bf16.gmra.mxu0 %v4375_v3  ;;  %v4423_v3 = vcombine.high %v1406_v57, %v1411_v58 }
 0x180   : > { %3189 = vmatmul.mubr.bf16.gmra.mxu1 %v4377_v5  ;;  %2971 = vmatprep.mubr.bf16.mxu0 %v4385_v6  ;;  %v1089_v5 = vld [vmem:[%s5220_s18 + $0x654] sm:$0xff]  ;;  %v837_v6 = vrot.slane %v5511_v21, %v836_v59  ;;  %v877_v59 = vld [vmem:[%s5220_s18 + $0x60] sm:$0xff] }
 0x181   : > { %3196 = vmatprep.mubr.bf16.mxu1 %v4387_v7  ;;  %v841_v7 = vrot.slane %v5511_v21, %v840_v60  ;;  %v1420_v10 = vmul.bf16 %v5535_v50, %v1089_v5  ;;  %v1421_v21 = vmul.bf16 %v5540_v55, %v1090_v9  ;;  %v882_v60 = vld [vmem:[%s5220_s18 + $0x84] sm:$0xff] }
 0x182   : > { %v861_v15 = vpack.c.bf16 %v837_v6, %v837_v6  ;;  %v887_v9 = vld [vmem:[%s5220_s18 + $0xa8] sm:$0xff] }
 0x183   : > { %v862_v16 = vpack.c.bf16 %v841_v7, %v841_v7  ;;  %v4432_v24 = vcombine.high %v1416_v14, %v1421_v21  ;;  %v4429_v38 = vcombine.low %v1415_v4, %v1420_v10  ;;  %v4431_v39 = vcombine.low %v1416_v14, %v1421_v21  ;;  %v886_v7 = vld [vmem:[%s5220_s18 + $0xa0] sm:$0xff]  ;;  %v1574_v14 = vld [vmem:[%s5218_s11 + $0x458] sm:$0xff] }
 0x184   : > { %v1147_v26 = vpack.i.b16 %v861_v15, %v861_v15 }
 0x185   : > { %v1154_v27 = vpack.i.b16 %v862_v16, %v862_v16 }
 0x186   : > { %v1152_v35 = vrot.slane %v1147_v26, %v5501_v11 }
 0x187   : > { %2972 = vmatmul.mubr.bf16.gmra.mxu0 %v4384_v17  ;;  %v4420_v17 = vcombine.low %v1405_v51, %v1410_v53  ;;  %v1159_v36 = vrot.slane %v1154_v27, %v5501_v11  ;;  %v4440_v53 = vcombine.low %v1426_v33, %v1431_v34  ;;  %v1571_v27 = vld [vmem:[%s5218_s11 + $0x440] sm:$0xff] }
 0x188   : > { %3197 = vmatmul.mubr.bf16.gmra.mxu1 %v4386_v18  ;;  %2979 = vmatprep.mubr.bf16.mxu0 %v4394_v19  ;;  %v4422_v18 = vcombine.low %v1406_v57, %v1411_v58  ;;  %v4430_v19 = vcombine.high %v1415_v4, %v1420_v10  ;;  %v876_v57 = vld [vmem:[%s5220_s18 + $0x58] sm:$0xff]  ;;  %v892_v10 = vld [vmem:[%s5220_s18 + $0xcc] sm:$0xff] }
 0x189   : > { %3204 = vmatprep.mubr.bf16.mxu1 %v4396_v20  ;;  %v1094_v20 = vld [vmem:[%s5220_s18 + $0x678] sm:$0xff] }
 0x18a   : > { %v881_v58 = vld [vmem:[%s5220_s18 + $0x7c] sm:$0xff] }
 0x18f   : > { %2980 = vmatmul.mubr.bf16.gmra.mxu0 %v4393_v30  ;;  %v1425_v30 = vmul.bf16 %v5535_v50, %v1094_v20 }
 0x190   : > { %3205 = vmatmul.mubr.bf16.gmra.mxu1 %v4395_v31  ;;  %2987 = vmatprep.mubr.bf16.mxu0 %v4403_v32  ;;  %v1430_v31 = vmul.bf16 %v5535_v50, %v1099_v25  ;;  %v1138_v32 = vrot.slane %v1133_v22, %v5501_v11  ;;  %v4441_v50 = vcombine.high %v1426_v33, %v1431_v34  ;;  %v896_v33 = vld [vmem:[%s5220_s18 + $0xe8] sm:$0xff] }
 0x191   : > { %3212 = vmatprep.mubr.bf16.mxu1 %v4405_v52  ;;  %v1145_v52 = vrot.slane %v1140_v23, %v5501_v11  ;;  %v1648_v23 = vpack.c.bf16 %v1574_v14, %v1573_v13  ;;  %v901_v34 = vld [vmem:[%s5220_s18 + $0x10c] sm:$0xff] }
 0x192   : > { %v4439_v40 = vcombine.high %v1425_v30, %v1430_v31  ;;  %v4438_v51 = vcombine.low %v1425_v30, %v1430_v31 }
 0x193   : > { %v5937_v41 = vcombine.low %v1138_v32, %v1145_v52 }
 0x195   : > { %v5967_v16 = vmul.bf16 %v5937_v41, %v886_v7 }
 0x197   : > { %2988 = vmatmul.mubr.bf16.gmra.mxu0 %v4402_v42  ;;  %v866_v42 = vld [vmem:[%s5220_s18 + $0x10] sm:$0xff] }
 0x198   : > { %3213 = vmatmul.mubr.bf16.gmra.mxu1 %v4404_v43  ;;  %2995 = vmatprep.mubr.bf16.mxu0 %v4412_v44  ;;  %v871_v43 = vld [vmem:[%s5220_s18 + $0x34] sm:$0xff]  ;;  %v5941_v44 = vcombine.low %v1152_v35, %v1159_v36  ;;  %v1197_v55 = vmul.bf16 %v5937_v41, %v866_v42 }
 0x199   : > { %3220 = vmatprep.mubr.bf16.mxu1 %v4414_v45  ;;  %v867_v45 = vld [vmem:[%s5220_s18 + $0x18] sm:$0xff]  ;;  %v1202_v47 = vmul.bf16 %v5937_v41, %v871_v43  ;;  %v897_v36 = vld [vmem:[%s5220_s18 + $0xf0] sm:$0xff] }
 0x19a   : > { %v1198_v48 = vmul.bf16 %v5941_v44, %v867_v45  ;;  %v1203_v49 = vmul.bf16 %v5941_v44, %v872_v46  ;;  %v1213_v0 = vmul.bf16 %v5941_v44, %v882_v60  ;;  %v5979_v22 = vmul.bf16 %v5941_v44, %v892_v10  ;;  %v1570_v42 = vld [vmem:[%s5218_s11 + $0x438] sm:$0xff] }
 0x19b   : > { %v4236_v54 = vcombine.high %v1197_v55, %v1202_v47  ;;  %v4235_v1 = vcombine.low %v1197_v55, %v1202_v47  ;;  %v5996_v45 = vmul.bf16 %v5937_v41, %v896_v33  ;;  %v5999_v46 = vmul.bf16 %v5937_v41, %v901_v34 }
 0x19c   : > { %v4238_v56 = vcombine.high %v1198_v48, %v1203_v49  ;;  %v4237_v5 = vcombine.low %v1198_v48, %v1203_v49  ;;  %v6004_v48 = vmul.bf16 %v5941_v44, %v897_v36 }
 0x19f   : > { %2996 = vmatmul.mubr.bf16.gmra.mxu0 %v4411_v61  ;;  %v1207_v61 = vmul.bf16 %v5937_v41, %v876_v57  ;;  %v1567_v57 = vld [vmem:[%s5218_s11 + $0x420] sm:$0xff] }
 0x1a0   : > { %3221 = vmatmul.mubr.bf16.gmra.mxu1 %v4413_v62  ;;  %3003 = vmatprep.mubr.bf16.mxu0 %v4421_v63  ;;  %v1212_v62 = vmul.bf16 %v5937_v41, %v881_v58  ;;  %v1208_v63 = vmul.bf16 %v5941_v44, %v877_v59  ;;  %v1568_v58 = vld [vmem:[%s5218_s11 + $0x428] sm:$0xff] }
 0x1a1   : > { %3228 = vmatprep.mubr.bf16.mxu1 %v4423_v3  ;;  %v1576_v3 = vld [vmem:[%s5218_s11 + $0x468] sm:$0xff]  ;;  %v1645_v7 = vpack.c.bf16 %v1568_v58, %v1567_v57 }
 0x1a2   : > { %v4245_v6 = vcombine.high %v1207_v61, %v1212_v62  ;;  %v4247_v4 = vcombine.high %v1208_v63, %v1213_v0  ;;  %v1649_v12 = vpack.c.bf16 %v1576_v3, %v1575_v2  ;;  %v4244_v26 = vcombine.low %v1207_v61, %v1212_v62  ;;  %v911_v2 = vld [vmem:[%s5220_s18 + $0x154] sm:$0xff]  ;;  %v927_v58 = vld [vmem:[%s5220_s18 + $0x1c8] sm:$0xff] }
 0x1a3   : > { %v4263_v61 = vcombine.high %v5996_v45, %v5999_v46  ;;  %v1242_v10 = vmul.bf16 %v5937_v41, %v911_v2 }
 0x1a7   : > { %3004 = vmatmul.mubr.bf16.gmra.mxu0 %v4420_v17  ;;  %v5970_v17 = vmul.bf16 %v5937_v41, %v891_v8 }
 0x1a8   : > { %3229 = vmatmul.mubr.bf16.gmra.mxu1 %v4422_v18  ;;  %3011 = vmatprep.mubr.bf16.mxu0 %v4430_v19  ;;  %v5973_v18 = vmul.bf16 %v5941_v44, %v887_v9 }
 0x1a9   : > { %3236 = vmatprep.mubr.bf16.mxu1 %v4432_v24  ;;  %v4254_v30 = vcombine.high %v5967_v16, %v5970_v17 }
 0x1aa   : > { %v4256_v52 = vcombine.high %v5973_v18, %v5979_v22  ;;  %v4255_v60 = vcombine.low %v5973_v18, %v5979_v22  ;;  %v4262_v22 = vcombine.low %v5996_v45, %v5999_v46 }
 0x1af   : > { %3012 = vmatmul.mubr.bf16.gmra.mxu0 %v4429_v38  ;;  %v902_v38 = vld [vmem:[%s5220_s18 + $0x114] sm:$0xff] }
 0x1b0   : > { %3237 = vmatmul.mubr.bf16.gmra.mxu1 %v4431_v39  ;;  %3019 = vmatprep.mubr.bf16.mxu0 %v4439_v40  ;;  %v1647_v39 = vpack.c.bf16 %v1572_v28, %v1571_v27  ;;  %v6007_v49 = vmul.bf16 %v5941_v44, %v902_v38 }
 0x1b1   : > { %3244 = vmatprep.mubr.bf16.mxu1 %v4441_v50  ;;  %v1569_v50 = vld [vmem:[%s5218_s11 + $0x430] sm:$0xff] }
 0x1b7   : > { %3020 = vmatmul.mubr.bf16.gmra.mxu0 %v4438_v51 }
 0x1b8   : > { %3245 = vmatmul.mubr.bf16.gmra.mxu1 %v4440_v53  ;;  %3285 = vmatprep.mubr.bf16.mxu0 %v4236_v54  ;;  %v1646_v53 = vpack.c.bf16 %v1570_v42, %v1569_v50 }
 0x1b9   : > { %3510 = vmatprep.mubr.bf16.mxu1 %v4238_v56  ;;  %v4253_v56 = vcombine.low %v5967_v16, %v5970_v17  ;;  %v1566_v16 = vld [vmem:[%s5218_s11 + $0x418] sm:$0xff] }
 0x1bf   : > { %v2837_v21 = vpop.f32.mrf.mxu0  ;;  %3286 = vmatmul.mubr.bf16.vlgmr.msra.gmra.mxu0 %v4235_v1  ;;  %v906_v1 = vld [vmem:[%s5220_s18 + $0x130] sm:$0xff] }
 0x1c0   : > { %v3062_v15 = vpop.f32.mrf.mxu1  ;;  %3511 = vmatmul.mubr.bf16.vlgmr.msra.gmra.mxu1 %v4237_v5  ;;  %4485 = vmatpush3.bf16.msra.mxu0 %v5817_v37  ;;  %v907_v5 = vld [vmem:[%s5220_s18 + $0x138] sm:$0xff] }
 0x1c1   : > { %v5975_v19 = vadd.f32 %v3062_v15, %v2837_v21  ;;  %4556 = vmatpush3.bf16.msra.mxu1 %v5817_v37  ;;  %v2839_v20 = vpop.f32.mrf.mxu0  ;;  %3293 = vmatprep.mubr.bf16.mxu0 %v4245_v6  ;;  %v4246_v37 = vcombine.low %v1208_v63, %v1213_v0  ;;  %v4265_v0 = vcombine.high %v6004_v48, %v6007_v49  ;;  %v912_v6 = vld [vmem:[%s5220_s18 + $0x15c] sm:$0xff]  ;;  %v1565_v15 = vld [vmem:[%s5218_s11 + $0x410] sm:$0xff] }
 0x1c2   : > { %v3064_v24 = vpop.f32.mrf.mxu1  ;;  %3518 = vmatprep.mubr.bf16.mxu1 %v4247_v4  ;;  %4486 = vmatprep.subr.bf16.mxu0 %v1649_v12  ;;  %v1237_v4 = vmul.bf16 %v5937_v41, %v906_v1  ;;  %v1238_v14 = vmul.bf16 %v5941_v44, %v907_v5  ;;  %v1243_v21 = vmul.bf16 %v5941_v44, %v912_v6 }
 0x1c3   : > { %v2840_v25 = vpop.f32.mrf.mxu0  ;;  %4549 = vmatprep.subr.bf16.mxu1 %v1649_v12  ;;  %v1644_v18 = vpack.c.bf16 %v1566_v16, %v1565_v15  ;;  %v4264_v24 = vcombine.low %v6004_v48, %v6007_v49  ;;  %v936_v15 = vld [vmem:[%s5220_s18 + $0x208] sm:$0xff] }
 0x1c4   : > { %v3065_v29 = vpop.f32.mrf.mxu1  ;;  %4487 = vmatpush3.bf16.msra.mxu0 %v1649_v12  ;;  %v4274_v28 = vcombine.high %v1238_v14, %v1243_v21  ;;  %v4271_v45 = vcombine.low %v1237_v4, %v1242_v10  ;;  %v941_v16 = vld [vmem:[%s5220_s18 + $0x22c] sm:$0xff] }
 0x1c5   : > { %v5985_v31 = vadd.f32 %v3065_v29, %v2840_v25  ;;  %v2842_v32 = vpop.f32.mrf.mxu0  ;;  %4557 = vmatpush3.bf16.msra.mxu1 %v1649_v12  ;;  %4488 = vmatprep.subr.bf16.mxu0 %v1648_v23  ;;  %v4272_v25 = vcombine.high %v1237_v4, %v1242_v10  ;;  %v916_v29 = vld [vmem:[%s5220_s18 + $0x178] sm:$0xff] }
 0x1c6   : > { %v3067_v35 = vpop.f32.mrf.mxu1  ;;  %4550 = vmatprep.subr.bf16.mxu1 %v1648_v23  ;;  %v917_v32 = vld [vmem:[%s5220_s18 + $0x180] sm:$0xff] }
 0x1c7   : > { %v2845_v40 = vpop.f32.mrf.mxu0  ;;  %3294 = vmatmul.mubr.bf16.gmra.mxu0 %v4244_v26  ;;  %v1247_v35 = vmul.bf16 %v5937_v41, %v916_v29 }
 0x1c8   : > { %v3070_v43 = vpop.f32.mrf.mxu1  ;;  %3519 = vmatmul.mubr.bf16.gmra.mxu1 %v4246_v37  ;;  %3301 = vmatprep.mubr.bf16.mxu0 %v4254_v30  ;;  %v921_v37 = vld [vmem:[%s5220_s18 + $0x19c] sm:$0xff] }
 0x1c9   : > { %v6001_v55 = vadd.f32 %v3070_v43, %v2845_v40  ;;  %v2847_v47 = vpop.f32.mrf.mxu0  ;;  %3526 = vmatprep.mubr.bf16.mxu1 %v4256_v52  ;;  %4489 = vmatpush3.bf16.msra.mxu0 %v1648_v23  ;;  %v922_v52 = vld [vmem:[%s5220_s18 + $0x1a4] sm:$0xff]  ;;  %v1252_v36 = vmul.bf16 %v5937_v41, %v921_v37  ;;  %v1248_v40 = vmul.bf16 %v5941_v44, %v917_v32 }
 0x1ca   : > { %v3072_v51 = vpop.f32.mrf.mxu1  ;;  %4558 = vmatpush3.bf16.msra.mxu1 %v1648_v23  ;;  %4490 = vmatprep.subr.bf16.mxu0 %v1647_v39  ;;  %v1253_v50 = vmul.bf16 %v5941_v44, %v922_v52  ;;  %v4273_v47 = vcombine.low %v1238_v14, %v1243_v21  ;;  %v1564_v32 = vld [vmem:[%s5218_s11 + $0x408] sm:$0xff] }
 0x1cb   : > { %v2848_v54 = vpop.f32.mrf.mxu0  ;;  %4551 = vmatprep.subr.bf16.mxu1 %v1647_v39  ;;  %v4281_v48 = vcombine.high %v1247_v35, %v1252_v36 }
 0x1cc   : > { %v3073_v59 = vpop.f32.mrf.mxu1  ;;  %v4282_v4 = vcombine.low %v1248_v40, %v1253_v50 }
 0x1cd   : > { %v6017_v62 = vadd.f32 %v3073_v59, %v2848_v54  ;;  %v2850_v63 = vpop.f32.mrf.mxu0  ;;  %4491 = vmatpush3.bf16.msra.mxu0 %v1647_v39  ;;  %v926_v54 = vld [vmem:[%s5220_s18 + $0x1c0] sm:$0xff]  ;;  %v932_v59 = vld [vmem:[%s5220_s18 + $0x1ec] sm:$0xff] }
 0x1ce   : > { %v3075_v3 = vpop.f32.mrf.mxu1  ;;  %4559 = vmatpush3.bf16.msra.mxu1 %v1647_v39  ;;  %4492 = vmatprep.subr.bf16.mxu0 %v1646_v53  ;;  %v1257_v63 = vmul.bf16 %v5937_v41, %v926_v54  ;;  %v1263_v5 = vmul.bf16 %v5941_v44, %v932_v59 }
 0x1cf   : > { %v2853_v8 = vpop.f32.mrf.mxu0  ;;  %3302 = vmatmul.mubr.bf16.gmra.mxu0 %v4253_v56  ;;  %4552 = vmatprep.subr.bf16.mxu1 %v1646_v53  ;;  %v931_v56 = vld [vmem:[%s5220_s18 + $0x1e4] sm:$0xff]  ;;  %v1258_v3 = vmul.bf16 %v5941_v44, %v927_v58 }
 0x1d0   : > { %v3078_v9 = vpop.f32.mrf.mxu1  ;;  %3527 = vmatmul.mubr.bf16.gmra.mxu1 %v4255_v60  ;;  %3309 = vmatprep.mubr.bf16.mxu0 %v4263_v61 }
 0x1d1   : > { %v6027_v12 = vadd.f32 %v3078_v9, %v2853_v8  ;;  %v2855_v13 = vpop.f32.mrf.mxu0  ;;  %3534 = vmatprep.mubr.bf16.mxu1 %v4265_v0  ;;  %4493 = vmatpush3.bf16.msra.mxu0 %v1646_v53  ;;  %v1262_v0 = vmul.bf16 %v5937_v41, %v931_v56  ;;  %v4280_v8 = vcombine.low %v1247_v35, %v1252_v36 }
 0x1d2   : > { %v3080_v17 = vpop.f32.mrf.mxu1  ;;  %4560 = vmatpush3.bf16.msra.mxu1 %v1646_v53  ;;  %4494 = vmatprep.subr.bf16.mxu0 %v1645_v7  ;;  %v4283_v53 = vcombine.high %v1248_v40, %v1253_v50  ;;  %v4292_v21 = vcombine.high %v1258_v3, %v1263_v5 }
 0x1d3   : > { %v2856_v20 = vpop.f32.mrf.mxu0  ;;  %4553 = vmatprep.subr.bf16.mxu1 %v1645_v7  ;;  %v4290_v10 = vcombine.high %v1257_v63, %v1262_v0  ;;  %v4289_v35 = vcombine.low %v1257_v63, %v1262_v0 }
 0x1d4   : > { %v3081_v23 = vpop.f32.mrf.mxu1 }
 0x1d5   : > { %v6037_v26 = vadd.f32 %v3081_v23, %v2856_v20  ;;  %v2858_v27 = vpop.f32.mrf.mxu0  ;;  %4495 = vmatpush3.bf16.msra.mxu0 %v1645_v7  ;;  %v942_v20 = vld [vmem:[%s5220_s18 + $0x234] sm:$0xff] }
 0x1d6   : > { %v3083_v30 = vpop.f32.mrf.mxu1  ;;  %4561 = vmatpush3.bf16.msra.mxu1 %v1645_v7  ;;  %4496 = vmatprep.subr.bf16.mxu0 %v1644_v18  ;;  %v1273_v37 = vmul.bf16 %v5941_v44, %v942_v20 }
 0x1d7   : > { %v2861_v33 = vpop.f32.mrf.mxu0  ;;  %3310 = vmatmul.mubr.bf16.gmra.mxu0 %v4262_v22  ;;  %4554 = vmatprep.subr.bf16.mxu1 %v1644_v18  ;;  %v1563_v30 = vld [vmem:[%s5218_s11 + $0x400] sm:$0xff] }
 0x1d8   : > { %v3086_v34 = vpop.f32.mrf.mxu1  ;;  %3535 = vmatmul.mubr.bf16.gmra.mxu1 %v4264_v24  ;;  %3317 = vmatprep.mubr.bf16.mxu0 %v4272_v25  ;;  %v1267_v24 = vmul.bf16 %v5937_v41, %v936_v15  ;;  %v1272_v25 = vmul.bf16 %v5937_v41, %v941_v16  ;;  %v962_v15 = vld [vmem:[%s5220_s18 + $0x2c4] sm:$0xff] }
 0x1d9   : > { %v6045_v38 = vadd.f32 %v3086_v34, %v2861_v33  ;;  %v2863_v39 = vpop.f32.mrf.mxu0  ;;  %3542 = vmatprep.mubr.bf16.mxu1 %v4274_v28  ;;  %4497 = vmatpush3.bf16.msra.mxu0 %v1644_v18  ;;  %v1643_v33 = vpack.c.bf16 %v1564_v32, %v1563_v30 }
 0x1da   : > { %v3088_v42 = vpop.f32.mrf.mxu1  ;;  %4562 = vmatpush3.bf16.msra.mxu1 %v1644_v18  ;;  %v937_v18 = vld [vmem:[%s5220_s18 + $0x210] sm:$0xff]  ;;  %v4291_v39 = vcombine.low %v1258_v3, %v1263_v5  ;;  %v4299_v40 = vcombine.high %v1267_v24, %v1272_v25 }
 0x1db   : > { %v2864_v43 = vpop.f32.mrf.mxu0  ;;  %v1268_v29 = vmul.bf16 %v5941_v44, %v937_v18  ;;  %4498 = vmatprep.subr.bf16.mxu0 %v1643_v33  ;;  %4555 = vmatprep.subr.bf16.mxu1 %v1643_v33 }
 0x1dc   : > { %v3089_v46 = vpop.f32.mrf.mxu1 }
 0x1dd   : > { %v6049_v49 = vadd.f32 %v3089_v46, %v2864_v43  ;;  %v2866_v51 = vpop.f32.mrf.mxu0  ;;  %v4301_v43 = vcombine.high %v1268_v29, %v1273_v37  ;;  %v951_v46 = vld [vmem:[%s5220_s18 + $0x274] sm:$0xff]  ;;  %4499 = vmatpush3.bf16.msra.mxu0 %v1643_v33  ;;  %v4300_v5 = vcombine.low %v1268_v29, %v1273_v37 }
 0x1de   : > { %v3091_v57 = vpop.f32.mrf.mxu1  ;;  %4563 = vmatpush3.bf16.msra.mxu1 %v1643_v33  ;;  %v952_v51 = vld [vmem:[%s5220_s18 + $0x27c] sm:$0xff] }
 0x1df   : > { %v2869_v60 = vpop.f32.mrf.mxu0  ;;  %3318 = vmatmul.mubr.bf16.gmra.mxu0 %v4271_v45  ;;  %v946_v45 = vld [vmem:[%s5220_s18 + $0x250] sm:$0xff]  ;;  %v1282_v57 = vmul.bf16 %v5937_v41, %v951_v46 }
 0x1e0   : > { %v3094_v61 = vpop.f32.mrf.mxu1  ;;  %3543 = vmatmul.mubr.bf16.gmra.mxu1 %v4273_v47  ;;  %3325 = vmatprep.mubr.bf16.mxu0 %v4281_v48  ;;  %v947_v48 = vld [vmem:[%s5220_s18 + $0x258] sm:$0xff]  ;;  %v1277_v56 = vmul.bf16 %v5937_v41, %v946_v45 }
 0x1e1   : > { %v6057_v1 = vadd.f32 %v3094_v61, %v2869_v60  ;;  %v2871_v2 = vpop.f32.mrf.mxu0  ;;  %3550 = vmatprep.mubr.bf16.mxu1 %v4283_v53  ;;  %v1278_v60 = vmul.bf16 %v5941_v44, %v947_v48  ;;  %v1283_v61 = vmul.bf16 %v5941_v44, %v952_v51 }
 0x1e2   : > { %v3096_v6 = vpop.f32.mrf.mxu1  ;;  %v4298_v2 = vcombine.low %v1267_v24, %v1272_v25  ;;  %v1293_v25 = vmul.bf16 %v5941_v44, %v962_v15  ;;  %v4307_v37 = vcombine.low %v1277_v56, %v1282_v57 }
 0x1e3   : > { %v2872_v7 = vpop.f32.mrf.mxu0  ;;  %v4308_v6 = vcombine.high %v1277_v56, %v1282_v57  ;;  %v4309_v32 = vcombine.low %v1278_v60, %v1283_v61 }
 0x1e4   : > { %v3097_v9 = vpop.f32.mrf.mxu1 }
 0x1e5   : > { %v6061_v13 = vadd.f32 %v3097_v9, %v2872_v7  ;;  %v2874_v14 = vpop.f32.mrf.mxu0  ;;  %v4310_v9 = vcombine.high %v1278_v60, %v1283_v61 }
 0x1e6   : > { %v3099_v17 = vpop.f32.mrf.mxu1 }
 0x1e7   : > { %v2877_v22 = vpop.f32.mrf.mxu0  ;;  %3326 = vmatmul.mubr.bf16.gmra.mxu0 %v4280_v8 }
 0x1e8   : > { %v3102_v23 = vpop.f32.mrf.mxu1  ;;  %3551 = vmatmul.mubr.bf16.gmra.mxu1 %v4282_v4  ;;  %3333 = vmatprep.mubr.bf16.mxu0 %v4290_v10  ;;  %v956_v4 = vld [vmem:[%s5220_s18 + $0x298] sm:$0xff] }
 0x1e9   : > { %v6069_v27 = vadd.f32 %v3102_v23, %v2877_v22  ;;  %v2879_v28 = vpop.f32.mrf.mxu0  ;;  %3558 = vmatprep.mubr.bf16.mxu1 %v4292_v21  ;;  %v961_v10 = vld [vmem:[%s5220_s18 + $0x2bc] sm:$0xff]  ;;  %v1287_v18 = vmul.bf16 %v5937_v41, %v956_v4  ;;  %v977_v4 = vld [vmem:[%s5220_s18 + $0x330] sm:$0xff] }
 0x1ea   : > { %v3104_v52 = vpop.f32.mrf.mxu1  ;;  %v957_v21 = vld [vmem:[%s5220_s18 + $0x2a0] sm:$0xff]  ;;  %v1292_v20 = vmul.bf16 %v5937_v41, %v961_v10  ;;  %v982_v10 = vld [vmem:[%s5220_s18 + $0x354] sm:$0xff] }
 0x1eb   : > { %v2880_v34 = vpop.f32.mrf.mxu0  ;;  %v1288_v24 = vmul.bf16 %v5941_v44, %v957_v21 }
 0x1ec   : > { %v3105_v36 = vpop.f32.mrf.mxu1  ;;  %v4317_v52 = vcombine.high %v1287_v18, %v1292_v20  ;;  %v4316_v60 = vcombine.low %v1287_v18, %v1292_v20  ;;  %v1308_v20 = vmul.bf16 %v5941_v44, %v977_v4 }
 0x1ed   : > { %v6075_v50 = vadd.f32 %v3105_v36, %v2880_v34  ;;  %v2882_v42 = vpop.f32.mrf.mxu0  ;;  %v966_v36 = vld [vmem:[%s5220_s18 + $0x2e0] sm:$0xff] }
 0x1ee   : > { %v3107_v47 = vpop.f32.mrf.mxu1  ;;  %v967_v42 = vld [vmem:[%s5220_s18 + $0x2e8] sm:$0xff] }
 0x1ef   : > { %v2885_v53 = vpop.f32.mrf.mxu0  ;;  %3334 = vmatmul.mubr.bf16.gmra.mxu0 %v4289_v35  ;;  %v4319_v35 = vcombine.high %v1288_v24, %v1293_v25  ;;  %v1297_v47 = vmul.bf16 %v5937_v41, %v966_v36  ;;  %v991_v36 = vld [vmem:[%s5220_s18 + $0x394] sm:$0xff] }
 0x1f0   : > { %v3110_v54 = vpop.f32.mrf.mxu1  ;;  %3559 = vmatmul.mubr.bf16.gmra.mxu1 %v4291_v39  ;;  %3341 = vmatprep.mubr.bf16.mxu0 %v4299_v40  ;;  %v971_v39 = vld [vmem:[%s5220_s18 + $0x304] sm:$0xff] }
 0x1f1   : > { %v6083_v58 = vadd.f32 %v3110_v54, %v2885_v53  ;;  %v2887_v59 = vpop.f32.mrf.mxu0  ;;  %3566 = vmatprep.mubr.bf16.mxu1 %v4301_v43  ;;  %v972_v43 = vld [vmem:[%s5220_s18 + $0x30c] sm:$0xff]  ;;  %v1302_v48 = vmul.bf16 %v5937_v41, %v971_v39  ;;  %v1298_v54 = vmul.bf16 %v5941_v44, %v967_v42  ;;  %v992_v42 = vld [vmem:[%s5220_s18 + $0x39c] sm:$0xff] }
 0x1f2   : > { %v3112_v63 = vpop.f32.mrf.mxu1  ;;  %v1303_v56 = vmul.bf16 %v5941_v44, %v972_v43 }
 0x1f3   : > { %v2888_v0 = vpop.f32.mrf.mxu0  ;;  %v4318_v63 = vcombine.low %v1288_v24, %v1293_v25 }
 0x1f4   : > { %v3113_v3 = vpop.f32.mrf.mxu1 }
 0x1f5   : > { %v6087_v7 = vadd.f32 %v3113_v3, %v2888_v0  ;;  %v2890_v8 = vpop.f32.mrf.mxu0  ;;  %v4326_v0 = vcombine.high %v1297_v47, %v1302_v48 }
 0x1f6   : > { %v3115_v14 = vpop.f32.mrf.mxu1  ;;  %v981_v8 = vld [vmem:[%s5220_s18 + $0x34c] sm:$0xff] }
 0x1f7   : > { %v2893_v16 = vpop.f32.mrf.mxu0  ;;  %3342 = vmatmul.mubr.bf16.gmra.mxu0 %v4298_v2 }
 0x1f8   : > { %v3118_v17 = vpop.f32.mrf.mxu1  ;;  %3567 = vmatmul.mubr.bf16.gmra.mxu1 %v4300_v5  ;;  %3349 = vmatprep.mubr.bf16.mxu0 %v4308_v6  ;;  %v4328_v5 = vcombine.high %v1298_v54, %v1303_v56  ;;  %v976_v6 = vld [vmem:[%s5220_s18 + $0x328] sm:$0xff] }
 0x1f9   : > { %v6095_v22 = vadd.f32 %v3118_v17, %v2893_v16  ;;  %v2895_v23 = vpop.f32.mrf.mxu0  ;;  %3574 = vmatprep.mubr.bf16.mxu1 %v4310_v9  ;;  %v1307_v15 = vmul.bf16 %v5937_v41, %v976_v6  ;;  %v1312_v16 = vmul.bf16 %v5937_v41, %v981_v8  ;;  %v996_v8 = vld [vmem:[%s5220_s18 + $0x3b8] sm:$0xff] }
 0x1fa   : > { %v3120_v28 = vpop.f32.mrf.mxu1  ;;  %v1313_v23 = vmul.bf16 %v5941_v44, %v982_v10  ;;  %v997_v10 = vld [vmem:[%s5220_s18 + $0x3c0] sm:$0xff] }
 0x1fb   : > { %v2896_v29 = vpop.f32.mrf.mxu0  ;;  %v4325_v28 = vcombine.low %v1297_v47, %v1302_v48  ;;  %v1322_v47 = vmul.bf16 %v5937_v41, %v991_v36 }
 0x1fc   : > { %v3121_v30 = vpop.f32.mrf.mxu1 }
 0x1fd   : > { %v6099_v33 = vadd.f32 %v3121_v30, %v2896_v29  ;;  %v2898_v34 = vpop.f32.mrf.mxu0  ;;  %v4335_v30 = vcombine.high %v1307_v15, %v1312_v16 }
 0x1fe   : > { %v3123_v40 = vpop.f32.mrf.mxu1  ;;  %v4337_v34 = vcombine.high %v1308_v20, %v1313_v23 }
 0x1ff   : > { %v2901_v45 = vpop.f32.mrf.mxu0  ;;  %3350 = vmatmul.mubr.bf16.gmra.mxu0 %v4307_v37  ;;  %v4327_v37 = vcombine.low %v1298_v54, %v1303_v56  ;;  %v987_v40 = vld [vmem:[%s5220_s18 + $0x378] sm:$0xff]  ;;  %v1323_v56 = vmul.bf16 %v5941_v44, %v992_v42  ;;  %v1011_v42 = vld [vmem:[%s5220_s18 + $0x424] sm:$0xff] }
 0x200   : > { %v3126_v46 = vpop.f32.mrf.mxu1  ;;  %3575 = vmatmul.mubr.bf16.gmra.mxu1 %v4309_v32  ;;  %3357 = vmatprep.mubr.bf16.mxu0 %v4317_v52  ;;  %v1318_v54 = vmul.bf16 %v5941_v44, %v987_v40  ;;  %v1006_v40 = vld [vmem:[%s5220_s18 + $0x400] sm:$0xff] }
 0x201   : > { %v6107_v51 = vadd.f32 %v3126_v46, %v2901_v45  ;;  %v2903_v53 = vpop.f32.mrf.mxu0  ;;  %3582 = vmatprep.mubr.bf16.mxu1 %v4319_v35  ;;  %v986_v35 = vld [vmem:[%s5220_s18 + $0x370] sm:$0xff] }
 0x202   : > { %v3128_v57 = vpop.f32.mrf.mxu1  ;;  %v1317_v46 = vmul.bf16 %v5937_v41, %v986_v35  ;;  %v4346_v6 = vcombine.high %v1318_v54, %v1323_v56 }
 0x203   : > { %v2904_v59 = vpop.f32.mrf.mxu0 }
 0x204   : > { %v3129_v61 = vpop.f32.mrf.mxu1 }
 0x205   : > { %v6111_v2 = vadd.f32 %v3129_v61, %v2904_v59  ;;  %v2906_v3 = vpop.f32.mrf.mxu0 }
 0x206   : > { %v3131_v9 = vpop.f32.mrf.mxu1 }
 0x207   : > { %v2909_v14 = vpop.f32.mrf.mxu0  ;;  %3358 = vmatmul.mubr.bf16.gmra.mxu0 %v4316_v60  ;;  %v4334_v60 = vcombine.low %v1307_v15, %v1312_v16  ;;  %v1001_v9 = vld [vmem:[%s5220_s18 + $0x3dc] sm:$0xff] }
 0x208   : > { %v3134_v21 = vpop.f32.mrf.mxu1  ;;  %3583 = vmatmul.mubr.bf16.gmra.mxu1 %v4318_v63  ;;  %3365 = vmatprep.mubr.bf16.mxu0 %v4326_v0  ;;  %v4336_v63 = vcombine.low %v1308_v20, %v1313_v23  ;;  %v4344_v0 = vcombine.high %v1317_v46, %v1322_v47  ;;  %v1332_v15 = vmul.bf16 %v5937_v41, %v1001_v9 }
 0x209   : > { %v6119_v17 = vadd.f32 %v3134_v21, %v2909_v14  ;;  %v2911_v18 = vpop.f32.mrf.mxu0  ;;  %3590 = vmatprep.mubr.bf16.mxu1 %v4328_v5  ;;  %v1002_v14 = vld [vmem:[%s5220_s18 + $0x3e4] sm:$0xff]  ;;  %v1328_v23 = vmul.bf16 %v5941_v44, %v997_v10 }
 0x20a   : > { %v3136_v24 = vpop.f32.mrf.mxu1 }
 0x20b   : > { %v2912_v25 = vpop.f32.mrf.mxu0  ;;  %v1327_v24 = vmul.bf16 %v5937_v41, %v996_v8 }
 0x20c   : > { %v3137_v29 = vpop.f32.mrf.mxu1 }
 0x20d   : > { %v6123_v32 = vadd.f32 %v3137_v29, %v2912_v25  ;;  %v2914_v52 = vpop.f32.mrf.mxu0  ;;  %v1333_v25 = vmul.bf16 %v5941_v44, %v1002_v14 }
 0x20e   : > { %v3139_v39 = vpop.f32.mrf.mxu1  ;;  %v4345_v52 = vcombine.low %v1318_v54, %v1323_v56 }
 0x20f   : > { %v2917_v43 = vpop.f32.mrf.mxu0  ;;  %3366 = vmatmul.mubr.bf16.gmra.mxu0 %v4325_v28  ;;  %v4355_v39 = vcombine.high %v1328_v23, %v1333_v25  ;;  %v4354_v8 = vcombine.low %v1328_v23, %v1333_v25 }
 0x210   : > { %v3142_v45 = vpop.f32.mrf.mxu1  ;;  %3591 = vmatmul.mubr.bf16.gmra.mxu1 %v4327_v37  ;;  %3373 = vmatprep.mubr.bf16.mxu0 %v4335_v30  ;;  %v4343_v37 = vcombine.low %v1317_v46, %v1322_v47  ;;  %v1342_v46 = vmul.bf16 %v5937_v41, %v1011_v42 }
 0x211   : > { %v6131_v48 = vadd.f32 %v3142_v45, %v2917_v43  ;;  %v2919_v53 = vpop.f32.mrf.mxu0  ;;  %3598 = vmatprep.mubr.bf16.mxu1 %v4337_v34  ;;  %v4353_v34 = vcombine.high %v1327_v24, %v1332_v15  ;;  %v1007_v45 = vld [vmem:[%s5220_s18 + $0x408] sm:$0xff] }
 0x212   : > { %v3144_v57 = vpop.f32.mrf.mxu1  ;;  %v1012_v53 = vld [vmem:[%s5220_s18 + $0x42c] sm:$0xff]  ;;  %v1338_v56 = vmul.bf16 %v5941_v44, %v1007_v45 }
 0x213   : > { %v2920_v59 = vpop.f32.mrf.mxu0 }
 0x214   : > { %v3145_v61 = vpop.f32.mrf.mxu1 }
 0x215   : > { %v6135_v3 = vadd.f32 %v3145_v61, %v2920_v59  ;;  %v2922_v5 = vpop.f32.mrf.mxu0  ;;  %v1343_v61 = vmul.bf16 %v5941_v44, %v1012_v53 }
 0x216   : > { %v3147_v4 = vpop.f32.mrf.mxu1  ;;  %v4352_v5 = vcombine.low %v1327_v24, %v1332_v15 }
 0x217   : > { %v2925_v21 = vpop.f32.mrf.mxu0  ;;  %3374 = vmatmul.mubr.bf16.gmra.mxu0 %v4334_v60  ;;  %v1337_v60 = vmul.bf16 %v5937_v41, %v1006_v40  ;;  %v4364_v14 = vcombine.high %v1338_v56, %v1343_v61 }
 0x218   : > { %v3150_v18 = vpop.f32.mrf.mxu1  ;;  %3599 = vmatmul.mubr.bf16.gmra.mxu1 %v4336_v63  ;;  %3381 = vmatprep.mubr.bf16.mxu0 %v4344_v0 }
 0x219   : > { %v6143_v16 = vadd.f32 %v3150_v18, %v2925_v21  ;;  %v2927_v20 = vpop.f32.mrf.mxu0  ;;  %3606 = vmatprep.mubr.bf16.mxu1 %v4346_v6  ;;  %v4362_v9 = vcombine.high %v1337_v60, %v1342_v46  ;;  %v1016_v21 = vld [vmem:[%s5220_s18 + $0x448] sm:$0xff]  ;;  %v4361_v40 = vcombine.low %v1337_v60, %v1342_v46 }
 0x21a   : > { %v3152_v28 = vpop.f32.mrf.mxu1  ;;  %v1021_v18 = vld [vmem:[%s5220_s18 + $0x46c] sm:$0xff] }
 0x21b   : > { %v2928_v29 = vpop.f32.mrf.mxu0  ;;  %v1017_v28 = vld [vmem:[%s5220_s18 + $0x450] sm:$0xff]  ;;  %v1352_v24 = vmul.bf16 %v5937_v41, %v1021_v18 }
 0x21c   : > { %v3153_v30 = vpop.f32.mrf.mxu1  ;;  %v1348_v25 = vmul.bf16 %v5941_v44, %v1017_v28 }
 0x21d   : > { %v6147_v35 = vadd.f32 %v3153_v30, %v2928_v29  ;;  %v2930_v36 = vpop.f32.mrf.mxu0  ;;  %v1022_v29 = vld [vmem:[%s5220_s18 + $0x474] sm:$0xff] }
 0x21e   : > { %v3155_v43 = vpop.f32.mrf.mxu1 }
 0x21f   : > { %v2933_v57 = vpop.f32.mrf.mxu0  ;;  %3382 = vmatmul.mubr.bf16.gmra.mxu0 %v4343_v37  ;;  %v4363_v43 = vcombine.low %v1338_v56, %v1343_v61 }
 0x220   : > { %v3158_v59 = vpop.f32.mrf.mxu1  ;;  %3607 = vmatmul.mubr.bf16.gmra.mxu1 %v4345_v52  ;;  %3389 = vmatprep.mubr.bf16.mxu0 %v4353_v34  ;;  %v1347_v52 = vmul.bf16 %v5937_v41, %v1016_v21  ;;  %v1353_v34 = vmul.bf16 %v5941_v44, %v1022_v29  ;;  %v795_v21 = vld [vmem:[%s5213_s7 + $0x8] sm:$0x1] }
 0x221   : > { %v6155_v47 = vadd.f32 %v3158_v59, %v2933_v57  ;;  %v2935_v54 = vpop.f32.mrf.mxu0  ;;  %3614 = vmatprep.mubr.bf16.mxu1 %v4355_v39 }
 0x222   : > { %v3160_v63 = vpop.f32.mrf.mxu1  ;;  %v4371_v45 = vcombine.high %v1347_v52, %v1352_v24  ;;  %v4373_v59 = vcombine.high %v1348_v25, %v1353_v34  ;;  %v1026_v54 = vld [vmem:[%s5220_s18 + $0x490] sm:$0xff]  ;;  %v4370_v28 = vcombine.low %v1347_v52, %v1352_v24 }
 0x223   : > { %v2936_v0 = vpop.f32.mrf.mxu0  ;;  %v1031_v63 = vld [vmem:[%s5220_s18 + $0x4b4] sm:$0xff]  ;;  %v1357_v60 = vmul.bf16 %v5937_v41, %v1026_v54 }
 0x224   : > { %v3161_v6 = vpop.f32.mrf.mxu1  ;;  %v1362_v46 = vmul.bf16 %v5937_v41, %v1031_v63 }
 0x225   : > { %v6159_v4 = vadd.f32 %v3161_v6, %v2936_v0  ;;  %v2938_v10 = vpop.f32.mrf.mxu0  ;;  %v1032_v6 = vld [vmem:[%s5220_s18 + $0x4bc] sm:$0xff] }
 0x226   : > { %v3163_v20 = vpop.f32.mrf.mxu1 }
 0x227   : > { %v2941_v37 = vpop.f32.mrf.mxu0  ;;  %3390 = vmatmul.mubr.bf16.gmra.mxu0 %v4352_v5  ;;  %v1027_v5 = vld [vmem:[%s5220_s18 + $0x498] sm:$0xff] }
 0x228   : > { %v3166_v30 = vpop.f32.mrf.mxu1  ;;  %3615 = vmatmul.mubr.bf16.gmra.mxu1 %v4354_v8  ;;  %3397 = vmatprep.mubr.bf16.mxu0 %v4362_v9  ;;  %v1358_v10 = vmul.bf16 %v5941_v44, %v1027_v5 }
 0x229   : > { %v6167_v15 = vadd.f32 %v3166_v30, %v2941_v37  ;;  %v2943_v23 = vpop.f32.mrf.mxu0  ;;  %3622 = vmatprep.mubr.bf16.mxu1 %v4364_v14  ;;  %v1363_v14 = vmul.bf16 %v5941_v44, %v1032_v6  ;;  %v4372_v37 = vcombine.low %v1348_v25, %v1353_v34  ;;  %v4380_v30 = vcombine.high %v1357_v60, %v1362_v46 }
 0x22a   : > { %v3168_v36 = vpop.f32.mrf.mxu1  ;;  %v4225_v23 = vmul.f32 -1.442695, %v795_v21 }
 0x22b   : > { %v2944_v39 = vpop.f32.mrf.mxu0  ;;  %v4381_v21 = vcombine.low %v1358_v10, %v1363_v14 }
 0x22c   : > { %v3169_v42 = vpop.f32.mrf.mxu1  ;;  %4612 = vpow2.f32 %v4225_v23 }
 0x22d   : > { %v6171_v53 = vadd.f32 %v3169_v42, %v2944_v39  ;;  %v2946_v57 = vpop.f32.mrf.mxu0  ;;  %v1036_v42 = vld [vmem:[%s5220_s18 + $0x4d8] sm:$0xff] }
 0x22e   : > { %v3171_v0 = vpop.f32.mrf.mxu1  ;;  %v1037_v57 = vld [vmem:[%s5220_s18 + $0x4e0] sm:$0xff]  ;;  %v1367_v52 = vmul.bf16 %v5937_v41, %v1036_v42 }
 0x22f   : > { %v2949_v8 = vpop.f32.mrf.mxu0  ;;  %3398 = vmatmul.mubr.bf16.gmra.mxu0 %v4361_v40  ;;  %v4382_v40 = vcombine.high %v1358_v10, %v1363_v14  ;;  %v1368_v0 = vmul.bf16 %v5941_v44, %v1037_v57 }
 0x230   : > { %v3174_v9 = vpop.f32.mrf.mxu1  ;;  %3623 = vmatmul.mubr.bf16.gmra.mxu1 %v4363_v43  ;;  %3405 = vmatprep.mubr.bf16.mxu0 %v4371_v45  ;;  %v1041_v43 = vld [vmem:[%s5220_s18 + $0x4fc] sm:$0xff] }
 0x231   : > { %v6179_v56 = vadd.f32 %v3174_v9, %v2949_v8  ;;  %v2951_v61 = vpop.f32.mrf.mxu0  ;;  %3630 = vmatprep.mubr.bf16.mxu1 %v4373_v59  ;;  %v1042_v59 = vld [vmem:[%s5220_s18 + $0x504] sm:$0xff]  ;;  %v1372_v24 = vmul.bf16 %v5937_v41, %v1041_v43  ;;  %v4379_v9 = vcombine.low %v1357_v60, %v1362_v46 }
 0x232   : > { %v3176_v18 = vpop.f32.mrf.mxu1  ;;  %v1373_v5 = vmul.bf16 %v5941_v44, %v1042_v59 }
 0x233   : > { %v2952_v20 = vpop.f32.mrf.mxu0  ;;  %v4389_v18 = vcombine.high %v1367_v52, %v1372_v24 }
 0x234   : > { %v3177_v29 = vpop.f32.mrf.mxu1 }
 0x235   : > { %v6184_v36 = vadd.f32 %v3177_v29, %v2952_v20  ;;  %v2954_v39 = vpop.f32.mrf.mxu0  ;;  %v4391_v29 = vcombine.high %v1368_v0, %v1373_v5 }
 0x236   : > { %v3179_v45 = vpop.f32.mrf.mxu1  ;;  %v1047_v39 = vld [vmem:[%s5220_s18 + $0x528] sm:$0xff] }
 0x237   : > { %v2957_v54 = vpop.f32.mrf.mxu0  ;;  %3406 = vmatmul.mubr.bf16.gmra.mxu0 %v4370_v28  ;;  %v1378_v14 = vmul.bf16 %v5941_v44, %v1047_v39 }
 0x238   : > { %v3182_v63 = vpop.f32.mrf.mxu1  ;;  %3631 = vmatmul.mubr.bf16.gmra.mxu1 %v4372_v37  ;;  %3413 = vmatprep.mubr.bf16.mxu0 %v4380_v30  ;;  %v1046_v37 = vld [vmem:[%s5220_s18 + $0x520] sm:$0xff] }
 0x239   : > { %v6192_v25 = vadd.f32 %v3182_v63, %v2957_v54  ;;  %v2959_v34 = vpop.f32.mrf.mxu0  ;;  %3638 = vmatprep.mubr.bf16.mxu1 %v4382_v40  ;;  %v1051_v30 = vld [vmem:[%s5220_s18 + $0x544] sm:$0xff]  ;;  %v1052_v40 = vld [vmem:[%s5220_s18 + $0x54c] sm:$0xff]  ;;  %v1377_v45 = vmul.bf16 %v5937_v41, %v1046_v37  ;;  %v4388_v63 = vcombine.low %v1367_v52, %v1372_v24 }
 0x23a   : > { %v3184_v6 = vpop.f32.mrf.mxu1  ;;  %v1382_v60 = vmul.bf16 %v5937_v41, %v1051_v30  ;;  %v1383_v57 = vmul.bf16 %v5941_v44, %v1052_v40  ;;  %v1061_v37 = vld [vmem:[%s5220_s18 + $0x58c] sm:$0xff] }
 0x23b   : > { %v2960_v8 = vpop.f32.mrf.mxu0  ;;  %v4390_v6 = vcombine.low %v1368_v0, %v1373_v5  ;;  %v1057_v30 = vld [vmem:[%s5220_s18 + $0x570] sm:$0xff]  ;;  %v1392_v24 = vmul.bf16 %v5937_v41, %v1061_v37 }
 0x23c   : > { %v3185_v61 = vpop.f32.mrf.mxu1  ;;  %v1066_v37 = vld [vmem:[%s5220_s18 + $0x5b0] sm:$0xff] }
 0x23d   : > { %v6196_v20 = vadd.f32 %v3185_v61, %v2960_v8  ;;  %v2962_v28 = vpop.f32.mrf.mxu0  ;;  %v4398_v8 = vcombine.high %v1377_v45, %v1382_v60 }
 0x23e   : > { %v3187_v23 = vpop.f32.mrf.mxu1  ;;  %v1056_v28 = vld [vmem:[%s5220_s18 + $0x568] sm:$0xff] }
 0x23f   : > { %v2965_v42 = vpop.f32.mrf.mxu0  ;;  %3414 = vmatmul.mubr.bf16.gmra.mxu0 %v4379_v9  ;;  %v4613_v9 = vpop.eup %4612  ;;  %v1062_v23 = vld [vmem:[%s5220_s18 + $0x594] sm:$0xff]  ;;  %v1387_v52 = vmul.bf16 %v5937_v41, %v1056_v28 }
 0x240   : > { %v3190_v43 = vpop.f32.mrf.mxu1  ;;  %3639 = vmatmul.mubr.bf16.gmra.mxu1 %v4381_v21  ;;  %3421 = vmatprep.mubr.bf16.mxu0 %v4389_v18  ;;  %v4400_v18 = vcombine.high %v1378_v14, %v1383_v57  ;;  %v803_v0 = vadd.f32 1.0, %v4613_v9 }
 0x241   : > { %v6204_v46 = vadd.f32 %v3190_v43, %v2965_v42  ;;  %v2967_v10 = vpop.f32.mrf.mxu0  ;;  %3646 = vmatprep.mubr.bf16.mxu1 %v4391_v29  ;;  %v1388_v43 = vmul.bf16 %v5941_v44, %v1057_v30 }
 0x242   : > { %v3192_v59 = vpop.f32.mrf.mxu1  ;;  %v1393_v10 = vmul.bf16 %v5941_v44, %v1062_v23  ;;  %4614 = vrcp.f32 %v803_v0 }
 0x243   : > { %v2968_v54 = vpop.f32.mrf.mxu0 }
 0x244   : > { %v3193_v34 = vpop.f32.mrf.mxu1  ;;  %v4409_v28 = vcombine.high %v1388_v43, %v1393_v10 }
 0x245   : > { %v6208_v61 = vadd.f32 %v3193_v34, %v2968_v54  ;;  %v2970_v21 = vpop.f32.mrf.mxu0 }
 0x246   : > { %v3195_v29 = vpop.f32.mrf.mxu1 }
 0x247   : > { %v2973_v39 = vpop.f32.mrf.mxu0  ;;  %3422 = vmatmul.mubr.bf16.gmra.mxu0 %v4388_v63  ;;  %v4397_v63 = vcombine.low %v1377_v45, %v1382_v60  ;;  %v1071_v29 = vld [vmem:[%s5220_s18 + $0x5d4] sm:$0xff]  ;;  %v1397_v45 = vmul.bf16 %v5937_v41, %v1066_v37 }
 0x248   : > { %v3198_v42 = vpop.f32.mrf.mxu1  ;;  %3647 = vmatmul.mubr.bf16.gmra.mxu1 %v4390_v6  ;;  %3429 = vmatprep.mubr.bf16.mxu0 %v4398_v8  ;;  %v4399_v6 = vcombine.low %v1378_v14, %v1383_v57  ;;  %v4407_v8 = vcombine.high %v1387_v52, %v1392_v24  ;;  %v1402_v60 = vmul.bf16 %v5937_v41, %v1071_v29 }
 0x249   : > { %v6216_v5 = vadd.f32 %v3198_v42, %v2973_v39  ;;  %v2975_v40 = vpop.f32.mrf.mxu0  ;;  %3654 = vmatprep.mubr.bf16.mxu1 %v4400_v18  ;;  %v1067_v39 = vld [vmem:[%s5220_s18 + $0x5b8] sm:$0xff] }
 0x24a   : > { %v3200_v59 = vpop.f32.mrf.mxu1  ;;  %v1072_v42 = vld [vmem:[%s5220_s18 + $0x5dc] sm:$0xff]  ;;  %v1398_v23 = vmul.bf16 %v5941_v44, %v1067_v39 }
 0x24b   : > { %6949 = vst [vmem:[#allocation3_spill] sm:$0xff] %v6216_v5  ;;  %v2976_v54 = vpop.f32.mrf.mxu0  ;;  %v1403_v0 = vmul.bf16 %v5941_v44, %v1072_v42 }
 0x24c   : > { %v3201_v34 = vpop.f32.mrf.mxu1 }
 0x24d   : > { %v6220_v9 = vadd.f32 %v3201_v34, %v2976_v54  ;;  %v2978_v21 = vpop.f32.mrf.mxu0  ;;  %v4418_v29 = vcombine.high %v1398_v23, %v1403_v0 }
 0x24e   : > { %v3203_v18 = vpop.f32.mrf.mxu1 }
 0x24f   : > { %6950 = vst [vmem:[#allocation4_spill] sm:$0xff] %v6220_v9  ;;  %v2981_v30 = vpop.f32.mrf.mxu0  ;;  %3430 = vmatmul.mubr.bf16.gmra.mxu0 %v4397_v63  ;;  %v4406_v63 = vcombine.low %v1387_v52, %v1392_v24  ;;  %v1076_v18 = vld [vmem:[%s5220_s18 + $0x5f8] sm:$0xff]  ;;  %v4615_v24 = vpop.eup %4614 }
 0x250   : > { %v3206_v40 = vpop.f32.mrf.mxu1  ;;  %3655 = vmatmul.mubr.bf16.gmra.mxu1 %v4399_v6  ;;  %3437 = vmatprep.mubr.bf16.mxu0 %v4407_v8  ;;  %v4408_v6 = vcombine.low %v1388_v43, %v1393_v10  ;;  %v4416_v8 = vcombine.high %v1397_v45, %v1402_v60  ;;  %v1407_v42 = vmul.bf16 %v5937_v41, %v1076_v18 }
 0x251   : > { %v6228_v14 = vadd.f32 %v3206_v40, %v2981_v30  ;;  %v2983_v57 = vpop.f32.mrf.mxu0  ;;  %3662 = vmatprep.mubr.bf16.mxu1 %v4409_v28  ;;  %v1081_v30 = vld [vmem:[%s5220_s18 + $0x61c] sm:$0xff]  ;;  %v1082_v28 = vld [vmem:[%s5220_s18 + $0x624] sm:$0xff] }
 0x252   : > { %v3208_v59 = vpop.f32.mrf.mxu1  ;;  %v1077_v57 = vld [vmem:[%s5220_s18 + $0x600] sm:$0xff]  ;;  %v1412_v52 = vmul.bf16 %v5937_v41, %v1081_v30  ;;  %v845_v30 = vrot.slane %v4615_v24, %v5501_v11 }
 0x253   : > { %6951 = vst [vmem:[#allocation5_spill] sm:$0xff] %v6228_v14  ;;  %v2984_v54 = vpop.f32.mrf.mxu0  ;;  %v1408_v59 = vmul.bf16 %v5941_v44, %v1077_v57  ;;  %v1092_v57 = vld [vmem:[%s5220_s18 + $0x66c] sm:$0xff] }
 0x254   : > { %v3209_v34 = vpop.f32.mrf.mxu1  ;;  %v4425_v18 = vcombine.high %v1407_v42, %v1412_v52 }
 0x255   : > { %v6232_v21 = vadd.f32 %v3209_v34, %v2984_v54  ;;  %v2986_v37 = vpop.f32.mrf.mxu0  ;;  %v1413_v54 = vmul.bf16 %v5941_v44, %v1082_v28 }
 0x256   : > { %v3211_v40 = vpop.f32.mrf.mxu1  ;;  %v4417_v37 = vcombine.low %v1398_v23, %v1403_v0  ;;  %v863_v23 = vpack.c.bf16 %v845_v30, %v845_v30 }
 0x257   : > { %6952 = vst [vmem:[#allocation6_spill] sm:$0xff] %v6232_v21  ;;  %v2989_v14 = vpop.f32.mrf.mxu0  ;;  %3438 = vmatmul.mubr.bf16.gmra.mxu0 %v4406_v63  ;;  %v1087_v21 = vld [vmem:[%s5220_s18 + $0x648] sm:$0xff] }
 0x258   : > { %v3214_v39 = vpop.f32.mrf.mxu1  ;;  %3663 = vmatmul.mubr.bf16.gmra.mxu1 %v4408_v6  ;;  %3445 = vmatprep.mubr.bf16.mxu0 %v4416_v8  ;;  %v4415_v6 = vcombine.low %v1397_v45, %v1402_v60 }
 0x259   : > { %v6240_v43 = vadd.f32 %v3214_v39, %v2989_v14  ;;  %v2991_v10 = vpop.f32.mrf.mxu0  ;;  %3670 = vmatprep.mubr.bf16.mxu1 %v4418_v29  ;;  %v4427_v39 = vcombine.high %v1408_v59, %v1413_v54  ;;  %v1091_v29 = vld [vmem:[%s5220_s18 + $0x664] sm:$0xff] }
 0x25a   : > { %v3216_v63 = vpop.f32.mrf.mxu1  ;;  %v1086_v10 = vld [vmem:[%s5220_s18 + $0x640] sm:$0xff]  ;;  %v1422_v60 = vmul.bf16 %v5937_v41, %v1091_v29 }
 0x25b   : > { %6953 = vst [vmem:[#allocation7_spill] sm:$0xff] %v6240_v43  ;;  %v2992_v34 = vpop.f32.mrf.mxu0  ;;  %v1417_v45 = vmul.bf16 %v5937_v41, %v1086_v10  ;;  %v1423_v63 = vmul.bf16 %v5941_v44, %v1092_v57  ;;  %v1161_v10 = vpack.i.b16 %v863_v23, %v863_v23 }
 0x25c   : > { %v3217_v8 = vpop.f32.mrf.mxu1 }
 0x25d   : > { %v6245_v40 = vadd.f32 %v3217_v8, %v2992_v34  ;;  %v2994_v14 = vpop.f32.mrf.mxu0  ;;  %v4424_v8 = vcombine.low %v1407_v42, %v1412_v52 }
 0x25e   : > { %v3219_v43 = vpop.f32.mrf.mxu1  ;;  %v4434_v14 = vcombine.high %v1417_v45, %v1422_v60 }
 0x25f   : > { %6954 = vst [vmem:[#allocation8_spill] sm:$0xff] %v6245_v40  ;;  %v2997_v9 = vpop.f32.mrf.mxu0  ;;  %3446 = vmatmul.mubr.bf16.gmra.mxu0 %v4415_v6  ;;  %v1418_v43 = vmul.bf16 %v5941_v44, %v1087_v21  ;;  %v1097_v40 = vld [vmem:[%s5220_s18 + $0x690] sm:$0xff] }
 0x260   : > { %v3222_v28 = vpop.f32.mrf.mxu1  ;;  %3671 = vmatmul.mubr.bf16.gmra.mxu1 %v4417_v37  ;;  %3453 = vmatprep.mubr.bf16.mxu0 %v4425_v18  ;;  %v4426_v18 = vcombine.low %v1408_v59, %v1413_v54  ;;  %v1166_v59 = vrot.slane %v1161_v10, %v5501_v11  ;;  %v1428_v23 = vmul.bf16 %v5941_v44, %v1097_v40  ;;  %v993_v40 = vld [vmem:[%s5220_s18 + $0x3a4] sm:$0xf] }
 0x261   : > { %v6253_v0 = vadd.f32 %v3222_v28, %v2997_v9  ;;  %v2999_v24 = vpop.f32.mrf.mxu0  ;;  %3678 = vmatprep.mubr.bf16.mxu1 %v4427_v39  ;;  %v4436_v29 = vcombine.high %v1418_v43, %v1423_v63  ;;  %v1096_v28 = vld [vmem:[%s5220_s18 + $0x688] sm:$0xff] }
 0x262   : > { %v3224_v34 = vpop.f32.mrf.mxu1  ;;  %v1101_v24 = vld [vmem:[%s5220_s18 + $0x6ac] sm:$0xff]  ;;  %v1427_v42 = vmul.bf16 %v5937_v41, %v1096_v28  ;;  %v868_v28 = vld [vmem:[%s5220_s18 + $0x20] sm:$0xf] }
 0x263   : > { %6955 = vst [vmem:[#allocation9_spill] sm:$0xff] %v6253_v0  ;;  %v3000_v6 = vpop.f32.mrf.mxu0  ;;  %v1102_v0 = vld [vmem:[%s5220_s18 + $0x6b4] sm:$0xff]  ;;  %v1432_v52 = vmul.bf16 %v5937_v41, %v1101_v24 }
 0x264   : > { %v3225_v37 = vpop.f32.mrf.mxu1  ;;  %v1433_v34 = vmul.bf16 %v5941_v44, %v1102_v0 }
 0x265   : > { %v6257_v30 = vadd.f32 %v3225_v37, %v3000_v6  ;;  %v3002_v9 = vpop.f32.mrf.mxu0  ;;  %v4433_v37 = vcombine.low %v1417_v45, %v1422_v60  ;;  %v4443_v41 = vcombine.high %v1427_v42, %v1432_v52 }
 0x266   : > { %v3227_v39 = vpop.f32.mrf.mxu1  ;;  %v6270_v9 = vcombine.low %v1166_v59, %v1166_v59  ;;  %v4445_v10 = vcombine.high %v1428_v23, %v1433_v34 }
 0x267   : > { %v3005_v21 = vpop.f32.mrf.mxu0  ;;  %3454 = vmatmul.mubr.bf16.gmra.mxu0 %v4424_v8  ;;  %v988_v39 = vld [vmem:[%s5220_s18 + $0x380] sm:$0xf] }
 0x268   : > { %v3230_v5 = vpop.f32.mrf.mxu1  ;;  %3679 = vmatmul.mubr.bf16.gmra.mxu1 %v4426_v18  ;;  %3461 = vmatprep.mubr.bf16.mxu0 %v4434_v14  ;;  %v4435_v14 = vcombine.low %v1418_v43, %v1423_v63  ;;  %v1199_v45 = vmul.bf16 %v6270_v9, %v868_v28  ;;  %v1319_v63 = vmul.bf16 %v6270_v9, %v988_v39  ;;  %v998_v28 = vld [vmem:[%s5220_s18 + $0x3c8] sm:$0xf]  ;;  %v888_v39 = vld [vmem:[%s5220_s18 + $0xb0] sm:$0xf] }
 0x269   : > { %v6266_v54 = vadd.f32 %v3230_v5, %v3005_v21  ;;  %v3007_v57 = vpop.f32.mrf.mxu0  ;;  %3686 = vmatprep.mubr.bf16.mxu1 %v4436_v29  ;;  %v873_v29 = vld [vmem:[%s5220_s18 + $0x44] sm:$0xf]  ;;  %v1324_v59 = vmul.bf16 %v6270_v9, %v993_v40  ;;  %v1008_v40 = vld [vmem:[%s5220_s18 + $0x410] sm:$0xf] }
 0x26a   : > { %v3232_v6 = vpop.f32.mrf.mxu1  ;;  %v1204_v60 = vmul.bf16 %v6270_v9, %v873_v29 }
 0x26b   : > { %v3008_v8 = vpop.f32.mrf.mxu0 }
 0x26c   : > { %v3233_v18 = vpop.f32.mrf.mxu1 }
 0x26d   : > { %v6272_v11 = vadd.f32 %v3233_v18, %v3008_v8  ;;  %v3010_v5 = vpop.f32.mrf.mxu0  ;;  %v4442_v8 = vcombine.low %v1427_v42, %v1432_v52  ;;  %v4444_v18 = vcombine.low %v1428_v23, %v1433_v34  ;;  %v1329_v23 = vmul.bf16 %v6270_v9, %v998_v28 }
 0x26e   : > { %v3235_v24 = vpop.f32.mrf.mxu1  ;;  %v883_v5 = vld [vmem:[%s5220_s18 + $0x8c] sm:$0xf] }
 0x26f   : > { %v3013_v21 = vpop.f32.mrf.mxu0  ;;  %3462 = vmatmul.mubr.bf16.gmra.mxu0 %v4433_v37  ;;  %v4347_v24 = vcombine.low %v1319_v63, %v1324_v59  ;;  %v1214_v52 = vmul.bf16 %v6270_v9, %v883_v5  ;;  %v898_v5 = vld [vmem:[%s5220_s18 + $0xf8] sm:$0xf] }
 0x270   : > { %v3238_v44 = vpop.f32.mrf.mxu1  ;;  %3687 = vmatmul.mubr.bf16.gmra.mxu1 %v4435_v14  ;;  %3469 = vmatprep.mubr.bf16.mxu0 %v4443_v41  ;;  %v4239_v14 = vcombine.low %v1199_v45, %v1204_v60  ;;  %v878_v41 = vld [vmem:[%s5220_s18 + $0x68] sm:$0xf]  ;;  %v1219_v60 = vmul.bf16 %v6270_v9, %v888_v39  ;;  %v903_v39 = vld [vmem:[%s5220_s18 + $0x11c] sm:$0xf] }
 0x271   : > { %v6280_v0 = vadd.f32 %v3238_v44, %v3013_v21  ;;  %v3015_v43 = vpop.f32.mrf.mxu0  ;;  %3694 = vmatprep.mubr.bf16.mxu1 %v4445_v10  ;;  %v1003_v21 = vld [vmem:[%s5220_s18 + $0x3ec] sm:$0xf]  ;;  %v893_v44 = vld [vmem:[%s5220_s18 + $0xd4] sm:$0xf]  ;;  %v1209_v42 = vmul.bf16 %v6270_v9, %v878_v41 }
 0x272   : > { %v3240_v57 = vpop.f32.mrf.mxu1  ;;  %v1334_v45 = vmul.bf16 %v6270_v9, %v1003_v21  ;;  %v1224_v63 = vmul.bf16 %v6270_v9, %v893_v44  ;;  %v1023_v44 = vld [vmem:[%s5220_s18 + $0x47c] sm:$0xf] }
 0x273   : > { %6956 = vst [vmem:[#allocation10_spill] sm:$0xff] %v6280_v0  ;;  %v3016_v6 = vpop.f32.mrf.mxu0  ;;  %v1013_v57 = vld [vmem:[%s5220_s18 + $0x434] sm:$0xf]  ;;  %v4248_v41 = vcombine.low %v1209_v42, %v1214_v52  ;;  %v1229_v42 = vmul.bf16 %v6270_v9, %v898_v5  ;;  %v1234_v52 = vmul.bf16 %v6270_v9, %v903_v39 }
 0x274   : > { %v3241_v37 = vpop.f32.mrf.mxu1  ;;  %v4257_v21 = vcombine.low %v1219_v60, %v1224_v63 }
 0x275   : > { %v6287_v29 = vadd.f32 %v3241_v37, %v3016_v6  ;;  %v3018_v10 = vpop.f32.mrf.mxu0  ;;  %v1344_v37 = vmul.bf16 %v6270_v9, %v1013_v57  ;;  %v1028_v57 = vld [vmem:[%s5220_s18 + $0x4a0] sm:$0xf] }
 0x276   : > { %v3243_v43 = vpop.f32.mrf.mxu1  ;;  %v4356_v10 = vcombine.low %v1329_v23, %v1334_v45  ;;  %v1354_v45 = vmul.bf16 %v6270_v9, %v1023_v44 }
 0x277   : > { %6957 = vst [vmem:[#allocation11_spill] sm:$0xff] %v6287_v29  ;;  %v3021_v0 = vpop.f32.mrf.mxu0  ;;  %3470 = vmatmul.mubr.bf16.gmra.mxu0 %v4442_v8  ;;  %v1339_v8 = vmul.bf16 %v6270_v9, %v1008_v40  ;;  %v908_v40 = vld [vmem:[%s5220_s18 + $0x140] sm:$0xf] }
 0x278   : > { %v3246_v34 = vpop.f32.mrf.mxu1  ;;  %3695 = vmatmul.mubr.bf16.gmra.mxu1 %v4444_v18  ;;  %4500 = vmatprep.mubr.bf16.mxu0 %v4239_v14 }
 0x279   : > { %v6300_v59 = vadd.f32 %v3246_v34, %v3021_v0  ;;  %v3023_v6 = vpop.f32.mrf.mxu0  ;;  %4524 = vmatprep.mubr.bf16.mxu1 %v4347_v24  ;;  %v1018_v0 = vld [vmem:[%s5220_s18 + $0x458] sm:$0xf]  ;;  %v4365_v34 = vcombine.low %v1339_v8, %v1344_v37 }
 0x27a   : > { %v3248_v18 = vpop.f32.mrf.mxu1  ;;  %v913_v6 = vld [vmem:[%s5220_s18 + $0x164] sm:$0xf]  ;;  %v1349_v23 = vmul.bf16 %v6270_v9, %v1018_v0 }
 0x27b   : > { %6958 = vst [vmem:[#allocation12_spill] sm:$0xff] %v6300_v59  ;;  %v3024_v14 = vpop.f32.mrf.mxu0  ;;  %v1033_v18 = vld [vmem:[%s5220_s18 + $0x4c4] sm:$0xf]  ;;  %v1244_v8 = vmul.bf16 %v6270_v9, %v913_v6 }
 0x27c   : > { %v3249_v28 = vpop.f32.mrf.mxu1  ;;  %v4374_v0 = vcombine.low %v1349_v23, %v1354_v45 }
 0x27d   : > { %v6308_v43 = vadd.f32 %v3249_v28, %v3024_v14  ;;  %v3026_v24 = vpop.f32.mrf.mxu0  ;;  %v1359_v14 = vmul.bf16 %v6270_v9, %v1028_v57  ;;  %v4266_v28 = vcombine.low %v1229_v42, %v1234_v52 }
 0x27e   : > { %v3251_v29 = vpop.f32.mrf.mxu1  ;;  %v923_v24 = vld [vmem:[%s5220_s18 + $0x1ac] sm:$0xf] }
 0x27f   : > { %6959 = vst [vmem:[#allocation13_spill] sm:$0xff] %v6308_v43  ;;  %v3287_v59 = vpop.f32.mrf.mxu0  ;;  %4501 = vmatmul.mubr.bf16.vlgmr.msra.gmra.mxu0 %v4248_v41  ;;  %v1239_v29 = vmul.bf16 %v6270_v9, %v908_v40  ;;  %v1364_v41 = vmul.bf16 %v6270_v9, %v1033_v18  ;;  %v1043_v40 = vld [vmem:[%s5220_s18 + $0x50c] sm:$0xf]  ;;  %v928_v18 = vld [vmem:[%s5220_s18 + $0x1d0] sm:$0xf] }
 0x280   : > { %v3288_v60 = vadd.f32 %v3287_v59, %v5975_v19  ;;  %v3512_v63 = vpop.f32.mrf.mxu1  ;;  %4525 = vmatmul.mubr.bf16.vlgmr.msra.gmra.mxu1 %v4356_v10  ;;  %4504 = vmatprep.mubr.bf16.mxu0 %v4257_v21  ;;  %v918_v10 = vld [vmem:[%s5220_s18 + $0x188] sm:$0xf]  ;;  %v1053_v43 = vld [vmem:[%s5220_s18 + $0x554] sm:$0xf]  ;;  %v1374_v45 = vmul.bf16 %v6270_v9, %v1043_v40 }
 0x281   : > { %v3289_v37 = vpop.f32.mrf.mxu0  ;;  %4528 = vmatprep.mubr.bf16.mxu1 %v4365_v34  ;;  %v4275_v44 = vcombine.low %v1239_v29, %v1244_v8  ;;  %v1038_v34 = vld [vmem:[%s5220_s18 + $0x4e8] sm:$0xf]  ;;  %v4383_v57 = vcombine.low %v1359_v14, %v1364_v41  ;;  %v1249_v52 = vmul.bf16 %v6270_v9, %v918_v10  ;;  %v1259_v14 = vmul.bf16 %v6270_v9, %v928_v18  ;;  %v1058_v18 = vld [vmem:[%s5220_s18 + $0x578] sm:$0xf] }
 0x282   : > { %v6323_v5 = vadd.f32 %v3512_v63, %v3288_v60  ;;  %v3514_v19 = vpop.f32.mrf.mxu1  ;;  %v933_v37 = vld [vmem:[%s5220_s18 + $0x1f4] sm:$0xf]  ;;  %v1369_v23 = vmul.bf16 %v6270_v9, %v1038_v34  ;;  %v1384_v10 = vmul.bf16 %v6270_v9, %v1053_v43  ;;  %v948_v43 = vld [vmem:[%s5220_s18 + $0x260] sm:$0xf] }
 0x283   : > { %v3290_v59 = vpop.f32.mrf.mxu0  ;;  %v1048_v19 = vld [vmem:[%s5220_s18 + $0x530] sm:$0xf]  ;;  %v1264_v41 = vmul.bf16 %v6270_v9, %v933_v37  ;;  %v1063_v37 = vld [vmem:[%s5220_s18 + $0x59c] sm:$0xf] }
 0x284   : > { %v3291_v21 = vadd.f32 %v3290_v59, %v5985_v31  ;;  %v3515_v39 = vpop.f32.mrf.mxu1  ;;  %v1254_v31 = vmul.bf16 %v6270_v9, %v923_v24  ;;  %v4392_v40 = vcombine.low %v1369_v23, %v1374_v45  ;;  %v1389_v23 = vmul.bf16 %v6270_v9, %v1058_v18 }
 0x285   : > { %v3292_v6 = vpop.f32.mrf.mxu0  ;;  %v1394_v45 = vmul.bf16 %v6270_v9, %v1063_v37 }
 0x286   : > { %v6332_v60 = vadd.f32 %v3515_v39, %v3291_v21  ;;  %v3517_v63 = vpop.f32.mrf.mxu1  ;;  %v4293_v6 = vcombine.low %v1259_v14, %v1264_v41 }
 0x287   : > { %v3295_v42 = vpop.f32.mrf.mxu0  ;;  %4505 = vmatmul.mubr.bf16.gmra.mxu0 %v4266_v28  ;;  %v1379_v28 = vmul.bf16 %v6270_v9, %v1048_v19  ;;  %v4410_v37 = vcombine.low %v1389_v23, %v1394_v45 }
 0x288   : > { %v3296_v29 = vadd.f32 %v3295_v42, %v6001_v55  ;;  %v3520_v8 = vpop.f32.mrf.mxu1  ;;  %4529 = vmatmul.mubr.bf16.gmra.mxu1 %v4374_v0  ;;  %4508 = vmatprep.mubr.bf16.mxu0 %v4275_v44  ;;  %v4284_v0 = vcombine.low %v1249_v52, %v1254_v31  ;;  %v938_v44 = vld [vmem:[%s5220_s18 + $0x218] sm:$0xf]  ;;  %v953_v42 = vld [vmem:[%s5220_s18 + $0x284] sm:$0xf] }
 0x289   : > { %v3297_v59 = vpop.f32.mrf.mxu0  ;;  %4532 = vmatprep.mubr.bf16.mxu1 %v4383_v57  ;;  %v943_v57 = vld [vmem:[%s5220_s18 + $0x23c] sm:$0xf]  ;;  %v4401_v19 = vcombine.low %v1379_v28, %v1384_v10  ;;  %v1269_v31 = vmul.bf16 %v6270_v9, %v938_v44  ;;  %v1279_v28 = vmul.bf16 %v6270_v9, %v948_v43  ;;  %v1284_v10 = vmul.bf16 %v6270_v9, %v953_v42  ;;  %v1078_v43 = vld [vmem:[%s5220_s18 + $0x608] sm:$0xf]  ;;  %v1083_v42 = vld [vmem:[%s5220_s18 + $0x62c] sm:$0xf] }
 0x28a   : > { %v6345_v21 = vadd.f32 %v3520_v8, %v3296_v29  ;;  %v3522_v55 = vpop.f32.mrf.mxu1  ;;  %v1068_v59 = vld [vmem:[%s5220_s18 + $0x5c0] sm:$0xf]  ;;  %v1409_v23 = vmul.bf16 %v6270_v9, %v1078_v43  ;;  %v1414_v45 = vmul.bf16 %v6270_v9, %v1083_v42 }
 0x28b   : > { %v3298_v39 = vpop.f32.mrf.mxu0  ;;  %v1073_v55 = vld [vmem:[%s5220_s18 + $0x5e4] sm:$0xf] }
 0x28c   : > { %v3299_v24 = vadd.f32 %v3298_v39, %v6017_v62  ;;  %v3523_v34 = vpop.f32.mrf.mxu1  ;;  %v1274_v62 = vmul.bf16 %v6270_v9, %v943_v57  ;;  %v1404_v44 = vmul.bf16 %v6270_v9, %v1073_v55  ;;  %v968_v55 = vld [vmem:[%s5220_s18 + $0x2f0] sm:$0xf]  ;;  %v4428_v43 = vcombine.low %v1409_v23, %v1414_v45 }
 0x28d   : > { %v3300_v63 = vpop.f32.mrf.mxu0 }
 0x28e   : > { %v6354_v29 = vadd.f32 %v3523_v34, %v3299_v24  ;;  %v3525_v8 = vpop.f32.mrf.mxu1  ;;  %v4311_v63 = vcombine.low %v1279_v28, %v1284_v10 }
 0x28f   : > { %v3303_v52 = vpop.f32.mrf.mxu0  ;;  %4509 = vmatmul.mubr.bf16.gmra.mxu0 %v4284_v0  ;;  %v1399_v0 = vmul.bf16 %v6270_v9, %v1068_v59 }
 0x290   : > { %v3304_v14 = vadd.f32 %v3303_v52, %v6027_v12  ;;  %v3528_v41 = vpop.f32.mrf.mxu1  ;;  %4533 = vmatmul.mubr.bf16.gmra.mxu1 %v4392_v40  ;;  %4512 = vmatprep.mubr.bf16.mxu0 %v4293_v6  ;;  %v4302_v40 = vcombine.low %v1269_v31, %v1274_v62  ;;  %v958_v6 = vld [vmem:[%s5220_s18 + $0x2a8] sm:$0xf]  ;;  %v973_v52 = vld [vmem:[%s5220_s18 + $0x314] sm:$0xf] }
 0x291   : > { %v3305_v39 = vpop.f32.mrf.mxu0  ;;  %4536 = vmatprep.mubr.bf16.mxu1 %v4401_v19  ;;  %v963_v19 = vld [vmem:[%s5220_s18 + $0x2cc] sm:$0xf]  ;;  %v4419_v59 = vcombine.low %v1399_v0, %v1404_v44  ;;  %v1289_v62 = vmul.bf16 %v6270_v9, %v958_v6  ;;  %v1299_v0 = vmul.bf16 %v6270_v9, %v968_v55  ;;  %v1304_v44 = vmul.bf16 %v6270_v9, %v973_v52  ;;  %v983_v55 = vld [vmem:[%s5220_s18 + $0x35c] sm:$0xf] }
 0x292   : > { %v6367_v24 = vadd.f32 %v3528_v41, %v3304_v14  ;;  %v3530_v12 = vpop.f32.mrf.mxu1  ;;  %v1088_v39 = vld [vmem:[%s5220_s18 + $0x650] sm:$0xf] }
 0x293   : > { %v3306_v34 = vpop.f32.mrf.mxu0  ;;  %v1093_v12 = vld [vmem:[%s5220_s18 + $0x674] sm:$0xf]  ;;  %v4329_v42 = vcombine.low %v1299_v0, %v1304_v44 }
 0x294   : > { %v3307_v57 = vadd.f32 %v3306_v34, %v6037_v26  ;;  %v3531_v18 = vpop.f32.mrf.mxu1  ;;  %v1294_v26 = vmul.bf16 %v6270_v9, %v963_v19  ;;  %v1424_v6 = vmul.bf16 %v6270_v9, %v1093_v12 }
 0x295   : > { %v3308_v8 = vpop.f32.mrf.mxu0 }
 0x296   : > { %v6376_v14 = vadd.f32 %v3531_v18, %v3307_v57  ;;  %v3533_v41 = vpop.f32.mrf.mxu1  ;;  %v978_v8 = vld [vmem:[%s5220_s18 + $0x338] sm:$0xf] }
 0x297   : > { %v3311_v31 = vpop.f32.mrf.mxu0  ;;  %4513 = vmatmul.mubr.bf16.gmra.mxu0 %v4302_v40  ;;  %v1419_v40 = vmul.bf16 %v6270_v9, %v1088_v39 }
 0x298   : > { %v3312_v28 = vadd.f32 %v3311_v31, %v6045_v38  ;;  %v3536_v10 = vpop.f32.mrf.mxu1  ;;  %4537 = vmatmul.mubr.bf16.gmra.mxu1 %v4410_v37  ;;  %4516 = vmatprep.mubr.bf16.mxu0 %v4311_v63  ;;  %v4320_v37 = vcombine.low %v1289_v62, %v1294_v26  ;;  %v1103_v31 = vld [vmem:[%s5220_s18 + $0x6bc] sm:$0xf]  ;;  %v1314_v62 = vmul.bf16 %v6270_v9, %v983_v55 }
 0x299   : > { %v3313_v34 = vpop.f32.mrf.mxu0  ;;  %4540 = vmatprep.mubr.bf16.mxu1 %v4419_v59  ;;  %v4437_v41 = vcombine.low %v1419_v40, %v1424_v6  ;;  %v1098_v59 = vld [vmem:[%s5220_s18 + $0x698] sm:$0xf]  ;;  %v1434_v45 = vmul.bf16 %v6270_v9, %v1103_v31 }
 0x29a   : > { %v6389_v57 = vadd.f32 %v3536_v10, %v3312_v28  ;;  %v3538_v38 = vpop.f32.mrf.mxu1  ;;  %v1309_v28 = vmul.bf16 %v6270_v9, %v978_v8  ;;  %v1429_v23 = vmul.bf16 %v6270_v9, %v1098_v59 }
 0x29b   : > { %v3314_v18 = vpop.f32.mrf.mxu0 }
 0x29c   : > { %v3315_v63 = vadd.f32 %v3314_v18, %v6049_v49  ;;  %v3539_v19 = vpop.f32.mrf.mxu1  ;;  %v4338_v6 = vcombine.low %v1309_v28, %v1314_v62 }
 0x29d   : > { %v3316_v52 = vpop.f32.mrf.mxu0 }
 0x29e   : > { %v6396_v34 = vadd.f32 %v3539_v19, %v3315_v63  ;;  %v3541_v39 = vpop.f32.mrf.mxu1 }
 0x29f   : > { %v3319_v12 = vpop.f32.mrf.mxu0  ;;  %4517 = vmatmul.mubr.bf16.gmra.mxu0 %v4320_v37  ;;  %v4446_v37 = vcombine.low %v1429_v23, %v1434_v45 }
 0x2a0   : > { %v3320_v49 = vadd.f32 %v3319_v12, %v6057_v1  ;;  %v3544_v26 = vpop.f32.mrf.mxu1  ;;  %4541 = vmatmul.mubr.bf16.gmra.mxu1 %v4428_v43  ;;  %4520 = vmatprep.mubr.bf16.mxu0 %v4329_v42 }
 0x2a1   : > { %v3321_v10 = vpop.f32.mrf.mxu0  ;;  %4544 = vmatprep.mubr.bf16.mxu1 %v4437_v41 }
 0x2a2   : > { %v6403_v0 = vadd.f32 %v3544_v26, %v3320_v49  ;;  %v3546_v44 = vpop.f32.mrf.mxu1 }
 0x2a3   : > { %v3322_v40 = vpop.f32.mrf.mxu0 }
 0x2a4   : > { %v3323_v38 = vadd.f32 %v3322_v40, %v6061_v13  ;;  %v3547_v18 = vpop.f32.mrf.mxu1 }
 0x2a5   : > { %v3324_v63 = vpop.f32.mrf.mxu0 }
 0x2a6   : > { %v6406_v1 = vadd.f32 %v3547_v18, %v3323_v38  ;;  %v3549_v19 = vpop.f32.mrf.mxu1 }
 0x2a7   : > { %v3327_v43 = vpop.f32.mrf.mxu0  ;;  %4521 = vmatmul.mubr.bf16.gmra.mxu0 %v4338_v6 }
 0x2a8   : > { %v3328_v42 = vadd.f32 %v3327_v43, %v6069_v27  ;;  %v3552_v9 = vpop.f32.mrf.mxu1  ;;  %4545 = vmatmul.mubr.bf16.gmra.mxu1 %v4446_v37 }
 0x2a9   : > { %v3329_v8 = vpop.f32.mrf.mxu0 }
 0x2aa   : > { %v6409_v55 = vadd.f32 %v3552_v9, %v3328_v42  ;;  %v3554_v52 = vpop.f32.mrf.mxu1 }
 0x2ab   : > { %v3330_v41 = vpop.f32.mrf.mxu0 }
 0x2ac   : > { %v3331_v59 = vadd.f32 %v3330_v41, %v6075_v50  ;;  %v3555_v13 = vpop.f32.mrf.mxu1 }
 0x2ad   : > { %v3332_v31 = vpop.f32.mrf.mxu0 }
 0x2ae   : > { %v6412_v39 = vadd.f32 %v3555_v13, %v3331_v59  ;;  %v3557_v12 = vpop.f32.mrf.mxu1 }
 0x2af   : > { %v3335_v28 = vpop.f32.mrf.mxu0 }
 0x2b0   : > { %v3336_v62 = vadd.f32 %v3335_v28, %v6083_v58  ;;  %v3560_v49 = vpop.f32.mrf.mxu1 }
 0x2b1   : > { %v3337_v26 = vpop.f32.mrf.mxu0 }
 0x2b2   : > { %v6415_v27 = vadd.f32 %v3560_v49, %v3336_v62  ;;  %v3562_v23 = vpop.f32.mrf.mxu1 }
 0x2b3   : > { %v3338_v45 = vpop.f32.mrf.mxu0 }
 0x2b4   : > { %v3339_v10 = vadd.f32 %v3338_v45, %v6087_v7  ;;  %v3563_v44 = vpop.f32.mrf.mxu1 }
 0x2b5   : > { %v3340_v40 = vpop.f32.mrf.mxu0 }
 0x2b6   : > { %v6418_v6 = vadd.f32 %v3563_v44, %v3339_v10  ;;  %v3565_v50 = vpop.f32.mrf.mxu1 }
 0x2b7   : > { %v3343_v38 = vpop.f32.mrf.mxu0 }
 0x2b8   : > { %v3344_v18 = vadd.f32 %v3343_v38, %v6095_v22  ;;  %v3568_v37 = vpop.f32.mrf.mxu1 }
 0x2b9   : > { %v3345_v63 = vpop.f32.mrf.mxu0 }
 0x2ba   : > { %v6421_v19 = vadd.f32 %v3568_v37, %v3344_v18  ;;  %v3570_v58 = vpop.f32.mrf.mxu1 }
 0x2bb   : > { %v3346_v43 = vpop.f32.mrf.mxu0 }
 0x2bc   : > { %v3347_v42 = vadd.f32 %v3346_v43, %v6099_v33  ;;  %v3571_v9 = vpop.f32.mrf.mxu1 }
 0x2bd   : > { %v3348_v8 = vpop.f32.mrf.mxu0 }
 0x2be   : > { %v6424_v52 = vadd.f32 %v3571_v9, %v3347_v42  ;;  %v3573_v7 = vpop.f32.mrf.mxu1 }
 0x2bf   : > { %v3351_v41 = vpop.f32.mrf.mxu0 }
 0x2c0   : > { %v3352_v59 = vadd.f32 %v3351_v41, %v6107_v51  ;;  %v3576_v13 = vpop.f32.mrf.mxu1 }
 0x2c1   : > { %v3353_v31 = vpop.f32.mrf.mxu0 }
 0x2c2   : > { %v6427_v12 = vadd.f32 %v3576_v13, %v3352_v59  ;;  %v3578_v22 = vpop.f32.mrf.mxu1 }
 0x2c3   : > { %v3354_v28 = vpop.f32.mrf.mxu0 }
 0x2c4   : > { %v3355_v62 = vadd.f32 %v3354_v28, %v6111_v2  ;;  %v3579_v49 = vpop.f32.mrf.mxu1 }
 0x2c5   : > { %v3356_v26 = vpop.f32.mrf.mxu0 }
 0x2c6   : > { %v6430_v23 = vadd.f32 %v3579_v49, %v3355_v62  ;;  %v3581_v33 = vpop.f32.mrf.mxu1 }
 0x2c7   : > { %v3359_v45 = vpop.f32.mrf.mxu0 }
 0x2c8   : > { %v3360_v10 = vadd.f32 %v3359_v45, %v6119_v17  ;;  %v3584_v44 = vpop.f32.mrf.mxu1 }
 0x2c9   : > { %v3361_v40 = vpop.f32.mrf.mxu0 }
 0x2ca   : > { %v6433_v50 = vadd.f32 %v3584_v44, %v3360_v10  ;;  %v3586_v51 = vpop.f32.mrf.mxu1 }
 0x2cb   : > { %v3362_v38 = vpop.f32.mrf.mxu0 }
 0x2cc   : > { %v3363_v18 = vadd.f32 %v3362_v38, %v6123_v32  ;;  %v3587_v37 = vpop.f32.mrf.mxu1 }
 0x2cd   : > { %v3364_v63 = vpop.f32.mrf.mxu0 }
 0x2ce   : > { %v6436_v58 = vadd.f32 %v3587_v37, %v3363_v18  ;;  %v3589_v2 = vpop.f32.mrf.mxu1 }
 0x2cf   : > { %v3367_v43 = vpop.f32.mrf.mxu0 }
 0x2d0   : > { %v3368_v42 = vadd.f32 %v3367_v43, %v6131_v48  ;;  %v3592_v9 = vpop.f32.mrf.mxu1 }
 0x2d1   : > { %v3369_v8 = vpop.f32.mrf.mxu0 }
 0x2d2   : > { %v6439_v7 = vadd.f32 %v3592_v9, %v3368_v42  ;;  %v3594_v17 = vpop.f32.mrf.mxu1 }
 0x2d3   : > { %v3370_v41 = vpop.f32.mrf.mxu0 }
 0x2d4   : > { %6960 = vst [vmem:[#allocation14_spill] sm:$0xff] %v6439_v7  ;;  %v3371_v59 = vadd.f32 %v3370_v41, %v6135_v3  ;;  %v3595_v13 = vpop.f32.mrf.mxu1 }
 0x2d5   : > { %v3372_v31 = vpop.f32.mrf.mxu0 }
 0x2d6   : > { %v6442_v22 = vadd.f32 %v3595_v13, %v3371_v59  ;;  %v3597_v32 = vpop.f32.mrf.mxu1 }
 0x2d7   : > { %v3375_v28 = vpop.f32.mrf.mxu0 }
 0x2d8   : > { %6961 = vst [vmem:[#allocation15_spill] sm:$0xff] %v6442_v22  ;;  %v3376_v62 = vadd.f32 %v3375_v28, %v6143_v16  ;;  %v3600_v49 = vpop.f32.mrf.mxu1 }
 0x2d9   : > { %v3377_v26 = vpop.f32.mrf.mxu0 }
 0x2da   : > { %v6445_v33 = vadd.f32 %v3600_v49, %v3376_v62  ;;  %v3602_v48 = vpop.f32.mrf.mxu1 }
 0x2db   : > { %v3378_v45 = vpop.f32.mrf.mxu0 }
 0x2dc   : > { %v3379_v10 = vadd.f32 %v3378_v45, %v6147_v35  ;;  %v3603_v44 = vpop.f32.mrf.mxu1 }
 0x2dd   : > { %v3380_v40 = vpop.f32.mrf.mxu0 }
 0x2de   : > { %v6448_v51 = vadd.f32 %v3603_v44, %v3379_v10  ;;  %v3605_v3 = vpop.f32.mrf.mxu1 }
 0x2df   : > { %v3383_v38 = vpop.f32.mrf.mxu0 }
 0x2e0   : > { %6962 = vst [vmem:[#allocation16_spill] sm:$0xff] %v6448_v51  ;;  %v3384_v18 = vadd.f32 %v3383_v38, %v6155_v47  ;;  %v3608_v37 = vpop.f32.mrf.mxu1 }
 0x2e1   : > { %v3385_v63 = vpop.f32.mrf.mxu0 }
 0x2e2   : > { %v6451_v2 = vadd.f32 %v3608_v37, %v3384_v18  ;;  %v3610_v16 = vpop.f32.mrf.mxu1 }
 0x2e3   : > { %v3386_v43 = vpop.f32.mrf.mxu0 }
 0x2e4   : > { %v3387_v42 = vadd.f32 %v3386_v43, %v6159_v4  ;;  %v3611_v9 = vpop.f32.mrf.mxu1 }
 0x2e5   : > { %v3388_v8 = vpop.f32.mrf.mxu0 }
 0x2e6   : > { %v6454_v17 = vadd.f32 %v3611_v9, %v3387_v42  ;;  %v3613_v35 = vpop.f32.mrf.mxu1 }
 0x2e7   : > { %v3391_v41 = vpop.f32.mrf.mxu0 }
 0x2e8   : > { %v3392_v59 = vadd.f32 %v3391_v41, %v6167_v15  ;;  %v3616_v13 = vpop.f32.mrf.mxu1 }
 0x2e9   : > { %v3393_v31 = vpop.f32.mrf.mxu0 }
 0x2ea   : > { %v6457_v32 = vadd.f32 %v3616_v13, %v3392_v59  ;;  %v3618_v47 = vpop.f32.mrf.mxu1 }
 0x2eb   : > { %v3394_v28 = vpop.f32.mrf.mxu0 }
 0x2ec   : > { %v3395_v62 = vadd.f32 %v3394_v28, %v6171_v53  ;;  %v3619_v49 = vpop.f32.mrf.mxu1 }
 0x2ed   : > { %v3396_v26 = vpop.f32.mrf.mxu0 }
 0x2ee   : > { %v6460_v48 = vadd.f32 %v3619_v49, %v3395_v62  ;;  %v3621_v4 = vpop.f32.mrf.mxu1 }
 0x2ef   : > { %v3399_v45 = vpop.f32.mrf.mxu0 }
 0x2f0   : > { %v3400_v10 = vadd.f32 %v3399_v45, %v6179_v56  ;;  %v3624_v44 = vpop.f32.mrf.mxu1 }
 0x2f1   : > { %v3401_v40 = vpop.f32.mrf.mxu0 }
 0x2f2   : > { %v6463_v3 = vadd.f32 %v3624_v44, %v3400_v10  ;;  %v3626_v15 = vpop.f32.mrf.mxu1 }
 0x2f3   : > { %v3402_v38 = vpop.f32.mrf.mxu0 }
 0x2f4   : > { %v3403_v18 = vadd.f32 %v3402_v38, %v6184_v36  ;;  %v3627_v37 = vpop.f32.mrf.mxu1 }
 0x2f5   : > { %v3404_v63 = vpop.f32.mrf.mxu0 }
 0x2f6   : > { %v6466_v16 = vadd.f32 %v3627_v37, %v3403_v18  ;;  %v3629_v53 = vpop.f32.mrf.mxu1  ;;  %v6963_v18 = vld [vmem:[#allocation3_spill] sm:$0xff] }
 0x2f7   : > { %v3407_v43 = vpop.f32.mrf.mxu0 }
 0x2f8   : > { %v3408_v42 = vadd.f32 %v3407_v43, %v6192_v25  ;;  %v3632_v9 = vpop.f32.mrf.mxu1 }
 0x2f9   : > { %v3409_v8 = vpop.f32.mrf.mxu0 }
 0x2fa   : > { %v6469_v35 = vadd.f32 %v3632_v9, %v3408_v42  ;;  %v3634_v56 = vpop.f32.mrf.mxu1  ;;  %v6964_v9 = vld [vmem:[#allocation4_spill] sm:$0xff] }
 0x2fb   : > { %v3410_v41 = vpop.f32.mrf.mxu0 }
 0x2fc   : > { %v3411_v59 = vadd.f32 %v3410_v41, %v6196_v20  ;;  %v3635_v13 = vpop.f32.mrf.mxu1 }
 0x2fd   : > { %v3412_v31 = vpop.f32.mrf.mxu0 }
 0x2fe   : > { %v6472_v47 = vadd.f32 %v3635_v13, %v3411_v59  ;;  %v3637_v36 = vpop.f32.mrf.mxu1  ;;  %v6965_v31 = vld [vmem:[#allocation5_spill] sm:$0xff] }
 0x2ff   : > { %v3415_v28 = vpop.f32.mrf.mxu0 }
 0x300   : > { %v3416_v62 = vadd.f32 %v3415_v28, %v6204_v46  ;;  %v3640_v49 = vpop.f32.mrf.mxu1 }
 0x301   : > { %v3417_v26 = vpop.f32.mrf.mxu0 }
 0x302   : > { %v6475_v4 = vadd.f32 %v3640_v49, %v3416_v62  ;;  %v3642_v25 = vpop.f32.mrf.mxu1 }
 0x303   : > { %v3418_v45 = vpop.f32.mrf.mxu0 }
 0x304   : > { %v3419_v10 = vadd.f32 %v3418_v45, %v6208_v61  ;;  %v3643_v44 = vpop.f32.mrf.mxu1  ;;  %v6966_v45 = vld [vmem:[#allocation6_spill] sm:$0xff] }
 0x305   : > { %v3420_v40 = vpop.f32.mrf.mxu0 }
 0x306   : > { %v6478_v15 = vadd.f32 %v3643_v44, %v3419_v10  ;;  %v3645_v20 = vpop.f32.mrf.mxu1 }
 0x307   : > { %v3423_v38 = vpop.f32.mrf.mxu0 }
 0x308   : > { %v3424_v37 = vadd.f32 %v3423_v38, %v6963_v18  ;;  %v3648_v63 = vpop.f32.mrf.mxu1 }
 0x309   : > { %v3425_v53 = vpop.f32.mrf.mxu0 }
 0x30a   : > { %v6481_v43 = vadd.f32 %v3648_v63, %v3424_v37  ;;  %v3650_v46 = vpop.f32.mrf.mxu1 }
 0x30b   : > { %v3426_v42 = vpop.f32.mrf.mxu0 }
 0x30c   : > { %v3427_v8 = vadd.f32 %v3426_v42, %v6964_v9  ;;  %v3651_v56 = vpop.f32.mrf.mxu1 }
 0x30d   : > { %v3428_v41 = vpop.f32.mrf.mxu0 }
 0x30e   : > { %v6484_v59 = vadd.f32 %v3651_v56, %v3427_v8  ;;  %v3653_v61 = vpop.f32.mrf.mxu1  ;;  %v6967_v41 = vld [vmem:[#allocation9_spill] sm:$0xff] }
 0x30f   : > { %v3431_v13 = vpop.f32.mrf.mxu0 }
 0x310   : > { %v3432_v36 = vadd.f32 %v3431_v13, %v6965_v31  ;;  %v3656_v28 = vpop.f32.mrf.mxu1 }
 0x311   : > { %v3433_v62 = vpop.f32.mrf.mxu0 }
 0x312   : > { %v6487_v49 = vadd.f32 %v3656_v28, %v3432_v36  ;;  %v3658_v26 = vpop.f32.mrf.mxu1 }
 0x313   : > { %v3434_v25 = vpop.f32.mrf.mxu0 }
 0x314   : > { %v3435_v10 = vadd.f32 %v3434_v25, %v6966_v45  ;;  %v3659_v44 = vpop.f32.mrf.mxu1 }
 0x315   : > { %v3436_v40 = vpop.f32.mrf.mxu0 }
 0x316   : > { %v6490_v20 = vadd.f32 %v3659_v44, %v3435_v10  ;;  %v3661_v38 = vpop.f32.mrf.mxu1 }
 0x317   : > { %v6492_v18 = vpop.f32.mrf.mxu0 }
 0x318   : > { %v6494_v37 = vpop.f32.mrf.mxu1 }
 0x319   : > { %v3441_v63 = vpop.f32.mrf.mxu0 }
 0x31a   : > { %v3666_v53 = vpop.f32.mrf.mxu1 }
 0x31b   : > { %v6496_v46 = vpop.f32.mrf.mxu0 }
 0x31c   : > { %v6498_v42 = vpop.f32.mrf.mxu1 }
 0x31d   : > { %v3444_v9 = vpop.f32.mrf.mxu0 }
 0x31e   : > { %v3669_v8 = vpop.f32.mrf.mxu1 }
 0x31f   : > { %v3447_v56 = vpop.f32.mrf.mxu0 }
 0x320   : > { %v3448_v61 = vadd.f32 %v3447_v56, %v6967_v41  ;;  %v3672_v13 = vpop.f32.mrf.mxu1 }
 0x321   : > { %v3449_v31 = vpop.f32.mrf.mxu0 }
 0x322   : > { %v6501_v36 = vadd.f32 %v3672_v13, %v3448_v61  ;;  %v3674_v28 = vpop.f32.mrf.mxu1 }
 0x323   : > { %v3450_v62 = vpop.f32.mrf.mxu0 }
 0x324   : > { %v3451_v26 = vadd.f32 %v3450_v62, %v6257_v30  ;;  %v3675_v25 = vpop.f32.mrf.mxu1 }
 0x325   : > { %v3452_v45 = vpop.f32.mrf.mxu0 }
 0x326   : > { %v6504_v10 = vadd.f32 %v3675_v25, %v3451_v26  ;;  %v3677_v44 = vpop.f32.mrf.mxu1 }
 0x327   : > { %v6506_v40 = vpop.f32.mrf.mxu0 }
 0x328   : > { %v6508_v38 = vpop.f32.mrf.mxu1 }
 0x329   : > { %v3457_v63 = vpop.f32.mrf.mxu0 }
 0x32a   : > { %v3682_v53 = vpop.f32.mrf.mxu1 }
 0x32b   : > { %v6510_v9 = vpop.f32.mrf.mxu0 }
 0x32c   : > { %v6512_v8 = vpop.f32.mrf.mxu1 }
 0x32d   : > { %v3460_v56 = vpop.f32.mrf.mxu0 }
 0x32e   : > { %v3685_v41 = vpop.f32.mrf.mxu1 }
 0x32f   : > { %v6514_v61 = vpop.f32.mrf.mxu0 }
 0x330   : > { %v6516_v30 = vpop.f32.mrf.mxu1 }
 0x331   : > { %v3465_v13 = vpop.f32.mrf.mxu0 }
 0x332   : > { %v3690_v31 = vpop.f32.mrf.mxu1  ;;  %v1653_v13 = vld [vmem:[%s6948_s3 + $0x10] sm:$0xff] }
 0x333   : > { %v6518_v28 = vpop.f32.mrf.mxu0 }
 0x334   : > { %6968 = vst [vmem:[#allocation3_spill] sm:$0xff] %v6518_v28  ;;  %v6520_v62 = vpop.f32.mrf.mxu1 }
 0x335   : > { %6969 = vst [vmem:[#allocation4_spill] sm:$0xff] %v6520_v62  ;;  %v3468_v26 = vpop.f32.mrf.mxu0 }
 0x336   : > { %v3693_v25 = vpop.f32.mrf.mxu1 }
 0x337   : > { %v6522_v45 = vpop.f32.mrf.mxu0  ;;  %v1677_v25 = vld [vmem:[%s6948_s3 + $0xd0] sm:$0xff] }
 0x338   : > { %v6524_v44 = vpop.f32.mrf.mxu1 }
 0x339   : > { %v3473_v63 = vpop.f32.mrf.mxu0 }
 0x33a   : > { %v3698_v53 = vpop.f32.mrf.mxu1 }
 0x33b   : > { %v6526_v56 = vpop.f32.mrf.mxu0 }
 0x33c   : > { %v6528_v41 = vpop.f32.mrf.mxu1 }
 0x33d   : > { %6970 = vst [vmem:[#allocation5_spill] sm:$0xff] %v6528_v41  ;;  %v3476_v22 = vpop.f32.mrf.mxu0 }
 0x33e   : > { %v3701_v51 = vpop.f32.mrf.mxu1  ;;  %v1651_v22 = vld [vmem:[%s6948_s3] sm:$0xff] }
 0x33f   : > { %v4502_v31 = vpop.f32.mrf.mxu0 }
 0x340   : > { %v3746_v26 = vadd.f32 %v4502_v31, %v6345_v21  ;;  %v4526_v62 = vpop.f32.mrf.mxu1  ;;  %v1675_v21 = vld [vmem:[%s6948_s3 + $0xc0] sm:$0xff] }
 0x341   : > { %v3842_v63 = vadd.f32 %v4526_v62, %v6457_v32  ;;  %v3737_v51 = vpop.f32.mrf.mxu0  ;;  %v1654_v32 = vld [vmem:[%s6948_s3 + $0x18] sm:$0xff] }
 0x342   : > { %v3930_v53 = vadd.f32 %v3746_v26, %v1653_v13  ;;  %v3738_v41 = vadd.f32 %v3737_v51, %v6323_v5  ;;  %v3833_v31 = vpop.f32.mrf.mxu1  ;;  %v1678_v26 = vld [vmem:[%s6948_s3 + $0xd8] sm:$0xff]  ;;  %v1652_v51 = vld [vmem:[%s6948_s3 + $0x8] sm:$0xff] }
 0x343   : > { %v3954_v7 = vadd.f32 %v3842_v63, %v1677_v25  ;;  %v3834_v28 = vadd.f32 %v3833_v31, %v6451_v2  ;;  %v4503_v62 = vpop.f32.mrf.mxu0 }
 0x344   : > { %3979 = vst.msk [vmem:[%s6948_s3 + $0x10] sm:$0xff] %vm3976_vm1, %v3930_v53  ;;  %v3928_v13 = vadd.f32 %v3738_v41, %v1651_v22  ;;  %v3749_v5 = vadd.f32 %v4503_v62, %v6354_v29  ;;  %v4527_v25 = vpop.f32.mrf.mxu1  ;;  %v1681_v62 = vld [vmem:[%s6948_s3 + $0xf0] sm:$0xff] }
 0x345   : > { %4003 = vst.msk [vmem:[%s6948_s3 + $0xd0] sm:$0xff] %vm3976_vm1, %v3954_v7  ;;  %v3952_v2 = vadd.f32 %v3834_v28, %v1675_v21  ;;  %v3845_v63 = vadd.f32 %v4527_v25, %v6460_v48  ;;  %v3740_v41 = vpop.f32.mrf.mxu0  ;;  %v1676_v7 = vld [vmem:[%s6948_s3 + $0xc8] sm:$0xff]  ;;  %v1657_v21 = vld [vmem:[%s6948_s3 + $0x30] sm:$0xff] }
 0x346   : > { %3977 = vst.msk [vmem:[%s6948_s3] sm:$0xff] %vm3976_vm1, %v3928_v13  ;;  %v3931_v29 = vadd.f32 %v3749_v5, %v1654_v32  ;;  %v3741_v22 = vadd.f32 %v3740_v41, %v6332_v60  ;;  %v3836_v28 = vpop.f32.mrf.mxu1 }
 0x347   : > { %4001 = vst.msk [vmem:[%s6948_s3 + $0xc0] sm:$0xff] %vm3976_vm1, %v3952_v2  ;;  %v3955_v48 = vadd.f32 %v3845_v63, %v1678_v26  ;;  %v3837_v53 = vadd.f32 %v3836_v28, %v6454_v17  ;;  %v4506_v31 = vpop.f32.mrf.mxu0  ;;  %v1655_v26 = vld [vmem:[%s6948_s3 + $0x20] sm:$0xff]  ;;  %v1682_v28 = vld [vmem:[%s6948_s3 + $0xf8] sm:$0xff] }
 0x348   : > { %3980 = vst.msk [vmem:[%s6948_s3 + $0x18] sm:$0xff] %vm3976_vm1, %v3931_v29  ;;  %v3929_v60 = vadd.f32 %v3741_v22, %v1652_v51  ;;  %v3762_v32 = vadd.f32 %v4506_v31, %v6389_v57  ;;  %v4530_v13 = vpop.f32.mrf.mxu1  ;;  %v1679_v63 = vld [vmem:[%s6948_s3 + $0xe0] sm:$0xff]  ;;  %v1658_v29 = vld [vmem:[%s6948_s3 + $0x38] sm:$0xff] }
 0x349   : > { %4004 = vst.msk [vmem:[%s6948_s3 + $0xd8] sm:$0xff] %vm3976_vm1, %v3955_v48  ;;  %v3953_v17 = vadd.f32 %v3837_v53, %v1676_v7  ;;  %v3858_v5 = vadd.f32 %v4530_v13, %v6469_v35  ;;  %v3753_v25 = vpop.f32.mrf.mxu0 }
 0x34a   : > { %3978 = vst.msk [vmem:[%s6948_s3 + $0x8] sm:$0xff] %vm3976_vm1, %v3929_v60  ;;  %v3934_v57 = vadd.f32 %v3762_v32, %v1657_v21  ;;  %v3754_v2 = vadd.f32 %v3753_v25, %v6367_v24  ;;  %v3849_v51 = vpop.f32.mrf.mxu1  ;;  %v1656_v21 = vld [vmem:[%s6948_s3 + $0x28] sm:$0xff]  ;;  %v1685_v25 = vld [vmem:[%s6948_s3 + $0x110] sm:$0xff] }
 0x34b   : > { %4002 = vst.msk [vmem:[%s6948_s3 + $0xc8] sm:$0xff] %vm3976_vm1, %v3953_v17  ;;  %v3958_v35 = vadd.f32 %v3858_v5, %v1681_v62  ;;  %v3850_v41 = vadd.f32 %v3849_v51, %v6463_v3  ;;  %v4507_v22 = vpop.f32.mrf.mxu0  ;;  %v1680_v32 = vld [vmem:[%s6948_s3 + $0xe8] sm:$0xff]  ;;  %v1661_v17 = vld [vmem:[%s6948_s3 + $0x50] sm:$0xff] }
 0x34c   : > { %3983 = vst.msk [vmem:[%s6948_s3 + $0x30] sm:$0xff] %vm3976_vm1, %v3934_v57  ;;  %v3932_v24 = vadd.f32 %v3754_v2, %v1655_v26  ;;  %v3765_v7 = vadd.f32 %v4507_v22, %v6396_v34  ;;  %v4531_v48 = vpop.f32.mrf.mxu1  ;;  %v6971_v22 = vld [vmem:[#allocation7_spill] sm:$0xff] }
 0x34d   : > { %4007 = vst.msk [vmem:[%s6948_s3 + $0xf0] sm:$0xff] %vm3976_vm1, %v3958_v35  ;;  %v3956_v3 = vadd.f32 %v3850_v41, %v1679_v63  ;;  %v3861_v53 = vadd.f32 %v4531_v48, %v6472_v47  ;;  %v3756_v31 = vpop.f32.mrf.mxu0  ;;  %v1659_v63 = vld [vmem:[%s6948_s3 + $0x40] sm:$0xff] }
 0x34e   : > { %3981 = vst.msk [vmem:[%s6948_s3 + $0x20] sm:$0xff] %vm3976_vm1, %v3932_v24  ;;  %v3935_v34 = vadd.f32 %v3765_v7, %v1658_v29  ;;  %v3757_v60 = vadd.f32 %v3756_v31, %v6376_v14  ;;  %v3852_v62 = vpop.f32.mrf.mxu1  ;;  %v1683_v41 = vld [vmem:[%s6948_s3 + $0x100] sm:$0xff]  ;;  %v1660_v31 = vld [vmem:[%s6948_s3 + $0x48] sm:$0xff] }
 0x34f   : > { %4005 = vst.msk [vmem:[%s6948_s3 + $0xe0] sm:$0xff] %vm3976_vm1, %v3956_v3  ;;  %v3959_v47 = vadd.f32 %v3861_v53, %v1682_v28  ;;  %v3853_v13 = vadd.f32 %v3852_v62, %v6466_v16  ;;  %v4510_v5 = vpop.f32.mrf.mxu0  ;;  %v1686_v3 = vld [vmem:[%s6948_s3 + $0x118] sm:$0xff] }
 0x350   : > { %3984 = vst.msk [vmem:[%s6948_s3 + $0x38] sm:$0xff] %vm3976_vm1, %v3935_v34  ;;  %v3933_v14 = vadd.f32 %v3757_v60, %v1656_v21  ;;  %v3778_v26 = vadd.f32 %v4510_v5, %v6409_v55  ;;  %v4534_v57 = vpop.f32.mrf.mxu1 }
 0x351   : > { %4008 = vst.msk [vmem:[%s6948_s3 + $0xf8] sm:$0xff] %vm3976_vm1, %v3959_v47  ;;  %v3957_v16 = vadd.f32 %v3853_v13, %v1680_v32  ;;  %v3874_v2 = vadd.f32 %v4534_v57, %v6481_v43  ;;  %v3769_v51 = vpop.f32.mrf.mxu0  ;;  %v3440_v43 = vadd.f32 %v6492_v18, %v6971_v22  ;;  %v1684_v32 = vld [vmem:[%s6948_s3 + $0x108] sm:$0xff] }
 0x352   : > { %3982 = vst.msk [vmem:[%s6948_s3 + $0x28] sm:$0xff] %vm3976_vm1, %v3933_v14  ;;  %v3938_v55 = vadd.f32 %v3778_v26, %v1661_v17  ;;  %v3770_v35 = vadd.f32 %v3769_v51, %v6403_v0  ;;  %v3865_v29 = vpop.f32.mrf.mxu1  ;;  %v1662_v0 = vld [vmem:[%s6948_s3 + $0x58] sm:$0xff]  ;;  %v6972_v47 = vld [vmem:[#allocation8_spill] sm:$0xff]  ;;  %v1689_v26 = vld [vmem:[%s6948_s3 + $0x130] sm:$0xff] }
 0x353   : > { %4006 = vst.msk [vmem:[%s6948_s3 + $0xe8] sm:$0xff] %vm3976_vm1, %v3957_v16  ;;  %v3962_v24 = vadd.f32 %v3874_v2, %v1685_v25  ;;  %v3866_v7 = vadd.f32 %v3865_v29, %v6475_v4  ;;  %v4511_v28 = vpop.f32.mrf.mxu0  ;;  %v3443_v13 = vadd.f32 %v6496_v46, %v6972_v47  ;;  %v1663_v16 = vld [vmem:[%s6948_s3 + $0x60] sm:$0xff] }
 0x354   : > { %3987 = vst.msk [vmem:[%s6948_s3 + $0x50] sm:$0xff] %vm3976_vm1, %v3938_v55  ;;  %v3936_v48 = vadd.f32 %v3770_v35, %v1659_v63  ;;  %v3781_v18 = vadd.f32 %v4511_v28, %v6412_v39  ;;  %v4535_v53 = vpop.f32.mrf.mxu1  ;;  %v1687_v51 = vld [vmem:[%s6948_s3 + $0x120] sm:$0xff] }
 0x355   : > { %4011 = vst.msk [vmem:[%s6948_s3 + $0x110] sm:$0xff] %vm3976_vm1, %v3962_v24  ;;  %v3960_v4 = vadd.f32 %v3866_v7, %v1683_v41  ;;  %v3877_v21 = vadd.f32 %v4535_v53, %v6484_v59  ;;  %v3772_v34 = vpop.f32.mrf.mxu0  ;;  %v3665_v59 = vadd.f32 %v6494_v37, %v3440_v43  ;;  %v3668_v35 = vadd.f32 %v6498_v42, %v3443_v13  ;;  %v1691_v47 = vld [vmem:[%s6948_s3 + $0x140] sm:$0xff] }
 0x356   : > { %3985 = vst.msk [vmem:[%s6948_s3 + $0x40] sm:$0xff] %vm3976_vm1, %v3936_v48  ;;  %v3939_v39 = vadd.f32 %v3781_v18, %v1662_v0  ;;  %v3773_v60 = vadd.f32 %v3772_v34, %v6406_v1  ;;  %v3868_v62 = vpop.f32.mrf.mxu1  ;;  %v1665_v1 = vld [vmem:[%s6948_s3 + $0x70] sm:$0xff]  ;;  %v3456_v41 = vadd.f32 %v6506_v40, %v6266_v54  ;;  %v1690_v40 = vld [vmem:[%s6948_s3 + $0x138] sm:$0xff]  ;;  %v1664_v0 = vld [vmem:[%s6948_s3 + $0x68] sm:$0xff] }
 0x357   : > { %4009 = vst.msk [vmem:[%s6948_s3 + $0x100] sm:$0xff] %vm3976_vm1, %v3960_v4  ;;  %v3963_v17 = vadd.f32 %v3877_v21, %v1686_v3  ;;  %v3869_v5 = vadd.f32 %v3868_v62, %v6478_v15  ;;  %v4514_v14 = vpop.f32.mrf.mxu0  ;;  %v1688_v18 = vld [vmem:[%s6948_s3 + $0x128] sm:$0xff]  ;;  %v3459_v4 = vadd.f32 %v6510_v9, %v6272_v11  ;;  %v1693_v9 = vld [vmem:[%s6948_s3 + $0x150] sm:$0xff] }
 0x358   : > { %3988 = vst.msk [vmem:[%s6948_s3 + $0x58] sm:$0xff] %vm3976_vm1, %v3939_v39  ;;  %v3937_v37 = vadd.f32 %v3773_v60, %v1660_v31  ;;  %v3794_v46 = vadd.f32 %v4514_v14, %v6421_v19  ;;  %v4538_v25 = vpop.f32.mrf.mxu1  ;;  %v3681_v53 = vadd.f32 %v6508_v38, %v3456_v41 }
 0x359   : > { %4012 = vst.msk [vmem:[%s6948_s3 + $0x118] sm:$0xff] %vm3976_vm1, %v3963_v17  ;;  %v3961_v15 = vadd.f32 %v3869_v5, %v1684_v32  ;;  %v3890_v57 = vadd.f32 %v4538_v25, %v3665_v59  ;;  %v3785_v2 = vpop.f32.mrf.mxu0  ;;  %v1667_v32 = vld [vmem:[%s6948_s3 + $0x80] sm:$0xff]  ;;  %v3684_v17 = vadd.f32 %v6512_v8, %v3459_v4  ;;  %v6973_v5 = vld [vmem:[#allocation12_spill] sm:$0xff] }
 0x35a   : > { %3986 = vst.msk [vmem:[%s6948_s3 + $0x48] sm:$0xff] %vm3976_vm1, %v3937_v37  ;;  %v3942_v19 = vadd.f32 %v3794_v46, %v1665_v1  ;;  %v3786_v63 = vadd.f32 %v3785_v2, %v6415_v27  ;;  %v3881_v55 = vpop.f32.mrf.mxu1  ;;  %v1666_v27 = vld [vmem:[%s6948_s3 + $0x78] sm:$0xff]  ;;  %v3472_v1 = vadd.f32 %v6522_v45, %v6973_v5  ;;  %v1668_v2 = vld [vmem:[%s6948_s3 + $0x88] sm:$0xff] }
 0x35b   : > { %4010 = vst.msk [vmem:[%s6948_s3 + $0x108] sm:$0xff] %vm3976_vm1, %v3961_v15  ;;  %v3966_v29 = vadd.f32 %v3890_v57, %v1689_v26  ;;  %v3882_v22 = vadd.f32 %v3881_v55, %v6487_v49  ;;  %v4515_v43 = vpop.f32.mrf.mxu0  ;;  %v1694_v26 = vld [vmem:[%s6948_s3 + $0x158] sm:$0xff]  ;;  %v1696_v5 = vld [vmem:[%s6948_s3 + $0x168] sm:$0xff] }
 0x35c   : > { %3991 = vst.msk [vmem:[%s6948_s3 + $0x70] sm:$0xff] %vm3976_vm1, %v3942_v19  ;;  %v3940_v42 = vadd.f32 %v3786_v63, %v1663_v16  ;;  %v3797_v54 = vadd.f32 %v4515_v43, %v6424_v52  ;;  %v4539_v24 = vpop.f32.mrf.mxu1  ;;  %v6974_v15 = vld [vmem:[#allocation10_spill] sm:$0xff]  ;;  %v1692_v63 = vld [vmem:[%s6948_s3 + $0x148] sm:$0xff]  ;;  %v3697_v55 = vadd.f32 %v6524_v44, %v3472_v1  ;;  %v1697_v43 = vld [vmem:[%s6948_s3 + $0x170] sm:$0xff] }
 0x35d   : > { %4015 = vst.msk [vmem:[%s6948_s3 + $0x130] sm:$0xff] %vm3976_vm1, %v3966_v29  ;;  %v3964_v49 = vadd.f32 %v3882_v22, %v1687_v51  ;;  %v3893_v7 = vadd.f32 %v4539_v24, %v3668_v35  ;;  %v3788_v28 = vpop.f32.mrf.mxu0  ;;  %v6975_v35 = vld [vmem:[#allocation13_spill] sm:$0xff] }
 0x35e   : > { %3989 = vst.msk [vmem:[%s6948_s3 + $0x60] sm:$0xff] %vm3976_vm1, %v3940_v42  ;;  %v3943_v52 = vadd.f32 %v3797_v54, %v1666_v27  ;;  %v3789_v48 = vadd.f32 %v3788_v28, %v6418_v6  ;;  %v3884_v3 = vpop.f32.mrf.mxu1  ;;  %v1669_v6 = vld [vmem:[%s6948_s3 + $0x90] sm:$0xff]  ;;  %v3475_v41 = vadd.f32 %v6526_v56, %v6975_v35  ;;  %v6976_v54 = vld [vmem:[#allocation11_spill] sm:$0xff]  ;;  %v6978_v28 = vld [vmem:[#allocation14_spill] sm:$0xff] }
 0x35f   : > { %4013 = vst.msk [vmem:[%s6948_s3 + $0x120] sm:$0xff] %vm3976_vm1, %v3964_v49  ;;  %v3967_v21 = vadd.f32 %v3893_v7, %v1690_v40  ;;  %v3885_v31 = vadd.f32 %v3884_v3, %v6490_v20  ;;  %v4518_v34 = vpop.f32.mrf.mxu0  ;;  %v6977_v40 = vld [vmem:[#allocation3_spill] sm:$0xff]  ;;  %v6979_v3 = vld [vmem:[#allocation5_spill] sm:$0xff] }
 0x360   : > { %3992 = vst.msk [vmem:[%s6948_s3 + $0x78] sm:$0xff] %vm3976_vm1, %v3943_v52  ;;  %v3941_v38 = vadd.f32 %v3789_v48, %v1664_v0  ;;  %v3810_v11 = vadd.f32 %v4518_v34, %v6433_v50  ;;  %v4542_v39 = vpop.f32.mrf.mxu1  ;;  %v3467_v24 = vadd.f32 %v6977_v40, %v6976_v54  ;;  %v1695_v48 = vld [vmem:[%s6948_s3 + $0x160] sm:$0xff] }
 0x361   : > { %4016 = vst.msk [vmem:[%s6948_s3 + $0x138] sm:$0xff] %vm3976_vm1, %v3967_v21  ;;  %v3965_v20 = vadd.f32 %v3885_v31, %v1688_v18  ;;  %v3906_v60 = vadd.f32 %v4542_v39, %v3681_v53  ;;  %v3801_v62 = vpop.f32.mrf.mxu0  ;;  %v3700_v53 = vadd.f32 %v6979_v3, %v3475_v41  ;;  %v1674_v31 = vld [vmem:[%s6948_s3 + $0xb8] sm:$0xff] }
 0x362   : > { %3990 = vst.msk [vmem:[%s6948_s3 + $0x68] sm:$0xff] %vm3976_vm1, %v3941_v38  ;;  %v3946_v50 = vadd.f32 %v3810_v11, %v1669_v6  ;;  %v3802_v59 = vadd.f32 %v3801_v62, %v6427_v12  ;;  %v3897_v13 = vpop.f32.mrf.mxu1  ;;  %v1670_v12 = vld [vmem:[%s6948_s3 + $0x98] sm:$0xff]  ;;  %v6980_v38 = vld [vmem:[#allocation16_spill] sm:$0xff] }
 0x363   : > { %4014 = vst.msk [vmem:[%s6948_s3 + $0x128] sm:$0xff] %vm3976_vm1, %v3965_v20  ;;  %v3970_v14 = vadd.f32 %v3906_v60, %v1693_v9  ;;  %v3898_v37 = vadd.f32 %v3897_v13, %v6501_v36  ;;  %v4519_v46 = vpop.f32.mrf.mxu0  ;;  %v3464_v36 = vadd.f32 %v6514_v61, %v6974_v15  ;;  %v1698_v9 = vld [vmem:[%s6948_s3 + $0x178] sm:$0xff]  ;;  %v6981_v20 = vld [vmem:[#allocation4_spill] sm:$0xff]  ;;  %v6982_v13 = vld [vmem:[#allocation15_spill] sm:$0xff] }
 0x364   : > { %3995 = vst.msk [vmem:[%s6948_s3 + $0x90] sm:$0xff] %vm3976_vm1, %v3946_v50  ;;  %v3944_v8 = vadd.f32 %v3802_v59, %v1667_v32  ;;  %v3813_v45 = vadd.f32 %v4519_v46, %v6436_v58  ;;  %v4543_v25 = vpop.f32.mrf.mxu1  ;;  %v3692_v60 = vadd.f32 %v6981_v20, %v3467_v24  ;;  %v1672_v50 = vld [vmem:[%s6948_s3 + $0xa8] sm:$0xff] }
 0x365   : > { %4019 = vst.msk [vmem:[%s6948_s3 + $0x150] sm:$0xff] %vm3976_vm1, %v3970_v14  ;;  %v3968_v57 = vadd.f32 %v3898_v37, %v1691_v47  ;;  %v3909_v16 = vadd.f32 %v4543_v25, %v3684_v17  ;;  %v3804_v58 = vpop.f32.mrf.mxu0 }
 0x366   : > { %3993 = vst.msk [vmem:[%s6948_s3 + $0x80] sm:$0xff] %vm3976_vm1, %v3944_v8  ;;  %v3947_v19 = vadd.f32 %v3813_v45, %v1670_v12  ;;  %v3805_v61 = vadd.f32 %v3804_v58, %v6430_v23  ;;  %v3900_v51 = vpop.f32.mrf.mxu1  ;;  %v1673_v23 = vld [vmem:[%s6948_s3 + $0xb0] sm:$0xff] }
 0x367   : > { %4017 = vst.msk [vmem:[%s6948_s3 + $0x140] sm:$0xff] %vm3976_vm1, %v3968_v57  ;;  %v3971_v29 = vadd.f32 %v3909_v16, %v1694_v26  ;;  %v3901_v22 = vadd.f32 %v3900_v51, %v6504_v10  ;;  %v4522_v27 = vpop.f32.mrf.mxu0  ;;  %v3689_v10 = vadd.f32 %v6516_v30, %v3464_v36 }
 0x368   : > { %3996 = vst.msk [vmem:[%s6948_s3 + $0x98] sm:$0xff] %vm3976_vm1, %v3947_v19  ;;  %v3945_v44 = vadd.f32 %v3805_v61, %v1668_v2  ;;  %v3826_v56 = vadd.f32 %v4522_v27, %v6445_v33  ;;  %v4546_v42 = vpop.f32.mrf.mxu1  ;;  %v1671_v33 = vld [vmem:[%s6948_s3 + $0xa0] sm:$0xff] }
 0x369   : > { %4020 = vst.msk [vmem:[%s6948_s3 + $0x158] sm:$0xff] %vm3976_vm1, %v3971_v29  ;;  %v3969_v49 = vadd.f32 %v3901_v22, %v1692_v63  ;;  %v3922_v7 = vadd.f32 %v4546_v42, %v3697_v55  ;;  %v3817_v0 = vpop.f32.mrf.mxu0 }
 0x36a   : > { %3994 = vst.msk [vmem:[%s6948_s3 + $0x88] sm:$0xff] %vm3976_vm1, %v3945_v44  ;;  %v3950_v30 = vadd.f32 %v3826_v56, %v1673_v23  ;;  %v3818_v52 = vadd.f32 %v3817_v0, %v6978_v28  ;;  %v3913_v18 = vpop.f32.mrf.mxu1 }
 0x36b   : > { %4018 = vst.msk [vmem:[%s6948_s3 + $0x148] sm:$0xff] %vm3976_vm1, %v3969_v49  ;;  %v3974_v4 = vadd.f32 %v3922_v7, %v1697_v43  ;;  %v3914_v21 = vadd.f32 %v3913_v18, %v3689_v10  ;;  %v4523_v6 = vpop.f32.mrf.mxu0 }
 0x36c   : > { %3999 = vst.msk [vmem:[%s6948_s3 + $0xb0] sm:$0xff] %vm3976_vm1, %v3950_v30  ;;  %v3948_v34 = vadd.f32 %v3818_v52, %v1671_v33  ;;  %v3829_v11 = vadd.f32 %v4523_v6, %v6980_v38  ;;  %v4547_v39 = vpop.f32.mrf.mxu1 }
 0x36d   : > { %4023 = vst.msk [vmem:[%s6948_s3 + $0x170] sm:$0xff] %vm3976_vm1, %v3974_v4  ;;  %v3972_v32 = vadd.f32 %v3914_v21, %v1695_v48  ;;  %v3925_v62 = vadd.f32 %v4547_v39, %v3700_v53  ;;  %v3820_v59 = vpop.f32.mrf.mxu0 }
 0x36e   : > { %3997 = vst.msk [vmem:[%s6948_s3 + $0xa0] sm:$0xff] %vm3976_vm1, %v3948_v34  ;;  %v3951_v47 = vadd.f32 %v3829_v11, %v1674_v31  ;;  %v3821_v17 = vadd.f32 %v3820_v59, %v6982_v13  ;;  %v3916_v1 = vpop.f32.mrf.mxu1 }
 0x36f   : > { %4021 = vst.msk [vmem:[%s6948_s3 + $0x160] sm:$0xff] %vm3976_vm1, %v3972_v32  ;;  %v3975_v14 = vadd.f32 %v3925_v62, %v1698_v9  ;;  %v3917_v37 = vadd.f32 %v3916_v1, %v3692_v60 }
 0x370   : > { %4000 = vst.msk [vmem:[%s6948_s3 + $0xb8] sm:$0xff] %vm3976_vm1, %v3951_v47  ;;  %v3949_v12 = vadd.f32 %v3821_v17, %v1672_v50 }
 0x371   : > { %4024 = vst.msk [vmem:[%s6948_s3 + $0x178] sm:$0xff] %vm3976_vm1, %v3975_v14  ;;  %v3973_v46 = vadd.f32 %v3917_v37, %v1696_v5 }
 0x372   : > { %3998 = vst.msk [vmem:[%s6948_s3 + $0xa8] sm:$0xff] %vm3976_vm1, %v3949_v12 }
 0x373   : > { %4022 = vst.msk [vmem:[%s6948_s3 + $0x168] sm:$0xff] %vm3976_vm1, %v3973_v46 }
 0x374 PF: > { %s13_s16 = sadd.s32 1, %s4654_s16   ;;  %s6983_s12 = smov %s4642_s13 }
 0x375   : > { %p10_p12 = scmp.ge.s32.totalorder %s13_s16, 4   ;;  %s6984_s13 = smov %s4713_s20 }
 0x376   : > { %s6985_s14 = smov %s4650_s15  ;;  %s6986_s15 = smov %s6988_s17 }
 0x377   :  { %12 = sbr.rel (!%p10_p12) target bundleno = 3 (0x3), region = 109 }

</bundles_post_ra>
